<compile_context>
chip_gen: v7x
topology: tpu7x:2x2x1
jax: 0.10.0
libtpu: 0.0.40
codegen_flags: <defaults>
</compile_context>

<pallas_src>
import functools
from typing import List, Tuple

import jax
import jax.numpy as jnp
from jax import lax
from jax.experimental import pallas as pl
from jax.experimental.pallas import tpu as pltpu

BN_EPS = 1e-5
LANE = 128

# Conservative budgets that are safe on v5e/v6e (128 MiB VMEM) and v7x
# (64 MiB physical / 32 MiB scoped).
SINGLE_PASS_VMEM_BUDGET = 8 * 1024 * 1024
TILED_VMEM_BUDGET = 12 * 1024 * 1024
VMEM_LIMIT_BYTES = 32 * 1024 * 1024


def _round_up(x: int, m: int) -> int:
    return ((x + m - 1) // m) * m


# ----------------------------- Pallas kernels --------------------------------
def _single_pass_kernel(p_ref, w_ref, g_ref, b_ref, o_ref, *, m_true, n_pad_rows):
    """Whole-problem-in-VMEM fused conv(matmul) + BatchNorm(batch stats) + ReLU.

    Patches are read once and the matmul runs once.  Zero-padded patch rows
    produce y == 0, so the plain column sum is the sum over real rows; each
    padded row contributes mean^2 to sum((y-mean)^2), which is subtracted out
    (exact centered variance -> no E[y^2]-E[y]^2 cancellation).
    """
    y = jnp.dot(p_ref[...], w_ref[...], preferred_element_type=jnp.float32)
    inv_m = 1.0 / m_true
    mean = jnp.sum(y, axis=0, keepdims=True) * inv_m
    d = y - mean
    ssq = jnp.sum(d * d, axis=0, keepdims=True) - n_pad_rows * (mean * mean)
    var = jnp.maximum(ssq * inv_m, 0.0)
    a = g_ref[...] * lax.rsqrt(var + BN_EPS)
    o_ref[...] = jnp.maximum(d * a + b_ref[...], 0.0).astype(o_ref.dtype)


def _two_phase_kernel(p_ref, w_ref, g_ref, b_ref, o_ref,
                      sum_ref, sq_ref, shift_ref, scale_ref, bias_ref, *, m_true):
    """Tiled fused conv + BatchNorm(batch stats) + ReLU for problems too large
    to hold in VMEM.  grid = (2, num_m_tiles), M tiles innermost.

      phase 0: y = P_tile @ W, accumulate per-channel shifted sum / sum-of-
               squares (shift = first-tile channel mean; algebraically exact
               for any shift, numerically well conditioned near the mean).
               Padded rows are masked out of the statistics.
      phase 1: recompute the cheap matmul, apply precomputed BN scale/shift
               + ReLU, store bf16.
    """
    phase = pl.program_id(0)
    mtile = pl.program_id(1)
    tile_m = p_ref.shape[0]

    y = jnp.dot(p_ref[...], w_ref[...], preferred_element_type=jnp.float32)

    @pl.when(phase == 0)
    def _():
        @pl.when(mtile == 0)
        def _():
            sum_ref[...] = jnp.zeros_like(sum_ref)
            sq_ref[...] = jnp.zeros_like(sq_ref)
            shift_ref[...] = jnp.sum(y, axis=0, keepdims=True) * (1.0 / tile_m)
        rows = mtile * tile_m + lax.broadcasted_iota(jnp.int32, (tile_m, 1), 0)
        d = jnp.where(rows < m_true, y - shift_ref[...], 0.0)
        sum_ref[...] += jnp.sum(d, axis=0, keepdims=True)
        sq_ref[...] += jnp.sum(d * d, axis=0, keepdims=True)
        # Benign write-through: the output block index stays 0 for all of
        # phase 0 (nothing is flushed to HBM here), and phase 1 / mtile 0
        # rewrites block 0 before its first flush.  This removes any reliance
        # on "never flush an unwritten block" revisit semantics.
        o_ref[...] = y.astype(o_ref.dtype)

    @pl.when(phase == 1)
    def _():
        @pl.when(mtile == 0)
        def _():
            inv_m = 1.0 / m_true
            mu_c = sum_ref[...] * inv_m                         # mean of (y - shift)
            var = jnp.maximum(sq_ref[...] * inv_m - mu_c * mu_c, 0.0)
            a = g_ref[...] * lax.rsqrt(var + BN_EPS)
            scale_ref[...] = a
            bias_ref[...] = b_ref[...] - (shift_ref[...] + mu_c) * a
        o_ref[...] = jnp.maximum(y * scale_ref[...] + bias_ref[...], 0.0
                                 ).astype(o_ref.dtype)


def _fused_single_pass(patches, w_mat, gamma, beta, m_true):
    m_pad, _ = patches.shape
    c_pad = w_mat.shape[1]
    kernel = functools.partial(_single_pass_kernel, m_true=float(m_true),
                               n_pad_rows=float(m_pad - m_true))
    return pl.pallas_call(
        kernel,
        out_shape=jax.ShapeDtypeStruct((m_pad, c_pad), jnp.bfloat16),
        compiler_params=pltpu.CompilerParams(vmem_limit_bytes=VMEM_LIMIT_BYTES),
    )(patches, w_mat, gamma, beta)


def _fused_two_phase(patches, w_mat, gamma, beta, m_true, tile_m):
    m_pad, k_pad = patches.shape
    c_pad = w_mat.shape[1]
    num_m_tiles = m_pad // tile_m

    kernel = functools.partial(_two_phase_kernel, m_true=m_true)
    grid_spec = pltpu.PrefetchScalarGridSpec(
        num_scalar_prefetch=0,
        grid=(2, num_m_tiles),
        in_specs=[
            pl.BlockSpec((tile_m, k_pad), lambda p, m: (m, 0)),   # patches tile
            pl.BlockSpec((k_pad, c_pad), lambda p, m: (0, 0)),    # full weight
            pl.BlockSpec((1, c_pad), lambda p, m: (0, 0)),        # gamma
            pl.BlockSpec((1, c_pad), lambda p, m: (0, 0)),        # beta
        ],
        # Phase 0 parks the output on block 0 (written through but never
        # flushed, since the index does not change); phase 1 writes every tile.
        out_specs=pl.BlockSpec((tile_m, c_pad), lambda p, m: (m * p, 0)),
        scratch_shapes=[pltpu.VMEM((1, c_pad), jnp.float32)] * 5,
    )
    return pl.pallas_call(
        kernel,
        out_shape=jax.ShapeDtypeStruct((m_pad, c_pad), jnp.bfloat16),
        grid_spec=grid_spec,
        compiler_params=pltpu.CompilerParams(
            dimension_semantics=("arbitrary", "arbitrary"),
            vmem_limit_bytes=VMEM_LIMIT_BYTES,
        ),
    )(patches, w_mat, gamma, beta)


# ------------------------------- JAX glue ------------------------------------
def _im2col_nhwc(x_nhwc, kh, kw, stride, pad_top, pad_bottom, pad_w):
    """Extract conv patches from NHWC input.

    Returns ([N*OH*OW, KH*KW*C], OH, OW) with K ordered (kh, kw, cin) to match
    a HWIO-reshaped weight matrix.
    """
    N, H, W, C = x_nhwc.shape
    sh, sw = stride
    xp = jnp.pad(x_nhwc, ((0, 0), (pad_top, pad_bottom), (pad_w, pad_w), (0, 0)))
    OH = (H + pad_top + pad_bottom - kh) // sh + 1
    OW = (W + 2 * pad_w - kw) // sw + 1
    taps = []
    for i in range(kh):
        for j in range(kw):
            taps.append(xp[:, i:i + sh * OH:sh, j:j + sw * OW:sw, :])  # [N,OH,OW,C]
    p = jnp.stack(taps, axis=3)                    # [N, OH, OW, KH*KW, C]
    return p.reshape(N * OH * OW, kh * kw * C), OH, OW


def encoder_layer_nhwc(x_nhwc, weight_oihw, gamma, beta, stride, padding,
                       *, force_tiled=False, tile_m_override=None):
    """One layer: F.pad(H top) + conv(bias=False) -> BN(train) -> ReLU.
    NHWC in / NHWC bf16 out."""
    N = x_nhwc.shape[0]
    Cout, Cin, KH, KW = weight_oihw.shape
    ph, pw = padding

    # F.pad(x, (0, 0, 1, 0)) == one extra zero row at the top of H; fold it into
    # the conv padding of the patch extraction (no separate pad op).
    patches, OH, OW = _im2col_nhwc(x_nhwc, KH, KW, stride, 1 + ph, ph, pw)
    M, K = patches.shape

    K_pad = _round_up(max(K, LANE), LANE)
    C_pad = _round_up(max(Cout, LANE), LANE)

    w_mat = weight_oihw.transpose(2, 3, 1, 0).reshape(K, Cout)      # (kh,kw,cin) x cout
    w_mat = jnp.pad(w_mat, ((0, K_pad - K), (0, C_pad - Cout))).astype(jnp.bfloat16)
    gamma_p = jnp.pad(gamma.astype(jnp.float32), (0, C_pad - Cout)).reshape(1, C_pad)
    beta_p = jnp.pad(beta.astype(jnp.float32), (0, C_pad - Cout)).reshape(1, C_pad)

    M8 = _round_up(M, 8)
    # patches(bf16) + weight(bf16) + bf16 out + f32 matmul temp.
    single_pass_bytes = (M8 * K_pad * 2 + K_pad * C_pad * 2 + M8 * C_pad * (2 + 4))
    use_single_pass = (not force_tiled) and single_pass_bytes <= SINGLE_PASS_VMEM_BUDGET

    if use_single_pass:
        tile_m = M8
    elif tile_m_override is not None:
        tile_m = int(tile_m_override)
    else:
        # Largest M tile keeping double-buffered patch + output tiles plus the
        # f32 matmul temp under budget (safe on v5e/v6e/v7x scoped VMEM).
        per_row_bytes = 2 * (K_pad * 2) + 2 * (C_pad * 2) + C_pad * 4
        tile_m = max(256, min(4096, TILED_VMEM_BUDGET // per_row_bytes))
        tile_m = min(tile_m, M8)
        tile_m = max(8, (tile_m // 8) * 8)

    M_pad = _round_up(M, tile_m)
    patches = jnp.pad(patches, ((0, M_pad - M), (0, K_pad - K))).astype(jnp.bfloat16)

    if use_single_pass:
        out = _fused_single_pass(patches, w_mat, gamma_p, beta_p, M)
    else:
        out = _fused_two_phase(patches, w_mat, gamma_p, beta_p, M, tile_m)

    # TODO(synk): have the kernel write (N, OH, OW, C) blocks directly to drop
    #             this (bf16) slice + reshape glue pass.
    return out[:M, :Cout].reshape(N, OH, OW, Cout)


def init_encoder_params(key, channels: List[int], kernel_size: Tuple[int, int]):
    """Deterministic parameter init mirroring the module's __init__ shapes."""
    params = []
    kh, kw = kernel_size
    for i in range(len(channels) - 1):
        cin, cout = channels[i], channels[i + 1]
        key, wk = jax.random.split(key)
        fan_in = cin * kh * kw
        w = jax.random.normal(wk, (cout, cin, kh, kw), jnp.float32) * (fan_in ** -0.5)
        gamma = jnp.ones((cout,), jnp.float32)   # nn.BatchNorm2d default weight
        beta = jnp.zeros((cout,), jnp.float32)   # nn.BatchNorm2d default bias
        params.append((w, gamma, beta))
    return params


def encoder_forward(x_nchw, params, stride, padding,
                    force_tiled=False, tile_m_override=None):
    """Encoder.forward.  NCHW in, list of NCHW outputs (like the PyTorch
    module); activations are chained in NHWC bf16 internally."""
    x = x_nchw.transpose(0, 2, 3, 1).astype(jnp.bfloat16)   # -> NHWC once
    outs = []
    for (w, gamma, beta) in params:
        x = encoder_layer_nhwc(x, w, gamma, beta, stride, padding,
                               force_tiled=force_tiled,
                               tile_m_override=tile_m_override)
        outs.append(x.transpose(0, 3, 1, 2))   # NCHW for the returned list
    return outs


# ------------------------- pure-JAX reference (check) ------------------------
def _reference_forward(x_nchw, params, stride, padding):
    x = x_nchw.transpose(0, 2, 3, 1).astype(jnp.bfloat16)
    ph, pw = padding
    outs = []
    for (w, gamma, beta) in params:
        w_hwio = w.transpose(2, 3, 1, 0).astype(jnp.bfloat16)
        y = lax.conv_general_dilated(
            x, w_hwio, window_strides=stride,
            padding=((1 + ph, ph), (pw, pw)),
            dimension_numbers=("NHWC", "HWIO", "NHWC"),
            preferred_element_type=jnp.float32)
        mean = jnp.mean(y, axis=(0, 1, 2), keepdims=True)
        var = jnp.mean((y - mean) ** 2, axis=(0, 1, 2), keepdims=True)
        yn = jnp.maximum((y - mean) * lax.rsqrt(var + BN_EPS) * gamma + beta, 0.0)
        outs.append(yn.transpose(0, 3, 1, 2))
        x = yn.astype(jnp.bfloat16)            # mirror the kernel's bf16 chaining
    return outs


# --------------------------------- main --------------------------------------
if __name__ == "__main__":
    channels = [4, 8, 16]
    kernel_size = (3, 3)
    stride = (1, 1)
    padding = (1, 1)

    key = jax.random.PRNGKey(0)
    key, xk = jax.random.split(key)
    x = jax.random.normal(xk, (2, 4, 16, 16), jnp.float32)  # NCHW, like PyTorch

    params = init_encoder_params(key, channels, kernel_size)

    fwd = jax.jit(functools.partial(encoder_forward, stride=stride, padding=padding))
    outs = [jax.block_until_ready(o) for o in fwd(x, params)]

    # Shapes: per layer, H grows by 1 (F.pad top) and the conv keeps spatial dims.
    assert outs[0].shape == (2, 8, 17, 16), outs[0].shape
    assert outs[1].shape == (2, 16, 18, 16), outs[1].shape
    assert all(bool(jnp.all(o >= 0.0)) for o in outs)            # ReLU
    assert all(bool(jnp.all(jnp.isfinite(o.astype(jnp.float32)))) for o in outs)

    # Numerical check against an independent (lax.conv + BN) bf16 reference.
    # Kernel outputs are bf16 (writeback halving), so allow ~1 ulp at |y|<=5.
    refs = _reference_forward(x, params, stride, padding)
    for o, r in zip(outs, refs):
        err = float(jnp.max(jnp.abs(o.astype(jnp.float32) - r)))
        assert err < 6e-2, err

    # Also exercise the tiled two-phase path (forced small tile so multiple M
    # tiles + the padded-row mask + shifted stats are all covered).
    fwd_tiled = jax.jit(functools.partial(encoder_forward, stride=stride,
                                          padding=padding, force_tiled=True,
                                          tile_m_override=128))
    outs_t = [jax.block_until_ready(o) for o in fwd_tiled(x, params)]
    for o, r in zip(outs_t, refs):
        err = float(jnp.max(jnp.abs(o.astype(jnp.float32) - r)))
        assert err < 6e-2, err

    print("KERNEL_OK")
</pallas_src>

<mosaic_0001>
module attributes {stable_mosaic.version = 11 : i64} {
  func.func @_single_pass_kernel(%arg0: memref<544x128xbf16, #tpu.memory_space<vmem>>, %arg1: memref<128x128xbf16, #tpu.memory_space<vmem>>, %arg2: memref<1x128xf32, #tpu.memory_space<vmem>>, %arg3: memref<1x128xf32, #tpu.memory_space<vmem>>, %arg4: memref<544x128xbf16, #tpu.memory_space<vmem>>) attributes {dimension_semantics = [], scalar_prefetch = 0 : i64, scratch_operands = 0 : i64, tpu.core_type = #tpu.core_type<tc>} {
    %c0 = arith.constant 0 : index
    %c0_0 = arith.constant 0 : index
    %0 = vector.load %arg0[%c0, %c0_0] : memref<544x128xbf16, #tpu.memory_space<vmem>>, vector<544x128xbf16>
    %c0_1 = arith.constant 0 : index
    %c0_2 = arith.constant 0 : index
    %1 = vector.load %arg1[%c0_1, %c0_2] : memref<128x128xbf16, #tpu.memory_space<vmem>>, vector<128x128xbf16>
    %cst = arith.constant dense<0.000000e+00> : vector<544x128xf32>
    %2 = tpu.matmul %0, %1, %cst {dimension_numbers = #tpu.dot_dimension_numbers<[1], [0], [0], [1], [0, 0, 1, 1], [], []>} : vector<544x128xbf16>, vector<128x128xbf16>, vector<544x128xf32> -> vector<544x128xf32>
    %cst_3 = arith.constant dense<0.000000e+00> : vector<128xf32>
    %3 = vector.multi_reduction <add>, %2, %cst_3 [0] : vector<544x128xf32> to vector<128xf32>
    %4 = vector.shape_cast %3 : vector<128xf32> to vector<1x128xf32>
    %cst_4 = arith.constant 0.0018382353 : f32
    %5 = vector.broadcast %cst_4 : f32 to vector<1x128xf32>
    %6 = arith.mulf %4, %5 : vector<1x128xf32>
    %7 = vector.broadcast %6 : vector<1x128xf32> to vector<544x128xf32>
    %8 = arith.subf %2, %7 : vector<544x128xf32>
    %9 = arith.mulf %8, %8 : vector<544x128xf32>
    %cst_5 = arith.constant dense<0.000000e+00> : vector<128xf32>
    %10 = vector.multi_reduction <add>, %9, %cst_5 [0] : vector<544x128xf32> to vector<128xf32>
    %11 = vector.shape_cast %10 : vector<128xf32> to vector<1x128xf32>
    %12 = arith.mulf %6, %6 : vector<1x128xf32>
    %cst_6 = arith.constant 0.000000e+00 : f32
    %13 = vector.broadcast %cst_6 : f32 to vector<1x128xf32>
    %14 = arith.mulf %13, %12 : vector<1x128xf32>
    %15 = arith.subf %11, %14 : vector<1x128xf32>
    %cst_7 = arith.constant 0.0018382353 : f32
    %16 = vector.broadcast %cst_7 : f32 to vector<1x128xf32>
    %17 = arith.mulf %15, %16 : vector<1x128xf32>
    %cst_8 = arith.constant 0.000000e+00 : f32
    %18 = vector.broadcast %cst_8 : f32 to vector<1x128xf32>
    %19 = arith.maximumf %17, %18 : vector<1x128xf32>
    %c0_9 = arith.constant 0 : index
    %c0_10 = arith.constant 0 : index
    %20 = vector.load %arg2[%c0_9, %c0_10] : memref<1x128xf32, #tpu.memory_space<vmem>>, vector<1x128xf32>
    %cst_11 = arith.constant 9.99999974E-6 : f32
    %21 = vector.broadcast %cst_11 : f32 to vector<1x128xf32>
    %22 = arith.addf %19, %21 : vector<1x128xf32>
    %23 = math.rsqrt %22 : vector<1x128xf32>
    %24 = arith.mulf %20, %23 : vector<1x128xf32>
    %25 = vector.broadcast %24 : vector<1x128xf32> to vector<544x128xf32>
    %26 = arith.mulf %8, %25 : vector<544x128xf32>
    %c0_12 = arith.constant 0 : index
    %c0_13 = arith.constant 0 : index
    %27 = vector.load %arg3[%c0_12, %c0_13] : memref<1x128xf32, #tpu.memory_space<vmem>>, vector<1x128xf32>
    %28 = vector.broadcast %27 : vector<1x128xf32> to vector<544x128xf32>
    %29 = arith.addf %26, %28 : vector<544x128xf32>
    %cst_14 = arith.constant 0.000000e+00 : f32
    %30 = vector.broadcast %cst_14 : f32 to vector<544x128xf32>
    %31 = arith.maximumf %29, %30 : vector<544x128xf32>
    %32 = arith.truncf %31 : vector<544x128xf32> to vector<544x128xbf16>
    %c0_15 = arith.constant 0 : index
    %c0_16 = arith.constant 0 : index
    %33 = vector.load %arg4[%c0_15, %c0_16] : memref<544x128xbf16, #tpu.memory_space<vmem>>, vector<544x128xbf16>
    tpu.vector_store %arg4[%c0_15, %c0_16], %32 {strides = array<i32>} : memref<544x128xbf16, #tpu.memory_space<vmem>>, vector<544x128xbf16>,
    return
  }
}

module attributes {stable_mosaic.version = 11 : i64} {
  func.func @_single_pass_kernel(%arg0: memref<576x128xbf16, #tpu.memory_space<vmem>>, %arg1: memref<128x128xbf16, #tpu.memory_space<vmem>>, %arg2: memref<1x128xf32, #tpu.memory_space<vmem>>, %arg3: memref<1x128xf32, #tpu.memory_space<vmem>>, %arg4: memref<576x128xbf16, #tpu.memory_space<vmem>>) attributes {dimension_semantics = [], scalar_prefetch = 0 : i64, scratch_operands = 0 : i64, tpu.core_type = #tpu.core_type<tc>} {
    %c0 = arith.constant 0 : index
    %c0_0 = arith.constant 0 : index
    %0 = vector.load %arg0[%c0, %c0_0] : memref<576x128xbf16, #tpu.memory_space<vmem>>, vector<576x128xbf16>
    %c0_1 = arith.constant 0 : index
    %c0_2 = arith.constant 0 : index
    %1 = vector.load %arg1[%c0_1, %c0_2] : memref<128x128xbf16, #tpu.memory_space<vmem>>, vector<128x128xbf16>
    %cst = arith.constant dense<0.000000e+00> : vector<576x128xf32>
    %2 = tpu.matmul %0, %1, %cst {dimension_numbers = #tpu.dot_dimension_numbers<[1], [0], [0], [1], [0, 0, 1, 1], [], []>} : vector<576x128xbf16>, vector<128x128xbf16>, vector<576x128xf32> -> vector<576x128xf32>
    %cst_3 = arith.constant dense<0.000000e+00> : vector<128xf32>
    %3 = vector.multi_reduction <add>, %2, %cst_3 [0] : vector<576x128xf32> to vector<128xf32>
    %4 = vector.shape_cast %3 : vector<128xf32> to vector<1x128xf32>
    %cst_4 = arith.constant 0.00173611112 : f32
    %5 = vector.broadcast %cst_4 : f32 to vector<1x128xf32>
    %6 = arith.mulf %4, %5 : vector<1x128xf32>
    %7 = vector.broadcast %6 : vector<1x128xf32> to vector<576x128xf32>
    %8 = arith.subf %2, %7 : vector<576x128xf32>
    %9 = arith.mulf %8, %8 : vector<576x128xf32>
    %cst_5 = arith.constant dense<0.000000e+00> : vector<128xf32>
    %10 = vector.multi_reduction <add>, %9, %cst_5 [0] : vector<576x128xf32> to vector<128xf32>
    %11 = vector.shape_cast %10 : vector<128xf32> to vector<1x128xf32>
    %12 = arith.mulf %6, %6 : vector<1x128xf32>
    %cst_6 = arith.constant 0.000000e+00 : f32
    %13 = vector.broadcast %cst_6 : f32 to vector<1x128xf32>
    %14 = arith.mulf %13, %12 : vector<1x128xf32>
    %15 = arith.subf %11, %14 : vector<1x128xf32>
    %cst_7 = arith.constant 0.00173611112 : f32
    %16 = vector.broadcast %cst_7 : f32 to vector<1x128xf32>
    %17 = arith.mulf %15, %16 : vector<1x128xf32>
    %cst_8 = arith.constant 0.000000e+00 : f32
    %18 = vector.broadcast %cst_8 : f32 to vector<1x128xf32>
    %19 = arith.maximumf %17, %18 : vector<1x128xf32>
    %c0_9 = arith.constant 0 : index
    %c0_10 = arith.constant 0 : index
    %20 = vector.load %arg2[%c0_9, %c0_10] : memref<1x128xf32, #tpu.memory_space<vmem>>, vector<1x128xf32>
    %cst_11 = arith.constant 9.99999974E-6 : f32
    %21 = vector.broadcast %cst_11 : f32 to vector<1x128xf32>
    %22 = arith.addf %19, %21 : vector<1x128xf32>
    %23 = math.rsqrt %22 : vector<1x128xf32>
    %24 = arith.mulf %20, %23 : vector<1x128xf32>
    %25 = vector.broadcast %24 : vector<1x128xf32> to vector<576x128xf32>
    %26 = arith.mulf %8, %25 : vector<576x128xf32>
    %c0_12 = arith.constant 0 : index
    %c0_13 = arith.constant 0 : index
    %27 = vector.load %arg3[%c0_12, %c0_13] : memref<1x128xf32, #tpu.memory_space<vmem>>, vector<1x128xf32>
    %28 = vector.broadcast %27 : vector<1x128xf32> to vector<576x128xf32>
    %29 = arith.addf %26, %28 : vector<576x128xf32>
    %cst_14 = arith.constant 0.000000e+00 : f32
    %30 = vector.broadcast %cst_14 : f32 to vector<576x128xf32>
    %31 = arith.maximumf %29, %30 : vector<576x128xf32>
    %32 = arith.truncf %31 : vector<576x128xf32> to vector<576x128xbf16>
    %c0_15 = arith.constant 0 : index
    %c0_16 = arith.constant 0 : index
    %33 = vector.load %arg4[%c0_15, %c0_16] : memref<576x128xbf16, #tpu.memory_space<vmem>>, vector<576x128xbf16>
    tpu.vector_store %arg4[%c0_15, %c0_16], %32 {strides = array<i32>} : memref<576x128xbf16, #tpu.memory_space<vmem>>, vector<576x128xbf16>,
    return
  }
}

</mosaic_0001>

<bundles_post_ra>
// kernel: encoder_forward.2
= control target key start
LH: loop header
LB: loop body
LE: loop exit
PB: predicated region body
PF: predicated region fallthrough
CT: control target
= control target key end

     0   :  { %s3663_s1 = inlined_call_operand.vmem [shape: bf16[128,128], index: 1, kind: input, shape index: {}]   ;;  %s3664_s0 = inlined_call_operand.vmem [shape: bf16[544,128], index: 0, kind: input, shape index: {}]   ;;  %s3665_s2 = inlined_call_operand.vmem [shape: f32[1,128], index: 2, kind: input, shape index: {}]   ;;  %s3666_s3 = inlined_call_operand.vmem [shape: f32[1,128], index: 3, kind: input, shape index: {}]   ;;  %s3667_s4 = inlined_call_operand.vmem [shape: bf16[544,128], index: 4, kind: output, shape index: {}]  }
   0x1   :  { %v2036_v0 = vld [vmem:[%s3663_s1] sm:$0xff]   ;;  %v2037_v1 = vld [vmem:[%s3663_s1 + $0x8] sm:$0xff]   ;;  %v2038_v2 = vld [vmem:[%s3663_s1 + $0x10] sm:$0xff]  }
   0x2   :  { %1936 = vmatprep.subr.bf16.mxu0 %v2036_v0  ;;  %2020 = vmatprep.subr.bf16.mxu1 %v2036_v0  ;;  %v2039_v3 = vld [vmem:[%s3663_s1 + $0x18] sm:$0xff]   ;;  %v2044_v4 = vld [vmem:[%s3664_s0] sm:$0xff]   ;;  %v2041_v6 = vld [vmem:[%s3663_s1 + $0x28] sm:$0xff]  }
   0x3   :  { %1937 = vmatpush3.bf16.msra.mxu0 %v2036_v0  ;;  %2028 = vmatpush3.bf16.msra.mxu1 %v2036_v0  ;;  %v2040_v5 = vld [vmem:[%s3663_s1 + $0x20] sm:$0xff]   ;;  %v2042_v7 = vld [vmem:[%s3663_s1 + $0x30] sm:$0xff]   ;;  %v2043_v8 = vld [vmem:[%s3663_s1 + $0x38] sm:$0xff]  }
   0x4   :  { %1938 = vmatprep.subr.bf16.mxu0 %v2037_v1  ;;  %2021 = vmatprep.subr.bf16.mxu1 %v2037_v1  ;;  %v2062_v9 = vld [vmem:[%s3664_s0 + $0x90] sm:$0xff]   ;;  %v2045_v10 = vld [vmem:[%s3664_s0 + $0x8] sm:$0xff]   ;;  %v2063_v12 = vld [vmem:[%s3664_s0 + $0x98] sm:$0xff]  }
   0x5   :  { %1952 = vmatprep.mubr.bf16.mxu0 %v2044_v4  ;;  %v2046_v11 = vld [vmem:[%s3664_s0 + $0x10] sm:$0xff]   ;;  %1988 = vmatprep.mubr.bf16.mxu1 %v2062_v9  ;;  %v2064_v13 = vld [vmem:[%s3664_s0 + $0xa0] sm:$0xff]   ;;  %v2047_v14 = vld [vmem:[%s3664_s0 + $0x18] sm:$0xff]  }
   0x6   :  { %v2048_v15 = vld [vmem:[%s3664_s0 + $0x20] sm:$0xff]   ;;  %v2065_v16 = vld [vmem:[%s3664_s0 + $0xa8] sm:$0xff]   ;;  %v2066_v17 = vld [vmem:[%s3664_s0 + $0xb0] sm:$0xff]  }
   0x7   :  { %1939 = vmatpush3.bf16.msra.mxu0 %v2037_v1  ;;  %2029 = vmatpush3.bf16.msra.mxu1 %v2037_v1  ;;  %v2049_v18 = vld [vmem:[%s3664_s0 + $0x28] sm:$0xff]   ;;  %v2067_v19 = vld [vmem:[%s3664_s0 + $0xb8] sm:$0xff]   ;;  %v2050_v20 = vld [vmem:[%s3664_s0 + $0x30] sm:$0xff]  }
   0x8   :  { %1940 = vmatprep.subr.bf16.mxu0 %v2038_v2  ;;  %2022 = vmatprep.subr.bf16.mxu1 %v2038_v2  ;;  %v2068_v21 = vld [vmem:[%s3664_s0 + $0xc0] sm:$0xff]   ;;  %v2051_v22 = vld [vmem:[%s3664_s0 + $0x38] sm:$0xff]   ;;  %v2069_v23 = vld [vmem:[%s3664_s0 + $0xc8] sm:$0xff]  }
   0x9   :  { %v2052_v24 = vld [vmem:[%s3664_s0 + $0x40] sm:$0xff]   ;;  %v2070_v25 = vld [vmem:[%s3664_s0 + $0xd0] sm:$0xff]   ;;  %v2053_v26 = vld [vmem:[%s3664_s0 + $0x48] sm:$0xff]  }
   0xa   :  { %v2071_v27 = vld [vmem:[%s3664_s0 + $0xd8] sm:$0xff]   ;;  %v2054_v28 = vld [vmem:[%s3664_s0 + $0x50] sm:$0xff]   ;;  %v2072_v29 = vld [vmem:[%s3664_s0 + $0xe0] sm:$0xff]  }
   0xb   :  { %1941 = vmatpush3.bf16.msra.mxu0 %v2038_v2  ;;  %2030 = vmatpush3.bf16.msra.mxu1 %v2038_v2  ;;  %v2055_v30 = vld [vmem:[%s3664_s0 + $0x58] sm:$0xff]   ;;  %v2073_v31 = vld [vmem:[%s3664_s0 + $0xe8] sm:$0xff]   ;;  %v2056_v32 = vld [vmem:[%s3664_s0 + $0x60] sm:$0xff]  }
   0xc   :  { %1942 = vmatprep.subr.bf16.mxu0 %v2039_v3  ;;  %2023 = vmatprep.subr.bf16.mxu1 %v2039_v3  ;;  %v2074_v33 = vld [vmem:[%s3664_s0 + $0xf0] sm:$0xff]   ;;  %v2057_v34 = vld [vmem:[%s3664_s0 + $0x68] sm:$0xff]   ;;  %v2075_v35 = vld [vmem:[%s3664_s0 + $0xf8] sm:$0xff]  }
   0xd   :  { %v2058_v36 = vld [vmem:[%s3664_s0 + $0x70] sm:$0xff]   ;;  %v2076_v37 = vld [vmem:[%s3664_s0 + $0x100] sm:$0xff]   ;;  %v2059_v38 = vld [vmem:[%s3664_s0 + $0x78] sm:$0xff]  }
   0xe   :  { %v2077_v39 = vld [vmem:[%s3664_s0 + $0x108] sm:$0xff]   ;;  %v2060_v40 = vld [vmem:[%s3664_s0 + $0x80] sm:$0xff]  }
   0xf   :  { %1943 = vmatpush3.bf16.msra.mxu0 %v2039_v3  ;;  %2031 = vmatpush3.bf16.msra.mxu1 %v2039_v3  ;;  %v2061_v41 = vld [vmem:[%s3664_s0 + $0x88] sm:$0xff]  }
  0x10   :  { %1944 = vmatprep.subr.bf16.mxu0 %v2040_v5  ;;  %2024 = vmatprep.subr.bf16.mxu1 %v2040_v5 }
  0x13   :  { %1945 = vmatpush3.bf16.msra.mxu0 %v2040_v5  ;;  %2032 = vmatpush3.bf16.msra.mxu1 %v2040_v5 }
  0x14   :  { %1946 = vmatprep.subr.bf16.mxu0 %v2041_v6  ;;  %2025 = vmatprep.subr.bf16.mxu1 %v2041_v6 }
  0x17   :  { %1947 = vmatpush3.bf16.msra.mxu0 %v2041_v6  ;;  %2033 = vmatpush3.bf16.msra.mxu1 %v2041_v6 }
  0x18   :  { %1948 = vmatprep.subr.bf16.mxu0 %v2042_v7  ;;  %2026 = vmatprep.subr.bf16.mxu1 %v2042_v7 }
  0x1b   :  { %1949 = vmatpush3.bf16.msra.mxu0 %v2042_v7  ;;  %2034 = vmatpush3.bf16.msra.mxu1 %v2042_v7 }
  0x1c   :  { %1950 = vmatprep.subr.bf16.mxu0 %v2043_v8  ;;  %2027 = vmatprep.subr.bf16.mxu1 %v2043_v8 }
  0x1f   :  { %1951 = vmatpush3.bf16.msra.mxu0 %v2043_v8  ;;  %2035 = vmatpush3.bf16.msra.mxu1 %v2043_v8 }
  0x22   :  { %1953 = vmatmul.mubr.bf16.vlgmr.msra.gmra.mrb[0].mxu0 %v2045_v10  ;;  %1989 = vmatmul.mubr.bf16.vlgmr.msra.gmra.mrb[0].mxu1 %v2063_v12 }
  0x23   :  { %1956 = vmatprep.mubr.bf16.mxu0 %v2046_v11  ;;  %1992 = vmatprep.mubr.bf16.mxu1 %v2064_v13 }
  0x2a   :  { %1957 = vmatmul.mubr.bf16.gmra.mrb[4].mxu0 %v2047_v14  ;;  %1993 = vmatmul.mubr.bf16.gmra.mrb[4].mxu1 %v2065_v16 }
  0x2b   :  { %1960 = vmatprep.mubr.bf16.mxu0 %v2048_v15  ;;  %1996 = vmatprep.mubr.bf16.mxu1 %v2066_v17 }
  0x32   :  { %1961 = vmatmul.mubr.bf16.gmra.mrb[8].mxu0 %v2049_v18  ;;  %1997 = vmatmul.mubr.bf16.gmra.mrb[8].mxu1 %v2067_v19 }
  0x33   :  { %1964 = vmatprep.mubr.bf16.mxu0 %v2050_v20  ;;  %2000 = vmatprep.mubr.bf16.mxu1 %v2068_v21 }
  0x3a   :  { %1965 = vmatmul.mubr.bf16.gmra.mrb[12].mxu0 %v2051_v22  ;;  %2001 = vmatmul.mubr.bf16.gmra.mrb[12].mxu1 %v2069_v23 }
  0x3b   :  { %1968 = vmatprep.mubr.bf16.mxu0 %v2052_v24  ;;  %2004 = vmatprep.mubr.bf16.mxu1 %v2070_v25 }
  0x42   :  { %1969 = vmatmul.mubr.bf16.gmra.mrb[16].mxu0 %v2053_v26  ;;  %2005 = vmatmul.mubr.bf16.gmra.mrb[16].mxu1 %v2071_v27 }
  0x43   :  { %1972 = vmatprep.mubr.bf16.mxu0 %v2054_v28  ;;  %2008 = vmatprep.mubr.bf16.mxu1 %v2072_v29 }
  0x4a   :  { %1973 = vmatmul.mubr.bf16.gmra.mrb[20].mxu0 %v2055_v30  ;;  %2009 = vmatmul.mubr.bf16.gmra.mrb[20].mxu1 %v2073_v31 }
  0x4b   :  { %1976 = vmatprep.mubr.bf16.mxu0 %v2056_v32  ;;  %2012 = vmatprep.mubr.bf16.mxu1 %v2074_v33 }
  0x52   :  { %1977 = vmatmul.mubr.bf16.gmra.mrb[24].mxu0 %v2057_v34  ;;  %2013 = vmatmul.mubr.bf16.gmra.mrb[24].mxu1 %v2075_v35 }
  0x53   :  { %1980 = vmatprep.mubr.bf16.mxu0 %v2058_v36  ;;  %2016 = vmatprep.mubr.bf16.mxu1 %v2076_v37 }
  0x5a   :  { %1981 = vmatmul.mubr.bf16.gmra.mrb[28].mxu0 %v2059_v38  ;;  %2017 = vmatmul.mubr.bf16.gmra.mrb[28].mxu1 %v2077_v39 }
  0x5b   :  { %1984 = vmatprep.mubr.bf16.mxu0 %v2060_v40 }
  0x62   :  { %1985 = vmatmul.mubr.bf16.gmra.mrb[32].mxu0 %v2061_v41 }
  0xf5   :  { %v2231_v42 = vpop.f32.mrb[0].mxu0  ;;  %v2233_v43 = vpop.f32.mrb[0].mxu1 }
  0xf6   :  { %v2235_v44 = vpop.f32.mrb[1].mxu0  ;;  %v2237_v45 = vpop.f32.mrb[1].mxu1 }
  0xf7   :  { %v2239_v46 = vpop.f32.mrb[2].mxu0  ;;  %v2241_v47 = vpop.f32.mrb[2].mxu1 }
  0xf8   :  { %v2243_v48 = vpop.f32.mrb[3].mxu0  ;;  %v2245_v49 = vpop.f32.mrb[3].mxu1 }
  0xf9   :  { %v659_v50 = vadd.f32 %v2243_v48, %v2235_v44 }
  0xfb   :  { %v660_v51 = vadd.f32 %v2231_v42, %v659_v50 }
  0xfd   :  { %v2250_v52 = vpop.f32.mrb[4].mxu0  ;;  %v661_v53 = vadd.f32 %v2239_v46, %v660_v51  ;;  %v2253_v54 = vpop.f32.mrb[4].mxu1 }
  0xfe   :  { %v2255_v55 = vpop.f32.mrb[5].mxu0  ;;  %v2257_v56 = vpop.f32.mrb[5].mxu1 }
  0xff   :  { %v662_v57 = vadd.f32 %v661_v53, %v2255_v55  ;;  %v2260_v58 = vpop.f32.mrb[6].mxu0  ;;  %v2262_v59 = vpop.f32.mrb[6].mxu1 }
 0x100   :  { %v2264_v60 = vpop.f32.mrb[7].mxu0  ;;  %v2266_v61 = vpop.f32.mrb[7].mxu1 }
 0x101   :  { %v663_v62 = vadd.f32 %v662_v57, %v2264_v60 }
 0x103   :  { %v664_v63 = vadd.f32 %v2250_v52, %v663_v62 }
 0x105   :  { %v2270_v0 = vpop.f32.mrb[8].mxu0  ;;  %v665_v1 = vadd.f32 %v2260_v58, %v664_v63  ;;  %v2273_v2 = vpop.f32.mrb[8].mxu1 }
 0x106   :  { %v2275_v3 = vpop.f32.mrb[9].mxu0  ;;  %v2277_v4 = vpop.f32.mrb[9].mxu1 }
 0x107   :  { %v666_v5 = vadd.f32 %v665_v1, %v2275_v3  ;;  %v2280_v6 = vpop.f32.mrb[10].mxu0  ;;  %v2282_v7 = vpop.f32.mrb[10].mxu1 }
 0x108   :  { %v2284_v8 = vpop.f32.mrb[11].mxu0  ;;  %v2286_v9 = vpop.f32.mrb[11].mxu1 }
 0x109   :  { %v667_v10 = vadd.f32 %v666_v5, %v2284_v8 }
 0x10b   :  { %v668_v11 = vadd.f32 %v2270_v0, %v667_v10 }
 0x10d   :  { %v2290_v12 = vpop.f32.mrb[12].mxu0  ;;  %v669_v13 = vadd.f32 %v2280_v6, %v668_v11  ;;  %v2293_v14 = vpop.f32.mrb[12].mxu1 }
 0x10e   :  { %v2295_v15 = vpop.f32.mrb[13].mxu0  ;;  %v2297_v16 = vpop.f32.mrb[13].mxu1 }
 0x10f   :  { %v670_v17 = vadd.f32 %v669_v13, %v2295_v15  ;;  %v2300_v18 = vpop.f32.mrb[14].mxu0  ;;  %v2302_v19 = vpop.f32.mrb[14].mxu1 }
 0x110   :  { %v2304_v20 = vpop.f32.mrb[15].mxu0  ;;  %v2306_v21 = vpop.f32.mrb[15].mxu1 }
 0x111   :  { %v671_v22 = vadd.f32 %v670_v17, %v2304_v20 }
 0x113   :  { %v672_v23 = vadd.f32 %v2290_v12, %v671_v22 }
 0x115   :  { %v2310_v24 = vpop.f32.mrb[16].mxu0  ;;  %v673_v25 = vadd.f32 %v2300_v18, %v672_v23  ;;  %v2313_v26 = vpop.f32.mrb[16].mxu1 }
 0x116   :  { %3739 = vst [vmem:[#allocation2_spill] sm:$0xff] %v2310_v24  ;;  %v2315_v27 = vpop.f32.mrb[17].mxu0  ;;  %v2317_v28 = vpop.f32.mrb[17].mxu1 }
 0x117   :  { %v674_v29 = vadd.f32 %v673_v25, %v2315_v27  ;;  %v2320_v30 = vpop.f32.mrb[18].mxu0  ;;  %v2322_v31 = vpop.f32.mrb[18].mxu1 }
 0x118   :  { %3740 = vst [vmem:[#allocation3_spill] sm:$0xff] %v2320_v30  ;;  %v2324_v32 = vpop.f32.mrb[19].mxu0  ;;  %v2326_v33 = vpop.f32.mrb[19].mxu1 }
 0x119   :  { %v675_v34 = vadd.f32 %v674_v29, %v2324_v32 }
 0x11b   :  { %v676_v35 = vadd.f32 %v2310_v24, %v675_v34 }
 0x11d   :  { %v2330_v36 = vpop.f32.mrb[20].mxu0  ;;  %v677_v37 = vadd.f32 %v2320_v30, %v676_v35  ;;  %v2333_v38 = vpop.f32.mrb[20].mxu1 }
 0x11e   :  { %3741 = vst [vmem:[#allocation4_spill] sm:$0xff] %v2330_v36  ;;  %3742 = vst [vmem:[#allocation5_spill] sm:$0xff] %v2333_v38  ;;  %v2335_v39 = vpop.f32.mrb[21].mxu0  ;;  %v2337_v40 = vpop.f32.mrb[21].mxu1 }
 0x11f   :  { %3743 = vst [vmem:[#allocation6_spill] sm:$0xff] %v2335_v39  ;;  %v678_v41 = vadd.f32 %v677_v37, %v2335_v39  ;;  %v2340_v50 = vpop.f32.mrb[22].mxu0  ;;  %v2342_v51 = vpop.f32.mrb[22].mxu1 }
 0x120   :  { %3744 = vst [vmem:[#allocation7_spill] sm:$0xff] %v2340_v50  ;;  %3745 = vst [vmem:[#allocation8_spill] sm:$0xff] %v2342_v51  ;;  %v2344_v53 = vpop.f32.mrb[23].mxu0  ;;  %v2346_v57 = vpop.f32.mrb[23].mxu1 }
 0x121   :  { %3746 = vst [vmem:[#allocation9_spill] sm:$0xff] %v2344_v53  ;;  %3747 = vst [vmem:[#allocation10_spill] sm:$0xff] %v2346_v57  ;;  %v679_v62 = vadd.f32 %v678_v41, %v2344_v53 }
 0x123   :  { %v680_v63 = vadd.f32 %v2330_v36, %v679_v62 }
 0x125   :  { %v2350_v1 = vpop.f32.mrb[24].mxu0  ;;  %v681_v5 = vadd.f32 %v2340_v50, %v680_v63  ;;  %v2353_v10 = vpop.f32.mrb[24].mxu1 }
 0x126   :  { %3748 = vst [vmem:[#allocation11_spill] sm:$0xff] %v2350_v1  ;;  %v2355_v11 = vpop.f32.mrb[25].mxu0  ;;  %v2357_v13 = vpop.f32.mrb[25].mxu1 }
 0x127   :  { %3749 = vst [vmem:[#allocation12_spill] sm:$0xff] %v2355_v11  ;;  %3750 = vst [vmem:[#allocation13_spill] sm:$0xff] %v2357_v13  ;;  %v682_v17 = vadd.f32 %v681_v5, %v2355_v11  ;;  %v2360_v22 = vpop.f32.mrb[26].mxu0  ;;  %v2362_v23 = vpop.f32.mrb[26].mxu1 }
 0x128   :  { %3751 = vst [vmem:[#allocation14_spill] sm:$0xff] %v2360_v22  ;;  %v2364_v25 = vpop.f32.mrb[27].mxu0  ;;  %v2366_v29 = vpop.f32.mrb[27].mxu1 }
 0x129   :  { %3752 = vst [vmem:[#allocation15_spill] sm:$0xff] %v2364_v25  ;;  %v683_v34 = vadd.f32 %v682_v17, %v2364_v25 }
 0x12b   :  { %v684_v35 = vadd.f32 %v2350_v1, %v683_v34 }
 0x12d   :  { %v2370_v37 = vpop.f32.mrb[28].mxu0  ;;  %v685_v41 = vadd.f32 %v2360_v22, %v684_v35  ;;  %v2373_v62 = vpop.f32.mrb[28].mxu1 }
 0x12e   :  { %3753 = vst [vmem:[#allocation16_spill] sm:$0xff] %v2370_v37  ;;  %v2375_v63 = vpop.f32.mrb[29].mxu0  ;;  %v2377_v5 = vpop.f32.mrb[29].mxu1 }
 0x12f   :  { %3754 = vst [vmem:[#allocation17_spill] sm:$0xff] %v2375_v63  ;;  %v686_v11 = vadd.f32 %v685_v41, %v2375_v63  ;;  %v2380_v50 = vpop.f32.mrb[30].mxu0  ;;  %v2382_v36 = vpop.f32.mrb[30].mxu1 }
 0x130   :  { %3755 = vst [vmem:[#allocation18_spill] sm:$0xff] %v2380_v50  ;;  %v2384_v53 = vpop.f32.mrb[31].mxu0  ;;  %v2386_v17 = vpop.f32.mrb[31].mxu1 }
 0x131   :  { %3756 = vst [vmem:[#allocation19_spill] sm:$0xff] %v2384_v53  ;;  %v687_v34 = vadd.f32 %v686_v11, %v2384_v53 }
 0x133   :  { %v688_v35 = vadd.f32 %v2370_v37, %v687_v34 }
 0x135   :  { %v2390_v22 = vpop.f32.mrb[32].mxu0  ;;  %v689_v1 = vadd.f32 %v2380_v50, %v688_v35 }
 0x136   :  { %v2393_v25 = vpop.f32.mrb[33].mxu0 }
 0x137   :  { %3757 = vst [vmem:[#allocation20_spill] sm:$0xff] %v2393_v25  ;;  %v690_v41 = vadd.f32 %v689_v1, %v2393_v25  ;;  %v2396_v63 = vpop.f32.mrb[34].mxu0 }
 0x138   :  { %v2398_v39 = vpop.f32.mrb[35].mxu0 }
 0x139   :  { %v691_v30 = vadd.f32 %v690_v41, %v2398_v39 }
 0x13b   :  { %v692_v24 = vadd.f32 %v2390_v22, %v691_v30 }
 0x13d   :  { %v693_v11 = vadd.f32 %v2396_v63, %v692_v24 }
 0x13f   :  { %v694_v34 = vadd.f32 %v693_v11, %v2237_v45 }
 0x141   :  { %v695_v37 = vadd.f32 %v694_v34, %v2245_v49 }
 0x143   :  { %v696_v35 = vadd.f32 %v2233_v43, %v695_v37 }
 0x145   :  { %v697_v50 = vadd.f32 %v2241_v47, %v696_v35 }
 0x147   :  { %v698_v1 = vadd.f32 %v697_v50, %v2257_v56 }
 0x149   :  { %v699_v25 = vadd.f32 %v698_v1, %v2266_v61 }
 0x14b   :  { %v700_v53 = vadd.f32 %v2253_v54, %v699_v25 }
 0x14d   :  { %v701_v41 = vadd.f32 %v2262_v59, %v700_v53 }
 0x14f   :  { %v702_v30 = vadd.f32 %v701_v41, %v2277_v4 }
 0x151   :  { %v703_v24 = vadd.f32 %v702_v30, %v2286_v9 }
 0x153   :  { %v704_v11 = vadd.f32 %v2273_v2, %v703_v24 }
 0x155   :  { %v705_v34 = vadd.f32 %v2282_v7, %v704_v11 }
 0x157   :  { %v706_v37 = vadd.f32 %v705_v34, %v2297_v16 }
 0x159   :  { %v707_v35 = vadd.f32 %v706_v37, %v2306_v21 }
 0x15b   :  { %v708_v50 = vadd.f32 %v2293_v14, %v707_v35 }
 0x15d   :  { %v709_v1 = vadd.f32 %v2302_v19, %v708_v50 }
 0x15f   :  { %v710_v25 = vadd.f32 %v709_v1, %v2317_v28 }
 0x161   :  { %v711_v53 = vadd.f32 %v710_v25, %v2326_v33 }
 0x163   :  { %v712_v41 = vadd.f32 %v2313_v26, %v711_v53 }
 0x165   :  { %v713_v30 = vadd.f32 %v2322_v31, %v712_v41 }
 0x167   :  { %v714_v24 = vadd.f32 %v713_v30, %v2337_v40 }
 0x169   :  { %v715_v11 = vadd.f32 %v714_v24, %v2346_v57 }
 0x16b   :  { %v716_v34 = vadd.f32 %v2333_v38, %v715_v11 }
 0x16d   :  { %v717_v37 = vadd.f32 %v2342_v51, %v716_v34 }
 0x16f   :  { %v718_v35 = vadd.f32 %v717_v37, %v2357_v13 }
 0x171   :  { %v719_v50 = vadd.f32 %v718_v35, %v2366_v29 }
 0x173   :  { %v720_v1 = vadd.f32 %v2353_v10, %v719_v50 }
 0x175   :  { %v721_v25 = vadd.f32 %v2362_v23, %v720_v1 }
 0x177   :  { %v722_v53 = vadd.f32 %v721_v25, %v2377_v5  ;;  %v3766_v25 = vld [vmem:[#allocation3_spill] sm:$0xff] }
 0x179   :  { %v723_v41 = vadd.f32 %v722_v53, %v2386_v17  ;;  %v3768_v53 = vld [vmem:[#allocation6_spill] sm:$0xff] }
 0x17b   :  { %v724_v30 = vadd.f32 %v2373_v62, %v723_v41  ;;  %v3770_v41 = vld [vmem:[#allocation9_spill] sm:$0xff] }
 0x17d   :  { %v725_v24 = vadd.f32 %v2382_v36, %v724_v30  ;;  %v3772_v30 = vld [vmem:[#allocation4_spill] sm:$0xff] }
 0x17f   :  { %v726_v57 = vrot.slane %v725_v24, 4 }
 0x181   :  { %v727_v11 = vadd.f32 %v726_v57, %v725_v24  ;;  %v3774_v24 = vld [vmem:[#allocation7_spill] sm:$0xff] }
 0x183   :  { %v728_v38 = vrot.slane %v727_v11, 2 }
 0x185   :  { %v729_v34 = vadd.f32 %v728_v38, %v727_v11 }
 0x187   :  { %v730_v51 = vrot.slane %v729_v34, 1 }
 0x189   :  { %v731_v37 = vadd.f32 %v730_v51, %v729_v34  ;;  %v3764_v51 = vld [vmem:[#allocation2_spill] sm:$0xff]  ;;  %v3776_v34 = vld [vmem:[#allocation12_spill] sm:$0xff] }
 0x18b   :  { %v2435_v13 = vmul.f32 0.0018382353, %v731_v37 }
 0x18d   :  { %3758 = vst [vmem:[#allocation21_spill] sm:$0xff] %v2435_v13  ;;  %v2439_v35 = vsub.f32 %v2235_v44, %v2435_v13  ;;  %v2443_v50 = vsub.f32 %v2243_v48, %v2435_v13  ;;  %v2447_v1 = vsub.f32 %v2231_v42, %v2435_v13  ;;  %v2451_v57 = vsub.f32 %v2239_v46, %v2435_v13 }
 0x18e   :  { %v2455_v38 = vsub.f32 %v2255_v55, %v2435_v13  ;;  %v2459_v44 = vsub.f32 %v2264_v60, %v2435_v13  ;;  %v2463_v48 = vsub.f32 %v2250_v52, %v2435_v13  ;;  %v2467_v42 = vsub.f32 %v2260_v58, %v2435_v13 }
 0x18f   :  { %3759 = vst [vmem:[#allocation22_spill] sm:$0xff] %v2439_v35  ;;  %3760 = vst [vmem:[#allocation23_spill] sm:$0xff] %v2443_v50  ;;  %v2471_v46 = vsub.f32 %v2275_v3, %v2435_v13  ;;  %v2475_v55 = vsub.f32 %v2284_v8, %v2435_v13  ;;  %v2479_v60 = vsub.f32 %v2270_v0, %v2435_v13 }
 0x190   :  { %3761 = vst [vmem:[#allocation24_spill] sm:$0xff] %v2447_v1  ;;  %v2483_v52 = vsub.f32 %v2280_v6, %v2435_v13  ;;  %v2487_v58 = vsub.f32 %v2295_v15, %v2435_v13  ;;  %v2491_v3 = vsub.f32 %v2304_v20, %v2435_v13  ;;  %v2495_v8 = vsub.f32 %v2290_v12, %v2435_v13 }
 0x191   :  { %v2499_v0 = vsub.f32 %v2300_v18, %v2435_v13  ;;  %v2503_v6 = vsub.f32 %v2315_v27, %v2435_v13  ;;  %v2507_v15 = vsub.f32 %v2324_v32, %v2435_v13  ;;  %v2511_v20 = vsub.f32 %v3764_v51, %v2435_v13  ;;  %v3778_v51 = vld [vmem:[#allocation15_spill] sm:$0xff] }
 0x192   :  { %v2515_v12 = vsub.f32 %v3766_v25, %v2435_v13  ;;  %v2519_v18 = vsub.f32 %v3768_v53, %v2435_v13  ;;  %v2523_v27 = vsub.f32 %v3770_v41, %v2435_v13  ;;  %v2527_v32 = vsub.f32 %v3772_v30, %v2435_v13  ;;  %v3780_v53 = vld [vmem:[#allocation11_spill] sm:$0xff] }
 0x193   :  { %3762 = vst [vmem:[#allocation25_spill] sm:$0xff] %v2503_v6  ;;  %3763 = vst [vmem:[#allocation26_spill] sm:$0xff] %v2507_v15  ;;  %v2531_v11 = vsub.f32 %v3774_v24, %v2435_v13  ;;  %v2535_v37 = vsub.f32 %v3776_v34, %v2435_v13  ;;  %v2539_v25 = vsub.f32 %v3778_v51, %v2435_v13 }
 0x194   :  { %3765 = vst [vmem:[#allocation2_spill] sm:$0xff] %v2511_v20  ;;  %3767 = vst [vmem:[#allocation3_spill] sm:$0xff] %v2515_v12  ;;  %v2543_v41 = vsub.f32 %v3780_v53, %v2435_v13 }
 0x195   :  { %3769 = vst [vmem:[#allocation6_spill] sm:$0xff] %v2519_v18  ;;  %3771 = vst [vmem:[#allocation9_spill] sm:$0xff] %v2523_v27  ;;  %v3782_v27 = vld [vmem:[#allocation14_spill] sm:$0xff] }
 0x196   :  { %3773 = vst [vmem:[#allocation4_spill] sm:$0xff] %v2527_v32  ;;  %3775 = vst [vmem:[#allocation7_spill] sm:$0xff] %v2531_v11  ;;  %v2547_v30 = vsub.f32 %v3782_v27, %v2435_v13  ;;  %v3783_v32 = vld [vmem:[#allocation17_spill] sm:$0xff]  ;;  %v3784_v11 = vld [vmem:[#allocation19_spill] sm:$0xff] }
 0x197   :  { %3777 = vst [vmem:[#allocation12_spill] sm:$0xff] %v2535_v37  ;;  %3779 = vst [vmem:[#allocation15_spill] sm:$0xff] %v2539_v25  ;;  %v2551_v24 = vsub.f32 %v3783_v32, %v2435_v13  ;;  %v2555_v34 = vsub.f32 %v3784_v11, %v2435_v13  ;;  %v3785_v37 = vld [vmem:[#allocation16_spill] sm:$0xff]  ;;  %v3786_v25 = vld [vmem:[#allocation18_spill] sm:$0xff]  ;;  %v2571_v32 = vsub.f32 %v2398_v39, %v2435_v13 }
 0x198   :  { %3781 = vst [vmem:[#allocation11_spill] sm:$0xff] %v2543_v41  ;;  %v2559_v51 = vsub.f32 %v3785_v37, %v2435_v13  ;;  %v2563_v53 = vsub.f32 %v3786_v25, %v2435_v13  ;;  %v3787_v41 = vld [vmem:[#allocation20_spill] sm:$0xff]  ;;  %v2575_v11 = vsub.f32 %v2390_v22, %v2435_v13  ;;  %v2579_v37 = vsub.f32 %v2396_v63, %v2435_v13 }
 0x199   :  { %v2567_v27 = vsub.f32 %v3787_v41, %v2435_v13  ;;  %v2583_v25 = vsub.f32 %v2237_v45, %v2435_v13  ;;  %v2587_v41 = vsub.f32 %v2245_v49, %v2435_v13  ;;  %v2591_v39 = vsub.f32 %v2233_v43, %v2435_v13 }
 0x19a   :  { %v2595_v22 = vsub.f32 %v2241_v47, %v2435_v13  ;;  %v2599_v63 = vsub.f32 %v2257_v56, %v2435_v13  ;;  %v2603_v45 = vsub.f32 %v2266_v61, %v2435_v13  ;;  %v2607_v49 = vsub.f32 %v2253_v54, %v2435_v13 }
 0x19b   :  { %v2611_v43 = vsub.f32 %v2262_v59, %v2435_v13  ;;  %v2615_v47 = vsub.f32 %v2277_v4, %v2435_v13  ;;  %v2619_v56 = vsub.f32 %v2286_v9, %v2435_v13  ;;  %v2623_v61 = vsub.f32 %v2273_v2, %v2435_v13 }
 0x19c   :  { %v2627_v54 = vsub.f32 %v2282_v7, %v2435_v13  ;;  %v2631_v59 = vsub.f32 %v2297_v16, %v2435_v13  ;;  %v2635_v4 = vsub.f32 %v2306_v21, %v2435_v13  ;;  %v2639_v9 = vsub.f32 %v2293_v14, %v2435_v13 }
 0x19d   :  { %3788 = vst [vmem:[#allocation14_spill] sm:$0xff] %v2623_v61  ;;  %v2643_v2 = vsub.f32 %v2302_v19, %v2435_v13  ;;  %v2647_v7 = vsub.f32 %v2317_v28, %v2435_v13  ;;  %v2651_v16 = vsub.f32 %v2326_v33, %v2435_v13  ;;  %v2655_v21 = vsub.f32 %v2313_v26, %v2435_v13 }
 0x19e   :  { %3789 = vst [vmem:[#allocation17_spill] sm:$0xff] %v2627_v54  ;;  %3790 = vst [vmem:[#allocation19_spill] sm:$0xff] %v2631_v59  ;;  %v2659_v14 = vsub.f32 %v2322_v31, %v2435_v13  ;;  %v2663_v19 = vsub.f32 %v2337_v40, %v2435_v13  ;;  %v2683_v40 = vsub.f32 %v2366_v29, %v2435_v13 }
 0x19f   :  { %3791 = vst [vmem:[#allocation16_spill] sm:$0xff] %v2635_v4  ;;  %3792 = vst [vmem:[#allocation18_spill] sm:$0xff] %v2643_v2  ;;  %v3797_v2 = vld [vmem:[#allocation10_spill] sm:$0xff]  ;;  %v2703_v29 = vsub.f32 %v2373_v62, %v2435_v13  ;;  %v805_v62 = vmul.f32 %v2455_v38, %v2455_v38 }
 0x1a0   :  { %3793 = vst [vmem:[#allocation20_spill] sm:$0xff] %v2647_v7  ;;  %3794 = vst [vmem:[#allocation27_spill] sm:$0xff] %v2651_v16  ;;  %v2667_v28 = vsub.f32 %v3797_v2, %v2435_v13  ;;  %v3799_v7 = vld [vmem:[#allocation5_spill] sm:$0xff]  ;;  %v3801_v16 = vld [vmem:[#allocation8_spill] sm:$0xff]  ;;  %v2687_v2 = vsub.f32 %v2353_v10, %v2435_v13  ;;  %v2707_v10 = vsub.f32 %v2382_v36, %v2435_v13 }
 0x1a1   :  { %3795 = vst [vmem:[#allocation28_spill] sm:$0xff] %v2655_v21  ;;  %3796 = vst [vmem:[#allocation29_spill] sm:$0xff] %v2663_v19  ;;  %v2671_v33 = vsub.f32 %v3799_v7, %v2435_v13  ;;  %v2675_v26 = vsub.f32 %v3801_v16, %v2435_v13  ;;  %v3803_v21 = vld [vmem:[#allocation13_spill] sm:$0xff]  ;;  %v2691_v7 = vsub.f32 %v2362_v23, %v2435_v13 }
 0x1a2   :  { %3798 = vst [vmem:[#allocation10_spill] sm:$0xff] %v2667_v28  ;;  %v2679_v31 = vsub.f32 %v3803_v21, %v2435_v13  ;;  %3805 = vst [vmem:[#allocation30_spill] sm:$0xff] %v2683_v40  ;;  %v2695_v16 = vsub.f32 %v2377_v5, %v2435_v13  ;;  %v2699_v21 = vsub.f32 %v2386_v17, %v2435_v13 }
 0x1a3   :  { %3800 = vst [vmem:[#allocation5_spill] sm:$0xff] %v2671_v33  ;;  %3802 = vst [vmem:[#allocation8_spill] sm:$0xff] %v2675_v26  ;;  %v801_v23 = vmul.f32 %v2439_v35, %v2439_v35  ;;  %v803_v5 = vmul.f32 %v2447_v1, %v2447_v1  ;;  %v804_v17 = vmul.f32 %v2451_v57, %v2451_v57 }
 0x1a4   :  { %3804 = vst [vmem:[#allocation13_spill] sm:$0xff] %v2679_v31  ;;  %3806 = vst [vmem:[#allocation31_spill] sm:$0xff] %v2687_v2  ;;  %v806_v36 = vmul.f32 %v2459_v44, %v2459_v44  ;;  %v807_v35 = vmul.f32 %v2463_v48, %v2463_v48  ;;  %v808_v1 = vmul.f32 %v2467_v42, %v2467_v42 }
 0x1a5   :  { %3807 = vst [vmem:[#allocation32_spill] sm:$0xff] %v2691_v7  ;;  %3808 = vst [vmem:[#allocation33_spill] sm:$0xff] %v2695_v16  ;;  %v802_v7 = vmul.f32 %v2443_v50, %v2443_v50 }
 0x1a6   :  { %3809 = vst [vmem:[#allocation34_spill] sm:$0xff] %v2699_v21  ;;  %3810 = vst [vmem:[#allocation35_spill] sm:$0xff] %v2703_v29 }
 0x1a7   :  { %v869_v16 = vadd.f32 %v802_v7, %v801_v23  ;;  %v809_v23 = vmul.f32 %v2471_v46, %v2471_v46 }
 0x1a9   :  { %v870_v21 = vadd.f32 %v869_v16, %v803_v5  ;;  %v810_v5 = vmul.f32 %v2475_v55, %v2475_v55 }
 0x1ab   :  { %v871_v29 = vadd.f32 %v870_v21, %v804_v17  ;;  %v811_v17 = vmul.f32 %v2479_v60, %v2479_v60 }
 0x1ad   :  { %v872_v13 = vadd.f32 %v871_v29, %v805_v62  ;;  %v812_v62 = vmul.f32 %v2483_v52, %v2483_v52 }
 0x1af   :  { %v873_v50 = vadd.f32 %v872_v13, %v806_v36  ;;  %v813_v36 = vmul.f32 %v2487_v58, %v2487_v58 }
 0x1b1   :  { %v874_v7 = vadd.f32 %v873_v50, %v807_v35  ;;  %v814_v50 = vmul.f32 %v2491_v3, %v2491_v3 }
 0x1b3   :  { %v875_v16 = vadd.f32 %v874_v7, %v808_v1  ;;  %v815_v7 = vmul.f32 %v2495_v8, %v2495_v8 }
 0x1b5   :  { %v876_v21 = vadd.f32 %v875_v16, %v809_v23  ;;  %v816_v16 = vmul.f32 %v2499_v0, %v2499_v0 }
 0x1b7   :  { %v877_v29 = vadd.f32 %v876_v21, %v810_v5  ;;  %v817_v21 = vmul.f32 %v2503_v6, %v2503_v6 }
 0x1b9   :  { %v878_v13 = vadd.f32 %v877_v29, %v811_v17  ;;  %v818_v29 = vmul.f32 %v2507_v15, %v2507_v15 }
 0x1bb   :  { %v879_v35 = vadd.f32 %v878_v13, %v812_v62  ;;  %v819_v13 = vmul.f32 %v2511_v20, %v2511_v20 }
 0x1bd   :  { %v880_v1 = vadd.f32 %v879_v35, %v813_v36  ;;  %v820_v35 = vmul.f32 %v2515_v12, %v2515_v12 }
 0x1bf   :  { %v881_v23 = vadd.f32 %v880_v1, %v814_v50  ;;  %v821_v1 = vmul.f32 %v2519_v18, %v2519_v18 }
 0x1c1   :  { %v882_v5 = vadd.f32 %v881_v23, %v815_v7  ;;  %v3811_v23 = vld [vmem:[#allocation9_spill] sm:$0xff] }
 0x1c2   :  { %v822_v6 = vmul.f32 %v3811_v23, %v3811_v23 }
 0x1c3   :  { %v883_v17 = vadd.f32 %v882_v5, %v816_v16  ;;  %v3812_v5 = vld [vmem:[#allocation4_spill] sm:$0xff] }
 0x1c4   :  { %v823_v15 = vmul.f32 %v3812_v5, %v3812_v5 }
 0x1c5   :  { %v884_v62 = vadd.f32 %v883_v17, %v817_v21  ;;  %v3813_v17 = vld [vmem:[#allocation7_spill] sm:$0xff] }
 0x1c6   :  { %v824_v20 = vmul.f32 %v3813_v17, %v3813_v17 }
 0x1c7   :  { %v885_v36 = vadd.f32 %v884_v62, %v818_v29  ;;  %v3814_v62 = vld [vmem:[#allocation12_spill] sm:$0xff] }
 0x1c8   :  { %v825_v12 = vmul.f32 %v3814_v62, %v3814_v62 }
 0x1c9   :  { %v886_v50 = vadd.f32 %v885_v36, %v819_v13  ;;  %v3815_v36 = vld [vmem:[#allocation15_spill] sm:$0xff] }
 0x1ca   :  { %v826_v18 = vmul.f32 %v3815_v36, %v3815_v36 }
 0x1cb   :  { %v887_v7 = vadd.f32 %v886_v50, %v820_v35  ;;  %v3816_v50 = vld [vmem:[#allocation11_spill] sm:$0xff] }
 0x1cc   :  { %v827_v23 = vmul.f32 %v3816_v50, %v3816_v50 }
 0x1cd   :  { %v888_v16 = vadd.f32 %v887_v7, %v821_v1  ;;  %v828_v7 = vmul.f32 %v2547_v30, %v2547_v30 }
 0x1cf   :  { %v889_v21 = vadd.f32 %v888_v16, %v822_v6  ;;  %v829_v16 = vmul.f32 %v2551_v24, %v2551_v24 }
 0x1d1   :  { %v890_v29 = vadd.f32 %v889_v21, %v823_v15  ;;  %v830_v21 = vmul.f32 %v2555_v34, %v2555_v34 }
 0x1d3   :  { %v891_v13 = vadd.f32 %v890_v29, %v824_v20  ;;  %v831_v29 = vmul.f32 %v2559_v51, %v2559_v51 }
 0x1d5   :  { %v892_v35 = vadd.f32 %v891_v13, %v825_v12  ;;  %v832_v13 = vmul.f32 %v2563_v53, %v2563_v53 }
 0x1d7   :  { %v893_v1 = vadd.f32 %v892_v35, %v826_v18  ;;  %v833_v35 = vmul.f32 %v2567_v27, %v2567_v27 }
 0x1d9   :  { %v894_v6 = vadd.f32 %v893_v1, %v827_v23  ;;  %v834_v1 = vmul.f32 %v2571_v32, %v2571_v32 }
 0x1db   :  { %v895_v15 = vadd.f32 %v894_v6, %v828_v7  ;;  %v835_v6 = vmul.f32 %v2575_v11, %v2575_v11 }
 0x1dd   :  { %v896_v20 = vadd.f32 %v895_v15, %v829_v16  ;;  %v836_v15 = vmul.f32 %v2579_v37, %v2579_v37 }
 0x1df   :  { %v897_v12 = vadd.f32 %v896_v20, %v830_v21  ;;  %v837_v20 = vmul.f32 %v2583_v25, %v2583_v25 }
 0x1e1   :  { %v898_v18 = vadd.f32 %v897_v12, %v831_v29  ;;  %v838_v12 = vmul.f32 %v2587_v41, %v2587_v41 }
 0x1e3   :  { %v899_v23 = vadd.f32 %v898_v18, %v832_v13  ;;  %v839_v18 = vmul.f32 %v2591_v39, %v2591_v39 }
 0x1e5   :  { %v900_v7 = vadd.f32 %v899_v23, %v833_v35  ;;  %v840_v23 = vmul.f32 %v2595_v22, %v2595_v22 }
 0x1e7   :  { %v901_v16 = vadd.f32 %v900_v7, %v834_v1  ;;  %v841_v7 = vmul.f32 %v2599_v63, %v2599_v63 }
 0x1e9   :  { %v902_v21 = vadd.f32 %v901_v16, %v835_v6  ;;  %v842_v16 = vmul.f32 %v2603_v45, %v2603_v45 }
 0x1eb   :  { %v903_v29 = vadd.f32 %v902_v21, %v836_v15  ;;  %v843_v21 = vmul.f32 %v2607_v49, %v2607_v49 }
 0x1ed   :  { %v904_v13 = vadd.f32 %v903_v29, %v837_v20  ;;  %v844_v29 = vmul.f32 %v2611_v43, %v2611_v43 }
 0x1ef   :  { %v905_v35 = vadd.f32 %v904_v13, %v838_v12  ;;  %v845_v13 = vmul.f32 %v2615_v47, %v2615_v47 }
 0x1f1   :  { %v906_v1 = vadd.f32 %v905_v35, %v839_v18  ;;  %v846_v35 = vmul.f32 %v2619_v56, %v2619_v56 }
 0x1f3   :  { %v907_v6 = vadd.f32 %v906_v1, %v840_v23  ;;  %v847_v1 = vmul.f32 %v2623_v61, %v2623_v61 }
 0x1f5   :  { %v908_v15 = vadd.f32 %v907_v6, %v841_v7  ;;  %v848_v6 = vmul.f32 %v2627_v54, %v2627_v54 }
 0x1f7   :  { %v909_v20 = vadd.f32 %v908_v15, %v842_v16  ;;  %v849_v15 = vmul.f32 %v2631_v59, %v2631_v59 }
 0x1f9   :  { %v910_v12 = vadd.f32 %v909_v20, %v843_v21  ;;  %v850_v20 = vmul.f32 %v2635_v4, %v2635_v4 }
 0x1fb   :  { %v911_v18 = vadd.f32 %v910_v12, %v844_v29  ;;  %v851_v12 = vmul.f32 %v2639_v9, %v2639_v9 }
 0x1fd   :  { %v912_v23 = vadd.f32 %v911_v18, %v845_v13  ;;  %v3817_v18 = vld [vmem:[#allocation18_spill] sm:$0xff] }
 0x1fe   :  { %v852_v61 = vmul.f32 %v3817_v18, %v3817_v18 }
 0x1ff   :  { %v913_v7 = vadd.f32 %v912_v23, %v846_v35  ;;  %v3818_v23 = vld [vmem:[#allocation20_spill] sm:$0xff] }
 0x200   :  { %v853_v54 = vmul.f32 %v3818_v23, %v3818_v23 }
 0x201   :  { %v914_v16 = vadd.f32 %v913_v7, %v847_v1  ;;  %v3819_v7 = vld [vmem:[#allocation27_spill] sm:$0xff] }
 0x202   :  { %v854_v59 = vmul.f32 %v3819_v7, %v3819_v7 }
 0x203   :  { %v915_v21 = vadd.f32 %v914_v16, %v848_v6  ;;  %v3820_v16 = vld [vmem:[#allocation28_spill] sm:$0xff] }
 0x204   :  { %v855_v4 = vmul.f32 %v3820_v16, %v3820_v16 }
 0x205   :  { %v916_v29 = vadd.f32 %v915_v21, %v849_v15  ;;  %v856_v21 = vmul.f32 %v2659_v14, %v2659_v14 }
 0x207   :  { %v917_v13 = vadd.f32 %v916_v29, %v850_v20  ;;  %v857_v29 = vmul.f32 %v2663_v19, %v2663_v19 }
 0x209   :  { %v918_v35 = vadd.f32 %v917_v13, %v851_v12  ;;  %v858_v13 = vmul.f32 %v2667_v28, %v2667_v28  ;;  %v3825_v28 = vld [vmem:[#allocation21_spill] sm:$0xff] }
 0x20b   :  { %v919_v1 = vadd.f32 %v918_v35, %v852_v61  ;;  %v859_v35 = vmul.f32 %v2671_v33, %v2671_v33 }
 0x20d   :  { %v920_v6 = vadd.f32 %v919_v1, %v853_v54  ;;  %v860_v1 = vmul.f32 %v2675_v26, %v2675_v26 }
 0x20f   :  { %v921_v15 = vadd.f32 %v920_v6, %v854_v59  ;;  %v861_v6 = vmul.f32 %v2679_v31, %v2679_v31 }
 0x211   :  { %v922_v20 = vadd.f32 %v921_v15, %v855_v4  ;;  %v862_v15 = vmul.f32 %v2683_v40, %v2683_v40 }
 0x213   :  { %v923_v12 = vadd.f32 %v922_v20, %v856_v21  ;;  %v863_v20 = vmul.f32 %v2687_v2, %v2687_v2 }
 0x215   :  { %v924_v61 = vadd.f32 %v923_v12, %v857_v29  ;;  %v3821_v12 = vld [vmem:[#allocation32_spill] sm:$0xff] }
 0x216   :  { %v864_v33 = vmul.f32 %v3821_v12, %v3821_v12 }
 0x217   :  { %v925_v54 = vadd.f32 %v924_v61, %v858_v13  ;;  %v3822_v61 = vld [vmem:[#allocation33_spill] sm:$0xff] }
 0x218   :  { %v865_v26 = vmul.f32 %v3822_v61, %v3822_v61 }
 0x219   :  { %v926_v59 = vadd.f32 %v925_v54, %v859_v35  ;;  %v3823_v54 = vld [vmem:[#allocation34_spill] sm:$0xff] }
 0x21a   :  { %v866_v31 = vmul.f32 %v3823_v54, %v3823_v54 }
 0x21b   :  { %v927_v4 = vadd.f32 %v926_v59, %v860_v1  ;;  %v3824_v59 = vld [vmem:[#allocation35_spill] sm:$0xff] }
 0x21c   :  { %v867_v40 = vmul.f32 %v3824_v59, %v3824_v59 }
 0x21d   :  { %v928_v21 = vadd.f32 %v927_v4, %v861_v6  ;;  %v868_v4 = vmul.f32 %v2707_v10, %v2707_v10 }
 0x21f   :  { %v929_v29 = vadd.f32 %v928_v21, %v862_v15 }
 0x221   :  { %v930_v13 = vadd.f32 %v929_v29, %v863_v20 }
 0x223   :  { %v931_v35 = vadd.f32 %v930_v13, %v864_v33  ;;  %v942_v33 = vmul.f32 %v3825_v28, %v3825_v28  ;;  %v3826_v28 = vld [vmem:[#allocation22_spill] sm:$0xff] }
 0x225   :  { %v932_v1 = vadd.f32 %v931_v35, %v865_v26  ;;  %v943_v54 = vmul.f32 0.0, %v942_v33 }
 0x227   :  { %v933_v6 = vadd.f32 %v932_v1, %v866_v31  ;;  %v952_v31 = vlaneseq }
 0x229   :  { %v934_v15 = vadd.f32 %v933_v6, %v867_v40  ;;  %v953_v1 = vshrl.u32 %v952_v31, 7  ;;  %v947_v40 = vld [vmem:[%s3665_s2] sm:$0x1] }
 0x22a   :  { %v3831_v31 = vld [vmem:[#allocation2_spill] sm:$0xff] }
 0x22b   :  { %v935_v21 = vadd.f32 %v934_v15, %v868_v4 }
 0x22d   :  { %v936_v2 = vrot.slane %v935_v21, 4 }
 0x22f   :  { %v937_v12 = vadd.f32 %v936_v2, %v935_v21  ;;  %v954_v2 = vsub.s32 0, %v953_v1  ;;  %v3832_v1 = vld [vmem:[#allocation3_spill] sm:$0xff] }
 0x231   :  { %v938_v20 = vrot.slane %v937_v12, 2 }
 0x233   :  { %v939_v29 = vadd.f32 %v938_v20, %v937_v12 }
 0x235   :  { %v940_v13 = vrot.slane %v939_v29, 1 }
 0x237   :  { %v941_v61 = vadd.f32 %v940_v13, %v939_v29 }
 0x239   :  { %v944_v26 = vsub.f32 %v941_v61, %v943_v54  ;;  %v3827_v61 = vld [vmem:[#allocation23_spill] sm:$0xff] }
 0x23b   :  { %v945_v35 = vmul.f32 0.0018382353, %v944_v26  ;;  %v3829_v26 = vld [vmem:[#allocation25_spill] sm:$0xff] }
 0x23d   :  { %v946_v19 = vmax.f32 %v945_v35, 0.0  ;;  %v3830_v35 = vld [vmem:[#allocation26_spill] sm:$0xff] }
 0x23f   :  { %v948_v59 = vadd.f32 1e-05, %v946_v19  ;;  %v3828_v19 = vld [vmem:[#allocation24_spill] sm:$0xff] }
 0x241   :  { %2078 = vrsqrt.f32 %v948_v59 }
 0x24b   :  { %v2079_v6 = vpop.eup %2078 }
 0x24c   :  { %v950_v12 = vmul.f32 %v2079_v6, %v947_v40  ;;  %v3833_v40 = vld [vmem:[#allocation6_spill] sm:$0xff] }
 0x24e   :  { %v2850_v4 = vrot.slane %v950_v12, %v954_v2  ;;  %v3834_v2 = vld [vmem:[#allocation9_spill] sm:$0xff] }
 0x250   :  { %v2854_v15 = vmul.f32 %v2850_v4, %v3826_v28  ;;  %v2858_v54 = vmul.f32 %v2850_v4, %v3827_v61  ;;  %v2862_v59 = vmul.f32 %v2850_v4, %v3828_v19  ;;  %v2866_v21 = vmul.f32 %v2850_v4, %v2451_v57 }
 0x251   :  { %v2870_v20 = vmul.f32 %v2850_v4, %v2455_v38  ;;  %v2874_v29 = vmul.f32 %v2850_v4, %v2459_v44  ;;  %v2878_v33 = vmul.f32 %v2850_v4, %v2463_v48  ;;  %v2882_v13 = vmul.f32 %v2850_v4, %v2467_v42 }
 0x252   :  { %v2886_v57 = vmul.f32 %v2850_v4, %v2471_v46  ;;  %v2890_v38 = vmul.f32 %v2850_v4, %v2475_v55  ;;  %v2894_v44 = vmul.f32 %v2850_v4, %v2479_v60  ;;  %v2898_v48 = vmul.f32 %v2850_v4, %v2483_v52 }
 0x253   :  { %v2902_v42 = vmul.f32 %v2850_v4, %v2487_v58  ;;  %v2906_v46 = vmul.f32 %v2850_v4, %v2491_v3  ;;  %v2910_v55 = vmul.f32 %v2850_v4, %v2495_v8  ;;  %v2914_v60 = vmul.f32 %v2850_v4, %v2499_v0 }
 0x254   :  { %v2918_v52 = vmul.f32 %v2850_v4, %v3829_v26  ;;  %v2922_v58 = vmul.f32 %v2850_v4, %v3830_v35  ;;  %v2926_v3 = vmul.f32 %v2850_v4, %v3831_v31  ;;  %v2930_v8 = vmul.f32 %v2850_v4, %v3832_v1  ;;  %v3835_v35 = vld [vmem:[#allocation14_spill] sm:$0xff]  ;;  %v3836_v31 = vld [vmem:[#allocation17_spill] sm:$0xff]  ;;  %v3837_v1 = vld [vmem:[#allocation19_spill] sm:$0xff] }
 0x255   :  { %v2934_v0 = vmul.f32 %v2850_v4, %v3833_v40  ;;  %v2938_v6 = vmul.f32 %v2850_v4, %v3834_v2  ;;  %v2942_v12 = vmul.f32 %v2850_v4, %v3812_v5  ;;  %v2946_v28 = vmul.f32 %v2850_v4, %v3813_v17  ;;  %v3838_v40 = vld [vmem:[#allocation16_spill] sm:$0xff] }
 0x256   :  { %v2950_v61 = vmul.f32 %v2850_v4, %v3814_v62  ;;  %v2954_v19 = vmul.f32 %v2850_v4, %v3815_v36  ;;  %v2958_v26 = vmul.f32 %v2850_v4, %v3816_v50  ;;  %v2962_v5 = vmul.f32 %v2850_v4, %v2547_v30 }
 0x257   :  { %v2966_v17 = vmul.f32 %v2850_v4, %v2551_v24  ;;  %v2970_v62 = vmul.f32 %v2850_v4, %v2555_v34  ;;  %v2974_v36 = vmul.f32 %v2850_v4, %v2559_v51  ;;  %v2978_v50 = vmul.f32 %v2850_v4, %v2563_v53 }
 0x258   :  { %v2982_v30 = vmul.f32 %v2850_v4, %v2567_v27  ;;  %v2986_v24 = vmul.f32 %v2850_v4, %v2571_v32  ;;  %v2990_v34 = vmul.f32 %v2850_v4, %v2575_v11  ;;  %v2994_v51 = vmul.f32 %v2850_v4, %v2579_v37 }
 0x259   :  { %v2998_v53 = vmul.f32 %v2850_v4, %v2583_v25  ;;  %v3002_v27 = vmul.f32 %v2850_v4, %v2587_v41  ;;  %v3006_v32 = vmul.f32 %v2850_v4, %v2591_v39  ;;  %v3010_v11 = vmul.f32 %v2850_v4, %v2595_v22 }
 0x25a   :  { %v3014_v37 = vmul.f32 %v2850_v4, %v2599_v63  ;;  %v3018_v25 = vmul.f32 %v2850_v4, %v2603_v45  ;;  %v3022_v41 = vmul.f32 %v2850_v4, %v2607_v49  ;;  %v3026_v39 = vmul.f32 %v2850_v4, %v2611_v43 }
 0x25b   :  { %v3030_v22 = vmul.f32 %v2850_v4, %v2615_v47  ;;  %v3034_v63 = vmul.f32 %v2850_v4, %v2619_v56  ;;  %v3038_v45 = vmul.f32 %v2850_v4, %v3835_v35  ;;  %v3042_v49 = vmul.f32 %v2850_v4, %v3836_v31 }
 0x25c   :  { %v3046_v43 = vmul.f32 %v2850_v4, %v3837_v1  ;;  %v3050_v47 = vmul.f32 %v2850_v4, %v3838_v40  ;;  %v3054_v56 = vmul.f32 %v2850_v4, %v2639_v9  ;;  %v3058_v2 = vmul.f32 %v2850_v4, %v3817_v18  ;;  %v3845_v40 = vld [vmem:[#allocation29_spill] sm:$0xff] }
 0x25d   :  { %v3062_v35 = vmul.f32 %v2850_v4, %v3818_v23  ;;  %v3066_v31 = vmul.f32 %v2850_v4, %v3819_v7  ;;  %v3070_v1 = vmul.f32 %v2850_v4, %v3820_v16  ;;  %v3074_v9 = vmul.f32 %v2850_v4, %v2659_v14  ;;  %v3095_v14 = vld [vmem:[%s3666_s3] ss:$0 sm:$0xff] }
 0x25e   :  { %3839 = vst [vmem:[#allocation4_spill] sm:$0xff] %v3054_v56  ;;  %3840 = vst [vmem:[#allocation7_spill] sm:$0xff] %v3058_v2  ;;  %v3078_v18 = vmul.f32 %v2850_v4, %v3845_v40  ;;  %v3847_v2 = vld [vmem:[#allocation10_spill] sm:$0xff] }
 0x25f   :  { %3841 = vst [vmem:[#allocation12_spill] sm:$0xff] %v3062_v35  ;;  %3842 = vst [vmem:[#allocation15_spill] sm:$0xff] %v3066_v31  ;;  %v3082_v23 = vmul.f32 %v2850_v4, %v3847_v2  ;;  %v3849_v35 = vld [vmem:[#allocation5_spill] sm:$0xff]  ;;  %v3851_v31 = vld [vmem:[#allocation8_spill] sm:$0xff] }
 0x260   :  { %3843 = vst [vmem:[#allocation11_spill] sm:$0xff] %v3070_v1  ;;  %3844 = vst [vmem:[#allocation18_spill] sm:$0xff] %v3074_v9  ;;  %v3086_v7 = vmul.f32 %v2850_v4, %v3849_v35  ;;  %v3090_v16 = vmul.f32 %v2850_v4, %v3851_v31  ;;  %v3853_v9 = vld [vmem:[#allocation13_spill] sm:$0xff]  ;;  %v3859_v56 = vld [vmem:[#allocation34_spill] sm:$0xff] }
 0x261   :  { %3846 = vst [vmem:[#allocation20_spill] sm:$0xff] %v3078_v18  ;;  %3848 = vst [vmem:[#allocation27_spill] sm:$0xff] %v3082_v23  ;;  %v3099_v40 = vmul.f32 %v2850_v4, %v3853_v9  ;;  %v3855_v18 = vld [vmem:[#allocation30_spill] sm:$0xff]  ;;  %v3856_v23 = vld [vmem:[#allocation31_spill] sm:$0xff]  ;;  %v3119_v9 = vmul.f32 %v2850_v4, %v3859_v56  ;;  %v3139_v56 = vadd.f32 %v3095_v14, %v2862_v59 }
 0x262   :  { %3850 = vst [vmem:[#allocation28_spill] sm:$0xff] %v3086_v7  ;;  %3852 = vst [vmem:[#allocation21_spill] sm:$0xff] %v3090_v16  ;;  %v3103_v2 = vmul.f32 %v2850_v4, %v3855_v18  ;;  %v3107_v35 = vmul.f32 %v2850_v4, %v3856_v23  ;;  %v3857_v7 = vld [vmem:[#allocation32_spill] sm:$0xff]  ;;  %v3858_v16 = vld [vmem:[#allocation33_spill] sm:$0xff]  ;;  %v3127_v23 = vmul.f32 %v2850_v4, %v2707_v10 }
 0x263   :  { %3854 = vst [vmem:[#allocation22_spill] sm:$0xff] %v3099_v40  ;;  %v3111_v31 = vmul.f32 %v2850_v4, %v3857_v7  ;;  %v3115_v1 = vmul.f32 %v2850_v4, %v3858_v16  ;;  %v3860_v40 = vld [vmem:[#allocation35_spill] sm:$0xff]  ;;  %v3131_v7 = vadd.f32 %v3095_v14, %v2854_v15  ;;  %v3135_v16 = vadd.f32 %v3095_v14, %v2858_v54 }
 0x264   :  { %v3123_v18 = vmul.f32 %v2850_v4, %v3860_v40  ;;  %v3143_v40 = vadd.f32 %v3095_v14, %v2866_v21  ;;  %v3147_v10 = vadd.f32 %v3095_v14, %v2870_v20  ;;  %v3151_v4 = vadd.f32 %v3095_v14, %v2874_v29 }
 0x265   :  { %v3155_v15 = vadd.f32 %v3095_v14, %v2878_v33  ;;  %v3159_v54 = vadd.f32 %v3095_v14, %v2882_v13  ;;  %v3163_v59 = vadd.f32 %v3095_v14, %v2886_v57  ;;  %v3167_v21 = vadd.f32 %v3095_v14, %v2890_v38 }
 0x266   :  { %v3171_v20 = vadd.f32 %v3095_v14, %v2894_v44  ;;  %v3175_v29 = vadd.f32 %v3095_v14, %v2898_v48  ;;  %v3179_v33 = vadd.f32 %v3095_v14, %v2902_v42  ;;  %v3183_v13 = vadd.f32 %v3095_v14, %v2906_v46 }
 0x267   :  { %v3187_v57 = vadd.f32 %v3095_v14, %v2910_v55  ;;  %v3191_v38 = vadd.f32 %v3095_v14, %v2914_v60  ;;  %v3195_v44 = vadd.f32 %v3095_v14, %v2918_v52  ;;  %v3199_v48 = vadd.f32 %v3095_v14, %v2922_v58 }
 0x268   :  { %v3203_v42 = vadd.f32 %v3095_v14, %v2926_v3  ;;  %v3207_v46 = vadd.f32 %v3095_v14, %v2930_v8  ;;  %v3211_v55 = vadd.f32 %v3095_v14, %v2934_v0  ;;  %v3215_v60 = vadd.f32 %v3095_v14, %v2938_v6 }
 0x269   :  { %v3219_v52 = vadd.f32 %v3095_v14, %v2942_v12  ;;  %v3223_v58 = vadd.f32 %v3095_v14, %v2946_v28  ;;  %v3227_v3 = vadd.f32 %v3095_v14, %v2950_v61  ;;  %v3231_v8 = vadd.f32 %v3095_v14, %v2954_v19 }
 0x26a   :  { %v3235_v0 = vadd.f32 %v3095_v14, %v2958_v26  ;;  %v3239_v6 = vadd.f32 %v3095_v14, %v2962_v5  ;;  %v3243_v12 = vadd.f32 %v3095_v14, %v2966_v17  ;;  %v3247_v28 = vadd.f32 %v3095_v14, %v2970_v62 }
 0x26b   :  { %v3251_v61 = vadd.f32 %v3095_v14, %v2974_v36  ;;  %v3255_v19 = vadd.f32 %v3095_v14, %v2978_v50  ;;  %v3259_v26 = vadd.f32 %v3095_v14, %v2982_v30  ;;  %v3263_v5 = vadd.f32 %v3095_v14, %v2986_v24 }
 0x26c   :  { %v3267_v17 = vadd.f32 %v3095_v14, %v2990_v34  ;;  %v3271_v62 = vadd.f32 %v3095_v14, %v2994_v51  ;;  %v3275_v36 = vadd.f32 %v3095_v14, %v2998_v53  ;;  %v3279_v50 = vadd.f32 %v3095_v14, %v3002_v27 }
 0x26d   :  { %3861 = vst [vmem:[#allocation23_spill] sm:$0xff] %v3259_v26  ;;  %3862 = vst [vmem:[#allocation24_spill] sm:$0xff] %v3263_v5  ;;  %v3283_v30 = vadd.f32 %v3095_v14, %v3006_v32  ;;  %v3287_v24 = vadd.f32 %v3095_v14, %v3010_v11  ;;  %v3291_v34 = vadd.f32 %v3095_v14, %v3014_v37 }
 0x26e   :  { %3863 = vst [vmem:[#allocation25_spill] sm:$0xff] %v3267_v17  ;;  %3864 = vst [vmem:[#allocation26_spill] sm:$0xff] %v3271_v62  ;;  %v3295_v51 = vadd.f32 %v3095_v14, %v3018_v25  ;;  %v3299_v53 = vadd.f32 %v3095_v14, %v3022_v41  ;;  %v3303_v27 = vadd.f32 %v3095_v14, %v3026_v39 }
 0x26f   :  { %3865 = vst [vmem:[#allocation2_spill] sm:$0xff] %v3275_v36  ;;  %3866 = vst [vmem:[#allocation3_spill] sm:$0xff] %v3291_v34  ;;  %v3307_v32 = vadd.f32 %v3095_v14, %v3030_v22  ;;  %v3311_v11 = vadd.f32 %v3095_v14, %v3034_v63  ;;  %v3315_v37 = vadd.f32 %v3095_v14, %v3038_v45  ;;  %v3875_v22 = vld [vmem:[#allocation4_spill] sm:$0xff] }
 0x270   :  { %3867 = vst [vmem:[#allocation6_spill] sm:$0xff] %v3295_v51  ;;  %3868 = vst [vmem:[#allocation9_spill] sm:$0xff] %v3299_v53  ;;  %v3319_v25 = vadd.f32 %v3095_v14, %v3042_v49  ;;  %v3323_v41 = vadd.f32 %v3095_v14, %v3046_v43  ;;  %v3327_v39 = vadd.f32 %v3095_v14, %v3050_v47 }
 0x271   :  { %3869 = vst [vmem:[#allocation14_spill] sm:$0xff] %v3303_v27  ;;  %3870 = vst [vmem:[#allocation17_spill] sm:$0xff] %v3311_v11  ;;  %v3331_v63 = vadd.f32 %v3095_v14, %v3875_v22  ;;  %v3877_v11 = vld [vmem:[#allocation7_spill] sm:$0xff] }
 0x272   :  { %3871 = vst [vmem:[#allocation19_spill] sm:$0xff] %v3315_v37  ;;  %3872 = vst [vmem:[#allocation16_spill] sm:$0xff] %v3319_v25  ;;  %v3335_v45 = vadd.f32 %v3095_v14, %v3877_v11  ;;  %v3879_v37 = vld [vmem:[#allocation12_spill] sm:$0xff]  ;;  %v3881_v25 = vld [vmem:[#allocation15_spill] sm:$0xff] }
 0x273   :  { %3873 = vst [vmem:[#allocation29_spill] sm:$0xff] %v3323_v41  ;;  %3874 = vst [vmem:[#allocation10_spill] sm:$0xff] %v3327_v39  ;;  %v3339_v49 = vadd.f32 %v3095_v14, %v3879_v37  ;;  %v3343_v43 = vadd.f32 %v3095_v14, %v3881_v25  ;;  %v3883_v41 = vld [vmem:[#allocation11_spill] sm:$0xff]  ;;  %v3885_v39 = vld [vmem:[#allocation18_spill] sm:$0xff] }
 0x274   :  { %3876 = vst [vmem:[#allocation5_spill] sm:$0xff] %v3331_v63  ;;  %3878 = vst [vmem:[#allocation8_spill] sm:$0xff] %v3335_v45  ;;  %v3347_v47 = vadd.f32 %v3095_v14, %v3883_v41  ;;  %v3351_v22 = vadd.f32 %v3095_v14, %v3885_v39  ;;  %v3886_v63 = vld [vmem:[#allocation20_spill] sm:$0xff]  ;;  %v3887_v45 = vld [vmem:[#allocation27_spill] sm:$0xff] }
 0x275   :  { %3880 = vst [vmem:[#allocation13_spill] sm:$0xff] %v3339_v49  ;;  %3882 = vst [vmem:[#allocation30_spill] sm:$0xff] %v3343_v43  ;;  %v3355_v11 = vadd.f32 %v3095_v14, %v3886_v63  ;;  %v3359_v37 = vadd.f32 %v3095_v14, %v3887_v45  ;;  %v3888_v49 = vld [vmem:[#allocation28_spill] sm:$0xff]  ;;  %v3889_v43 = vld [vmem:[#allocation21_spill] sm:$0xff]  ;;  %v3375_v63 = vadd.f32 %v3095_v14, %v3103_v2 }
 0x276   :  { %3884 = vst [vmem:[#allocation31_spill] sm:$0xff] %v3347_v47  ;;  %v3363_v25 = vadd.f32 %v3095_v14, %v3888_v49  ;;  %v3367_v41 = vadd.f32 %v3095_v14, %v3889_v43  ;;  %v3891_v47 = vld [vmem:[#allocation22_spill] sm:$0xff]  ;;  %v3379_v45 = vadd.f32 %v3095_v14, %v3107_v35  ;;  %v3383_v49 = vadd.f32 %v3095_v14, %v3111_v31 }
 0x277   :  { %v3371_v39 = vadd.f32 %v3095_v14, %v3891_v47  ;;  %v3387_v43 = vadd.f32 %v3095_v14, %v3115_v1  ;;  %v3391_v47 = vadd.f32 %v3095_v14, %v3119_v9  ;;  %v3395_v2 = vadd.f32 %v3095_v14, %v3123_v18 }
 0x278   :  { %3890 = vst [vmem:[#allocation32_spill] sm:$0xff] %v3367_v41  ;;  %3892 = vst [vmem:[#allocation33_spill] sm:$0xff] %v3379_v45  ;;  %v3399_v35 = vadd.f32 %v3095_v14, %v3127_v23  ;;  %v1113_v1 = vmax.f32 %v3183_v13, 0.0  ;;  %v1115_v9 = vmax.f32 %v3191_v38, 0.0  ;;  %v1121_v31 = vmax.f32 %v3215_v60, 0.0  ;;  %v3897_v45 = vld [vmem:[#allocation17_spill] sm:$0xff] }
 0x279   :  { %3893 = vst [vmem:[#allocation34_spill] sm:$0xff] %v3383_v49  ;;  %3894 = vst [vmem:[#allocation35_spill] sm:$0xff] %v3387_v43  ;;  %v1114_v43 = vmax.f32 %v3187_v57, 0.0  ;;  %v1122_v49 = vmax.f32 %v3219_v52, 0.0  ;;  %v1123_v13 = vmax.f32 %v3223_v58, 0.0  ;;  %v1129_v14 = vmax.f32 %v3247_v28, 0.0 }
 0x27a   :  { %3895 = vst [vmem:[#allocation4_spill] sm:$0xff] %v3391_v47  ;;  %3896 = vst [vmem:[#allocation7_spill] sm:$0xff] %v3395_v2  ;;  %v1130_v23 = vmax.f32 %v3251_v61, 0.0  ;;  %v1131_v60 = vmax.f32 %v3255_v19, 0.0  ;;  %v1137_v18 = vmax.f32 %v3279_v50, 0.0  ;;  %v1138_v2 = vmax.f32 %v3283_v30, 0.0 }
 0x27b   :  { %v1139_v28 = vmax.f32 %v3287_v24, 0.0  ;;  %v1145_v38 = vmax.f32 %v3897_v45, 0.0  ;;  %v3898_v62 = vld [vmem:[#allocation19_spill] sm:$0xff]  ;;  %v3899_v36 = vld [vmem:[#allocation16_spill] sm:$0xff]  ;;  %v1155_v45 = vmax.f32 %v3351_v22, 0.0  ;;  %v1161_v19 = vmax.f32 %v3375_v63, 0.0 }
 0x27c   :  { %v1146_v47 = vmax.f32 %v3898_v62, 0.0  ;;  %v1147_v50 = vmax.f32 %v3899_v36, 0.0  ;;  %v3905_v53 = vld [vmem:[#allocation30_spill] sm:$0xff]  ;;  %v1167_v36 = vmax.f32 %v3399_v35, 0.0  ;;  %v3912_v30 = vmax.f32 %v3131_v7, 0.0 }
 0x27d   :  { %v1153_v58 = vmax.f32 %v3905_v53, 0.0  ;;  %v3906_v27 = vld [vmem:[#allocation31_spill] sm:$0xff]  ;;  %v3913_v24 = vmax.f32 %v3135_v16, 0.0  ;;  %v3914_v61 = vmax.f32 %v3139_v56, 0.0  ;;  %v3915_v63 = vmax.f32 %v3143_v40, 0.0 }
 0x27e   :  { %v1154_v57 = vmax.f32 %v3906_v27, 0.0  ;;  %v3917_v27 = vmax.f32 %v3151_v4, 0.0  ;;  %v3918_v22 = vmax.f32 %v3155_v15, 0.0  ;;  %v3919_v62 = vmax.f32 %v3159_v54, 0.0 }
 0x27f   :  { %v3907_v34 = vld [vmem:[#allocation33_spill] sm:$0xff]  ;;  %v1694_v41 = vpack.c.bf16 %v3913_v24, %v3912_v30  ;;  %v3920_v7 = vmax.f32 %v3163_v59, 0.0  ;;  %v3921_v16 = vmax.f32 %v3167_v21, 0.0  ;;  %v3922_v56 = vmax.f32 %v3171_v20, 0.0 }
 0x280   :  { %v1162_v52 = vmax.f32 %v3907_v34, 0.0  ;;  %v3908_v51 = vld [vmem:[#allocation34_spill] sm:$0xff]  ;;  %v1699_v34 = vpack.c.bf16 %v3915_v63, %v3914_v61  ;;  %v1709_v35 = vpack.c.bf16 %v3919_v62, %v3918_v22  ;;  %v3923_v40 = vmax.f32 %v3175_v29, 0.0 }
 0x281   :  { %v1163_v53 = vmax.f32 %v3908_v51, 0.0  ;;  %v3910_v5 = vld [vmem:[#allocation4_spill] sm:$0xff]  ;;  %v3911_v17 = vld [vmem:[#allocation7_spill] sm:$0xff]  ;;  %v3916_v51 = vmax.f32 %v3147_v10, 0.0  ;;  %v1714_v30 = vpack.c.bf16 %v3921_v16, %v3920_v7  ;;  %v3924_v10 = vmax.f32 %v3179_v33, 0.0  ;;  %1695 = vst [vmem:[%s3667_s4] sm:$0xff] %v1694_v41   ;;  %v3943_v62 = vld [vmem:[#allocation2_spill] sm:$0xff] }
 0x282   :  { %v1719_v61 = vpack.c.bf16 %v3923_v40, %v3922_v56  ;;  %v1729_v4 = vpack.c.bf16 %v1115_v9, %v1114_v43  ;;  %1861 = vst [vmem:[%s3667_s4 + $0x8] sm:$0xff] %v1699_v34   ;;  %1863 = vst [vmem:[%s3667_s4 + $0x18] sm:$0xff] %v1709_v35   ;;  %v3925_v15 = vmax.f32 %v3195_v44, 0.0  ;;  %v3926_v54 = vmax.f32 %v3199_v48, 0.0  ;;  %v3939_v9 = vld [vmem:[#allocation25_spill] sm:$0xff]  ;;  %v3945_v34 = vld [vmem:[#allocation3_spill] sm:$0xff] }
 0x283   :  { %v1704_v26 = vpack.c.bf16 %v3917_v27, %v3916_v51  ;;  %v1724_v24 = vpack.c.bf16 %v1113_v1, %v3924_v10  ;;  %v3927_v21 = vmax.f32 %v3203_v42, 0.0  ;;  %v3928_v20 = vmax.f32 %v3207_v46, 0.0  ;;  %1864 = vst [vmem:[%s3667_s4 + $0x20] sm:$0xff] %v1714_v30   ;;  %v3949_v35 = vld [vmem:[#allocation9_spill] sm:$0xff]  ;;  %v3951_v16 = vld [vmem:[#allocation14_spill] sm:$0xff] }
 0x284   :  { %v1734_v59 = vpack.c.bf16 %v3926_v54, %v3925_v15  ;;  %v3929_v33 = vmax.f32 %v3211_v55, 0.0  ;;  %v1749_v43 = vpack.c.bf16 %v1123_v13, %v1122_v49  ;;  %1865 = vst [vmem:[%s3667_s4 + $0x28] sm:$0xff] %v1719_v61   ;;  %1867 = vst [vmem:[%s3667_s4 + $0x38] sm:$0xff] %v1729_v4   ;;  %v3930_v44 = vmax.f32 %v3227_v3, 0.0  ;;  %v3935_v3 = vld [vmem:[#allocation23_spill] sm:$0xff]  ;;  %v3958_v4 = vld [vmem:[#allocation5_spill] sm:$0xff] }
 0x285   :  { %1862 = vst [vmem:[%s3667_s4 + $0x10] sm:$0xff] %v1704_v26   ;;  %v1739_v29 = vpack.c.bf16 %v3928_v20, %v3927_v21  ;;  %1866 = vst [vmem:[%s3667_s4 + $0x30] sm:$0xff] %v1724_v24   ;;  %v3931_v48 = vmax.f32 %v3231_v8, 0.0  ;;  %v3932_v46 = vmax.f32 %v3235_v0, 0.0  ;;  %v3933_v55 = vmax.f32 %v3239_v6, 0.0  ;;  %v3937_v0 = vld [vmem:[#allocation24_spill] sm:$0xff] }
 0x286   :  { %v1744_v41 = vpack.c.bf16 %v1121_v31, %v3929_v33  ;;  %v3934_v49 = vmax.f32 %v3243_v12, 0.0  ;;  %v1769_v1 = vpack.c.bf16 %v1131_v60, %v1130_v23  ;;  %1868 = vst [vmem:[%s3667_s4 + $0x40] sm:$0xff] %v1734_v59   ;;  %1871 = vst [vmem:[%s3667_s4 + $0x58] sm:$0xff] %v1749_v43   ;;  %v3936_v8 = vmax.f32 %v3935_v3, 0.0  ;;  %v3941_v23 = vld [vmem:[#allocation26_spill] sm:$0xff]  ;;  %v3954_v24 = vld [vmem:[#allocation29_spill] sm:$0xff] }
 0x287   :  { %v1754_v42 = vpack.c.bf16 %v3931_v48, %v3930_v44  ;;  %v1759_v26 = vpack.c.bf16 %v3933_v55, %v3932_v46  ;;  %1869 = vst [vmem:[%s3667_s4 + $0x48] sm:$0xff] %v1739_v29   ;;  %v3938_v6 = vmax.f32 %v3937_v0, 0.0  ;;  %v3942_v13 = vmax.f32 %v3941_v23, 0.0  ;;  %v3960_v54 = vld [vmem:[#allocation8_spill] sm:$0xff]  ;;  %v3962_v20 = vld [vmem:[#allocation13_spill] sm:$0xff] }
 0x288   :  { %v1764_v31 = vpack.c.bf16 %v1129_v14, %v3934_v49  ;;  %1870 = vst [vmem:[%s3667_s4 + $0x50] sm:$0xff] %v1744_v41   ;;  %v3940_v14 = vmax.f32 %v3939_v9, 0.0  ;;  %v3944_v27 = vmax.f32 %v3943_v62, 0.0  ;;  %v1789_v63 = vpack.c.bf16 %v1139_v28, %v1138_v2  ;;  %1875 = vst [vmem:[%s3667_s4 + $0x78] sm:$0xff] %v1769_v1   ;;  %v3967_v44 = vld [vmem:[#allocation32_spill] sm:$0xff] }
 0x289   :  { %v1774_v12 = vpack.c.bf16 %v3938_v6, %v3936_v8  ;;  %1872 = vst [vmem:[%s3667_s4 + $0x60] sm:$0xff] %v1754_v42   ;;  %1873 = vst [vmem:[%s3667_s4 + $0x68] sm:$0xff] %v1759_v26   ;;  %v3946_v51 = vmax.f32 %v3945_v34, 0.0  ;;  %v3950_v7 = vmax.f32 %v3949_v35, 0.0  ;;  %v3952_v30 = vmax.f32 %v3951_v16, 0.0 }
 0x28a   :  { %v1779_v60 = vpack.c.bf16 %v3942_v13, %v3940_v14  ;;  %v1784_v22 = vpack.c.bf16 %v1137_v18, %v3944_v27  ;;  %1874 = vst [vmem:[%s3667_s4 + $0x70] sm:$0xff] %v1764_v31   ;;  %v3947_v18 = vld [vmem:[#allocation6_spill] sm:$0xff]  ;;  %v3953_v40 = vmax.f32 %v3307_v32, 0.0  ;;  %v1809_v10 = vpack.c.bf16 %v1147_v50, %v1146_v47  ;;  %1879 = vst [vmem:[%s3667_s4 + $0x98] sm:$0xff] %v1789_v63  }
 0x28b   :  { %v3948_v2 = vmax.f32 %v3947_v18, 0.0  ;;  %v1799_v56 = vpack.c.bf16 %v3952_v30, %v3950_v7  ;;  %1876 = vst [vmem:[%s3667_s4 + $0x80] sm:$0xff] %v1774_v12   ;;  %v3955_v32 = vmax.f32 %v3954_v24, 0.0  ;;  %v3959_v15 = vmax.f32 %v3958_v4, 0.0 }
 0x28c   :  { %v1804_v61 = vpack.c.bf16 %v1145_v38, %v3953_v40  ;;  %1877 = vst [vmem:[%s3667_s4 + $0x88] sm:$0xff] %v1779_v60   ;;  %1878 = vst [vmem:[%s3667_s4 + $0x90] sm:$0xff] %v1784_v22   ;;  %v3956_v38 = vld [vmem:[#allocation10_spill] sm:$0xff]  ;;  %v3961_v59 = vmax.f32 %v3960_v54, 0.0  ;;  %v3963_v29 = vmax.f32 %v3962_v20, 0.0  ;;  %v1829_v41 = vpack.c.bf16 %v1155_v45, %v1154_v57 }
 0x28d   :  { %v1794_v28 = vpack.c.bf16 %v3948_v2, %v3946_v51  ;;  %v3957_v47 = vmax.f32 %v3956_v38, 0.0  ;;  %1881 = vst [vmem:[%s3667_s4 + $0xa8] sm:$0xff] %v1799_v56   ;;  %1883 = vst [vmem:[%s3667_s4 + $0xb8] sm:$0xff] %v1809_v10   ;;  %v3964_v43 = vmax.f32 %v3355_v11, 0.0  ;;  %v3965_v57 = vmax.f32 %v3359_v37, 0.0  ;;  %v3970_v11 = vld [vmem:[#allocation35_spill] sm:$0xff] }
 0x28e   :  { %v1819_v21 = vpack.c.bf16 %v3961_v59, %v3959_v15  ;;  %v1824_v33 = vpack.c.bf16 %v1153_v58, %v3963_v29  ;;  %1882 = vst [vmem:[%s3667_s4 + $0xb0] sm:$0xff] %v1804_v61   ;;  %v3966_v45 = vmax.f32 %v3363_v25, 0.0  ;;  %v3968_v48 = vmax.f32 %v3967_v44, 0.0  ;;  %1887 = vst [vmem:[%s3667_s4 + $0xd8] sm:$0xff] %v1829_v41  }
 0x28f   :  { %v1814_v50 = vpack.c.bf16 %v3957_v47, %v3955_v32  ;;  %1880 = vst [vmem:[%s3667_s4 + $0xa0] sm:$0xff] %v1794_v28   ;;  %v1834_v58 = vpack.c.bf16 %v3965_v57, %v3964_v43  ;;  %v3969_v46 = vmax.f32 %v3371_v39, 0.0  ;;  %v1849_v26 = vpack.c.bf16 %v1163_v53, %v1162_v52 }
 0x290   :  { %v1839_v42 = vpack.c.bf16 %v3968_v48, %v3966_v45  ;;  %1885 = vst [vmem:[%s3667_s4 + $0xc8] sm:$0xff] %v1819_v21   ;;  %1886 = vst [vmem:[%s3667_s4 + $0xd0] sm:$0xff] %v1824_v33   ;;  %v3971_v37 = vmax.f32 %v3970_v11, 0.0  ;;  %v3972_v25 = vmax.f32 %v3910_v5, 0.0  ;;  %v3973_v52 = vmax.f32 %v3911_v17, 0.0 }
 0x291   :  { %v1844_v55 = vpack.c.bf16 %v1161_v19, %v3969_v46  ;;  %1884 = vst [vmem:[%s3667_s4 + $0xc0] sm:$0xff] %v1814_v50   ;;  %1888 = vst [vmem:[%s3667_s4 + $0xe0] sm:$0xff] %v1834_v58  }
 0x292   :  { %v1854_v39 = vpack.c.bf16 %v3972_v25, %v3971_v37  ;;  %v1859_v19 = vpack.c.bf16 %v1167_v36, %v3973_v52  ;;  %1889 = vst [vmem:[%s3667_s4 + $0xe8] sm:$0xff] %v1839_v42   ;;  %1891 = vst [vmem:[%s3667_s4 + $0xf8] sm:$0xff] %v1849_v26  }
 0x293   :  { %1890 = vst [vmem:[%s3667_s4 + $0xf0] sm:$0xff] %v1844_v55  }
 0x294   :  { %1892 = vst [vmem:[%s3667_s4 + $0x100] sm:$0xff] %v1854_v39   ;;  %1893 = vst [vmem:[%s3667_s4 + $0x108] sm:$0xff] %v1859_v19  }

// kernel: encoder_forward.3
= control target key start
LH: loop header
LB: loop body
LE: loop exit
PB: predicated region body
PF: predicated region fallthrough
CT: control target
= control target key end

     0   :  { %s3909_s1 = inlined_call_operand.vmem [shape: bf16[128,128], index: 1, kind: input, shape index: {}]   ;;  %s3910_s0 = inlined_call_operand.vmem [shape: bf16[576,128], index: 0, kind: input, shape index: {}]   ;;  %s3911_s2 = inlined_call_operand.vmem [shape: f32[1,128], index: 2, kind: input, shape index: {}]   ;;  %s3912_s3 = inlined_call_operand.vmem [shape: f32[1,128], index: 3, kind: input, shape index: {}]   ;;  %s3913_s4 = inlined_call_operand.vmem [shape: bf16[576,128], index: 4, kind: output, shape index: {}]  }
   0x1   :  { %v2144_v0 = vld [vmem:[%s3909_s1] sm:$0xff]   ;;  %v2145_v1 = vld [vmem:[%s3909_s1 + $0x8] sm:$0xff]   ;;  %v2146_v2 = vld [vmem:[%s3909_s1 + $0x10] sm:$0xff]  }
   0x2   :  { %2040 = vmatprep.subr.bf16.mxu0 %v2144_v0  ;;  %2128 = vmatprep.subr.bf16.mxu1 %v2144_v0  ;;  %v2147_v3 = vld [vmem:[%s3909_s1 + $0x18] sm:$0xff]   ;;  %v2152_v4 = vld [vmem:[%s3910_s0] sm:$0xff]   ;;  %v2149_v6 = vld [vmem:[%s3909_s1 + $0x28] sm:$0xff]  }
   0x3   :  { %2041 = vmatpush3.bf16.msra.mxu0 %v2144_v0  ;;  %2136 = vmatpush3.bf16.msra.mxu1 %v2144_v0  ;;  %v2148_v5 = vld [vmem:[%s3909_s1 + $0x20] sm:$0xff]   ;;  %v2150_v7 = vld [vmem:[%s3909_s1 + $0x30] sm:$0xff]   ;;  %v2151_v8 = vld [vmem:[%s3909_s1 + $0x38] sm:$0xff]  }
   0x4   :  { %2042 = vmatprep.subr.bf16.mxu0 %v2145_v1  ;;  %2129 = vmatprep.subr.bf16.mxu1 %v2145_v1  ;;  %v2170_v9 = vld [vmem:[%s3910_s0 + $0x90] sm:$0xff]   ;;  %v2153_v10 = vld [vmem:[%s3910_s0 + $0x8] sm:$0xff]   ;;  %v2171_v12 = vld [vmem:[%s3910_s0 + $0x98] sm:$0xff]  }
   0x5   :  { %2056 = vmatprep.mubr.bf16.mxu0 %v2152_v4  ;;  %v2154_v11 = vld [vmem:[%s3910_s0 + $0x10] sm:$0xff]   ;;  %2092 = vmatprep.mubr.bf16.mxu1 %v2170_v9  ;;  %v2172_v13 = vld [vmem:[%s3910_s0 + $0xa0] sm:$0xff]   ;;  %v2155_v14 = vld [vmem:[%s3910_s0 + $0x18] sm:$0xff]  }
   0x6   :  { %v2156_v15 = vld [vmem:[%s3910_s0 + $0x20] sm:$0xff]   ;;  %v2173_v16 = vld [vmem:[%s3910_s0 + $0xa8] sm:$0xff]   ;;  %v2174_v17 = vld [vmem:[%s3910_s0 + $0xb0] sm:$0xff]  }
   0x7   :  { %2043 = vmatpush3.bf16.msra.mxu0 %v2145_v1  ;;  %2137 = vmatpush3.bf16.msra.mxu1 %v2145_v1  ;;  %v2157_v18 = vld [vmem:[%s3910_s0 + $0x28] sm:$0xff]   ;;  %v2175_v19 = vld [vmem:[%s3910_s0 + $0xb8] sm:$0xff]   ;;  %v2158_v20 = vld [vmem:[%s3910_s0 + $0x30] sm:$0xff]  }
   0x8   :  { %2044 = vmatprep.subr.bf16.mxu0 %v2146_v2  ;;  %2130 = vmatprep.subr.bf16.mxu1 %v2146_v2  ;;  %v2176_v21 = vld [vmem:[%s3910_s0 + $0xc0] sm:$0xff]   ;;  %v2159_v22 = vld [vmem:[%s3910_s0 + $0x38] sm:$0xff]   ;;  %v2177_v23 = vld [vmem:[%s3910_s0 + $0xc8] sm:$0xff]  }
   0x9   :  { %v2160_v24 = vld [vmem:[%s3910_s0 + $0x40] sm:$0xff]   ;;  %v2178_v25 = vld [vmem:[%s3910_s0 + $0xd0] sm:$0xff]   ;;  %v2161_v26 = vld [vmem:[%s3910_s0 + $0x48] sm:$0xff]  }
   0xa   :  { %v2179_v27 = vld [vmem:[%s3910_s0 + $0xd8] sm:$0xff]   ;;  %v2162_v28 = vld [vmem:[%s3910_s0 + $0x50] sm:$0xff]   ;;  %v2180_v29 = vld [vmem:[%s3910_s0 + $0xe0] sm:$0xff]  }
   0xb   :  { %2045 = vmatpush3.bf16.msra.mxu0 %v2146_v2  ;;  %2138 = vmatpush3.bf16.msra.mxu1 %v2146_v2  ;;  %v2163_v30 = vld [vmem:[%s3910_s0 + $0x58] sm:$0xff]   ;;  %v2181_v31 = vld [vmem:[%s3910_s0 + $0xe8] sm:$0xff]   ;;  %v2164_v32 = vld [vmem:[%s3910_s0 + $0x60] sm:$0xff]  }
   0xc   :  { %2046 = vmatprep.subr.bf16.mxu0 %v2147_v3  ;;  %2131 = vmatprep.subr.bf16.mxu1 %v2147_v3  ;;  %v2182_v33 = vld [vmem:[%s3910_s0 + $0xf0] sm:$0xff]   ;;  %v2165_v34 = vld [vmem:[%s3910_s0 + $0x68] sm:$0xff]   ;;  %v2183_v35 = vld [vmem:[%s3910_s0 + $0xf8] sm:$0xff]  }
   0xd   :  { %v2166_v36 = vld [vmem:[%s3910_s0 + $0x70] sm:$0xff]   ;;  %v2184_v37 = vld [vmem:[%s3910_s0 + $0x100] sm:$0xff]   ;;  %v2167_v38 = vld [vmem:[%s3910_s0 + $0x78] sm:$0xff]  }
   0xe   :  { %v2185_v39 = vld [vmem:[%s3910_s0 + $0x108] sm:$0xff]   ;;  %v2168_v40 = vld [vmem:[%s3910_s0 + $0x80] sm:$0xff]   ;;  %v2186_v41 = vld [vmem:[%s3910_s0 + $0x110] sm:$0xff]  }
   0xf   :  { %2047 = vmatpush3.bf16.msra.mxu0 %v2147_v3  ;;  %2139 = vmatpush3.bf16.msra.mxu1 %v2147_v3  ;;  %v2169_v42 = vld [vmem:[%s3910_s0 + $0x88] sm:$0xff]   ;;  %v2187_v43 = vld [vmem:[%s3910_s0 + $0x118] sm:$0xff]  }
  0x10   :  { %2048 = vmatprep.subr.bf16.mxu0 %v2148_v5  ;;  %2132 = vmatprep.subr.bf16.mxu1 %v2148_v5 }
  0x13   :  { %2049 = vmatpush3.bf16.msra.mxu0 %v2148_v5  ;;  %2140 = vmatpush3.bf16.msra.mxu1 %v2148_v5 }
  0x14   :  { %2050 = vmatprep.subr.bf16.mxu0 %v2149_v6  ;;  %2133 = vmatprep.subr.bf16.mxu1 %v2149_v6 }
  0x17   :  { %2051 = vmatpush3.bf16.msra.mxu0 %v2149_v6  ;;  %2141 = vmatpush3.bf16.msra.mxu1 %v2149_v6 }
  0x18   :  { %2052 = vmatprep.subr.bf16.mxu0 %v2150_v7  ;;  %2134 = vmatprep.subr.bf16.mxu1 %v2150_v7 }
  0x1b   :  { %2053 = vmatpush3.bf16.msra.mxu0 %v2150_v7  ;;  %2142 = vmatpush3.bf16.msra.mxu1 %v2150_v7 }
  0x1c   :  { %2054 = vmatprep.subr.bf16.mxu0 %v2151_v8  ;;  %2135 = vmatprep.subr.bf16.mxu1 %v2151_v8 }
  0x1f   :  { %2055 = vmatpush3.bf16.msra.mxu0 %v2151_v8  ;;  %2143 = vmatpush3.bf16.msra.mxu1 %v2151_v8 }
  0x22   :  { %2057 = vmatmul.mubr.bf16.vlgmr.msra.gmra.mrb[0].mxu0 %v2153_v10  ;;  %2093 = vmatmul.mubr.bf16.vlgmr.msra.gmra.mrb[0].mxu1 %v2171_v12 }
  0x23   :  { %2060 = vmatprep.mubr.bf16.mxu0 %v2154_v11  ;;  %2096 = vmatprep.mubr.bf16.mxu1 %v2172_v13 }
  0x2a   :  { %2061 = vmatmul.mubr.bf16.gmra.mrb[4].mxu0 %v2155_v14  ;;  %2097 = vmatmul.mubr.bf16.gmra.mrb[4].mxu1 %v2173_v16 }
  0x2b   :  { %2064 = vmatprep.mubr.bf16.mxu0 %v2156_v15  ;;  %2100 = vmatprep.mubr.bf16.mxu1 %v2174_v17 }
  0x32   :  { %2065 = vmatmul.mubr.bf16.gmra.mrb[8].mxu0 %v2157_v18  ;;  %2101 = vmatmul.mubr.bf16.gmra.mrb[8].mxu1 %v2175_v19 }
  0x33   :  { %2068 = vmatprep.mubr.bf16.mxu0 %v2158_v20  ;;  %2104 = vmatprep.mubr.bf16.mxu1 %v2176_v21 }
  0x3a   :  { %2069 = vmatmul.mubr.bf16.gmra.mrb[12].mxu0 %v2159_v22  ;;  %2105 = vmatmul.mubr.bf16.gmra.mrb[12].mxu1 %v2177_v23 }
  0x3b   :  { %2072 = vmatprep.mubr.bf16.mxu0 %v2160_v24  ;;  %2108 = vmatprep.mubr.bf16.mxu1 %v2178_v25 }
  0x42   :  { %2073 = vmatmul.mubr.bf16.gmra.mrb[16].mxu0 %v2161_v26  ;;  %2109 = vmatmul.mubr.bf16.gmra.mrb[16].mxu1 %v2179_v27 }
  0x43   :  { %2076 = vmatprep.mubr.bf16.mxu0 %v2162_v28  ;;  %2112 = vmatprep.mubr.bf16.mxu1 %v2180_v29 }
  0x4a   :  { %2077 = vmatmul.mubr.bf16.gmra.mrb[20].mxu0 %v2163_v30  ;;  %2113 = vmatmul.mubr.bf16.gmra.mrb[20].mxu1 %v2181_v31 }
  0x4b   :  { %2080 = vmatprep.mubr.bf16.mxu0 %v2164_v32  ;;  %2116 = vmatprep.mubr.bf16.mxu1 %v2182_v33 }
  0x52   :  { %2081 = vmatmul.mubr.bf16.gmra.mrb[24].mxu0 %v2165_v34  ;;  %2117 = vmatmul.mubr.bf16.gmra.mrb[24].mxu1 %v2183_v35 }
  0x53   :  { %2084 = vmatprep.mubr.bf16.mxu0 %v2166_v36  ;;  %2120 = vmatprep.mubr.bf16.mxu1 %v2184_v37 }
  0x5a   :  { %2085 = vmatmul.mubr.bf16.gmra.mrb[28].mxu0 %v2167_v38  ;;  %2121 = vmatmul.mubr.bf16.gmra.mrb[28].mxu1 %v2185_v39 }
  0x5b   :  { %2088 = vmatprep.mubr.bf16.mxu0 %v2168_v40  ;;  %2124 = vmatprep.mubr.bf16.mxu1 %v2186_v41 }
  0x62   :  { %2089 = vmatmul.mubr.bf16.gmra.mrb[32].mxu0 %v2169_v42  ;;  %2125 = vmatmul.mubr.bf16.gmra.mrb[32].mxu1 %v2187_v43 }
  0xf5   :  { %v2347_v44 = vpop.f32.mrb[0].mxu0  ;;  %v2349_v45 = vpop.f32.mrb[0].mxu1 }
  0xf6   :  { %v2351_v46 = vpop.f32.mrb[1].mxu0  ;;  %v2353_v47 = vpop.f32.mrb[1].mxu1 }
  0xf7   :  { %v2355_v48 = vpop.f32.mrb[2].mxu0  ;;  %v2357_v49 = vpop.f32.mrb[2].mxu1 }
  0xf8   :  { %v2359_v50 = vpop.f32.mrb[3].mxu0  ;;  %v2361_v51 = vpop.f32.mrb[3].mxu1 }
  0xf9   :  { %v691_v52 = vadd.f32 %v2359_v50, %v2351_v46 }
  0xfb   :  { %v692_v53 = vadd.f32 %v2347_v44, %v691_v52 }
  0xfd   :  { %v2366_v54 = vpop.f32.mrb[4].mxu0  ;;  %v693_v55 = vadd.f32 %v2355_v48, %v692_v53  ;;  %v2369_v56 = vpop.f32.mrb[4].mxu1 }
  0xfe   :  { %v2371_v57 = vpop.f32.mrb[5].mxu0  ;;  %v2373_v58 = vpop.f32.mrb[5].mxu1 }
  0xff   :  { %v694_v59 = vadd.f32 %v693_v55, %v2371_v57  ;;  %v2376_v60 = vpop.f32.mrb[6].mxu0  ;;  %v2378_v61 = vpop.f32.mrb[6].mxu1 }
 0x100   :  { %v2380_v62 = vpop.f32.mrb[7].mxu0  ;;  %v2382_v63 = vpop.f32.mrb[7].mxu1 }
 0x101   :  { %v695_v0 = vadd.f32 %v694_v59, %v2380_v62 }
 0x103   :  { %v696_v1 = vadd.f32 %v2366_v54, %v695_v0 }
 0x105   :  { %v2386_v2 = vpop.f32.mrb[8].mxu0  ;;  %v697_v3 = vadd.f32 %v2376_v60, %v696_v1  ;;  %v2389_v4 = vpop.f32.mrb[8].mxu1 }
 0x106   :  { %v2391_v5 = vpop.f32.mrb[9].mxu0  ;;  %v2393_v6 = vpop.f32.mrb[9].mxu1 }
 0x107   :  { %v698_v7 = vadd.f32 %v697_v3, %v2391_v5  ;;  %v2396_v8 = vpop.f32.mrb[10].mxu0  ;;  %v2398_v9 = vpop.f32.mrb[10].mxu1 }
 0x108   :  { %v2400_v10 = vpop.f32.mrb[11].mxu0  ;;  %v2402_v11 = vpop.f32.mrb[11].mxu1 }
 0x109   :  { %v699_v12 = vadd.f32 %v698_v7, %v2400_v10 }
 0x10b   :  { %v700_v13 = vadd.f32 %v2386_v2, %v699_v12 }
 0x10d   :  { %v2406_v14 = vpop.f32.mrb[12].mxu0  ;;  %v701_v15 = vadd.f32 %v2396_v8, %v700_v13  ;;  %v2409_v16 = vpop.f32.mrb[12].mxu1 }
 0x10e   :  { %4006 = vst [vmem:[#allocation2_spill] sm:$0xff] %v2406_v14  ;;  %v2411_v17 = vpop.f32.mrb[13].mxu0  ;;  %v2413_v18 = vpop.f32.mrb[13].mxu1 }
 0x10f   :  { %v702_v19 = vadd.f32 %v701_v15, %v2411_v17  ;;  %v2416_v20 = vpop.f32.mrb[14].mxu0  ;;  %v2418_v21 = vpop.f32.mrb[14].mxu1 }
 0x110   :  { %4007 = vst [vmem:[#allocation3_spill] sm:$0xff] %v2416_v20  ;;  %v2420_v22 = vpop.f32.mrb[15].mxu0  ;;  %v2422_v23 = vpop.f32.mrb[15].mxu1 }
 0x111   :  { %v703_v24 = vadd.f32 %v702_v19, %v2420_v22 }
 0x113   :  { %v704_v25 = vadd.f32 %v2406_v14, %v703_v24 }
 0x115   :  { %v2426_v26 = vpop.f32.mrb[16].mxu0  ;;  %v705_v27 = vadd.f32 %v2416_v20, %v704_v25  ;;  %v2429_v28 = vpop.f32.mrb[16].mxu1 }
 0x116   :  { %4008 = vst [vmem:[#allocation4_spill] sm:$0xff] %v2426_v26  ;;  %v2431_v29 = vpop.f32.mrb[17].mxu0  ;;  %v2433_v30 = vpop.f32.mrb[17].mxu1 }
 0x117   :  { %4009 = vst [vmem:[#allocation5_spill] sm:$0xff] %v2431_v29  ;;  %v706_v31 = vadd.f32 %v705_v27, %v2431_v29  ;;  %v2436_v32 = vpop.f32.mrb[18].mxu0  ;;  %v2438_v33 = vpop.f32.mrb[18].mxu1 }
 0x118   :  { %4010 = vst [vmem:[#allocation6_spill] sm:$0xff] %v2436_v32  ;;  %v2440_v34 = vpop.f32.mrb[19].mxu0  ;;  %v2442_v35 = vpop.f32.mrb[19].mxu1 }
 0x119   :  { %4011 = vst [vmem:[#allocation7_spill] sm:$0xff] %v2440_v34  ;;  %v707_v36 = vadd.f32 %v706_v31, %v2440_v34 }
 0x11b   :  { %v708_v37 = vadd.f32 %v2426_v26, %v707_v36 }
 0x11d   :  { %v2446_v38 = vpop.f32.mrb[20].mxu0  ;;  %v709_v39 = vadd.f32 %v2436_v32, %v708_v37  ;;  %v2449_v40 = vpop.f32.mrb[20].mxu1 }
 0x11e   :  { %4012 = vst [vmem:[#allocation8_spill] sm:$0xff] %v2446_v38  ;;  %v2451_v41 = vpop.f32.mrb[21].mxu0  ;;  %v2453_v42 = vpop.f32.mrb[21].mxu1 }
 0x11f   :  { %4013 = vst [vmem:[#allocation9_spill] sm:$0xff] %v2451_v41  ;;  %v710_v43 = vadd.f32 %v709_v39, %v2451_v41  ;;  %v2456_v52 = vpop.f32.mrb[22].mxu0  ;;  %v2458_v53 = vpop.f32.mrb[22].mxu1 }
 0x120   :  { %4014 = vst [vmem:[#allocation10_spill] sm:$0xff] %v2456_v52  ;;  %v2460_v55 = vpop.f32.mrb[23].mxu0  ;;  %v2462_v59 = vpop.f32.mrb[23].mxu1 }
 0x121   :  { %4015 = vst [vmem:[#allocation11_spill] sm:$0xff] %v2460_v55  ;;  %v711_v0 = vadd.f32 %v710_v43, %v2460_v55 }
 0x123   :  { %v712_v1 = vadd.f32 %v2446_v38, %v711_v0 }
 0x125   :  { %v2466_v3 = vpop.f32.mrb[24].mxu0  ;;  %v713_v7 = vadd.f32 %v2456_v52, %v712_v1  ;;  %v2469_v12 = vpop.f32.mrb[24].mxu1 }
 0x126   :  { %4016 = vst [vmem:[#allocation12_spill] sm:$0xff] %v2466_v3  ;;  %4017 = vst [vmem:[#allocation13_spill] sm:$0xff] %v2469_v12  ;;  %v2471_v13 = vpop.f32.mrb[25].mxu0  ;;  %v2473_v15 = vpop.f32.mrb[25].mxu1 }
 0x127   :  { %4018 = vst [vmem:[#allocation14_spill] sm:$0xff] %v2471_v13  ;;  %v714_v19 = vadd.f32 %v713_v7, %v2471_v13  ;;  %v2476_v24 = vpop.f32.mrb[26].mxu0  ;;  %v2478_v25 = vpop.f32.mrb[26].mxu1 }
 0x128   :  { %4019 = vst [vmem:[#allocation15_spill] sm:$0xff] %v2476_v24  ;;  %4020 = vst [vmem:[#allocation16_spill] sm:$0xff] %v2478_v25  ;;  %v2480_v27 = vpop.f32.mrb[27].mxu0  ;;  %v2482_v31 = vpop.f32.mrb[27].mxu1 }
 0x129   :  { %4021 = vst [vmem:[#allocation17_spill] sm:$0xff] %v2480_v27  ;;  %4022 = vst [vmem:[#allocation18_spill] sm:$0xff] %v2482_v31  ;;  %v715_v36 = vadd.f32 %v714_v19, %v2480_v27 }
 0x12b   :  { %v716_v37 = vadd.f32 %v2466_v3, %v715_v36 }
 0x12d   :  { %v2486_v39 = vpop.f32.mrb[28].mxu0  ;;  %v717_v43 = vadd.f32 %v2476_v24, %v716_v37  ;;  %v2489_v0 = vpop.f32.mrb[28].mxu1 }
 0x12e   :  { %4023 = vst [vmem:[#allocation19_spill] sm:$0xff] %v2486_v39  ;;  %v2491_v1 = vpop.f32.mrb[29].mxu0  ;;  %v2493_v7 = vpop.f32.mrb[29].mxu1 }
 0x12f   :  { %4024 = vst [vmem:[#allocation20_spill] sm:$0xff] %v2491_v1  ;;  %4025 = vst [vmem:[#allocation21_spill] sm:$0xff] %v2493_v7  ;;  %v718_v13 = vadd.f32 %v717_v43, %v2491_v1  ;;  %v2496_v52 = vpop.f32.mrb[30].mxu0  ;;  %v2498_v38 = vpop.f32.mrb[30].mxu1 }
 0x130   :  { %4026 = vst [vmem:[#allocation22_spill] sm:$0xff] %v2496_v52  ;;  %v2500_v55 = vpop.f32.mrb[31].mxu0  ;;  %v2502_v19 = vpop.f32.mrb[31].mxu1 }
 0x131   :  { %4027 = vst [vmem:[#allocation23_spill] sm:$0xff] %v2500_v55  ;;  %v719_v36 = vadd.f32 %v718_v13, %v2500_v55 }
 0x133   :  { %v720_v37 = vadd.f32 %v2486_v39, %v719_v36 }
 0x135   :  { %v2506_v24 = vpop.f32.mrb[32].mxu0  ;;  %v721_v3 = vadd.f32 %v2496_v52, %v720_v37  ;;  %v2509_v27 = vpop.f32.mrb[32].mxu1 }
 0x136   :  { %v2511_v41 = vpop.f32.mrb[33].mxu0  ;;  %v2513_v43 = vpop.f32.mrb[33].mxu1 }
 0x137   :  { %4028 = vst [vmem:[#allocation24_spill] sm:$0xff] %v2511_v41  ;;  %v722_v1 = vadd.f32 %v721_v3, %v2511_v41  ;;  %v2516_v32 = vpop.f32.mrb[34].mxu0  ;;  %v2518_v26 = vpop.f32.mrb[34].mxu1 }
 0x138   :  { %v2520_v34 = vpop.f32.mrb[35].mxu0  ;;  %v2522_v13 = vpop.f32.mrb[35].mxu1 }
 0x139   :  { %v723_v36 = vadd.f32 %v722_v1, %v2520_v34 }
 0x13b   :  { %v724_v37 = vadd.f32 %v2506_v24, %v723_v36 }
 0x13d   :  { %v725_v52 = vadd.f32 %v2516_v32, %v724_v37 }
 0x13f   :  { %v726_v39 = vadd.f32 %v725_v52, %v2353_v47 }
 0x141   :  { %v727_v55 = vadd.f32 %v726_v39, %v2361_v51 }
 0x143   :  { %v728_v3 = vadd.f32 %v2349_v45, %v727_v55 }
 0x145   :  { %v729_v41 = vadd.f32 %v2357_v49, %v728_v3 }
 0x147   :  { %v730_v29 = vadd.f32 %v729_v41, %v2373_v58 }
 0x149   :  { %v731_v20 = vadd.f32 %v730_v29, %v2382_v63 }
 0x14b   :  { %v732_v14 = vadd.f32 %v2369_v56, %v731_v20 }
 0x14d   :  { %v733_v1 = vadd.f32 %v2378_v61, %v732_v14 }
 0x14f   :  { %v734_v36 = vadd.f32 %v733_v1, %v2393_v6 }
 0x151   :  { %v735_v37 = vadd.f32 %v734_v36, %v2402_v11 }
 0x153   :  { %v736_v52 = vadd.f32 %v2389_v4, %v735_v37 }
 0x155   :  { %v737_v39 = vadd.f32 %v2398_v9, %v736_v52 }
 0x157   :  { %v738_v55 = vadd.f32 %v737_v39, %v2413_v18 }
 0x159   :  { %v739_v3 = vadd.f32 %v738_v55, %v2422_v23 }
 0x15b   :  { %v740_v41 = vadd.f32 %v2409_v16, %v739_v3 }
 0x15d   :  { %v741_v29 = vadd.f32 %v2418_v21, %v740_v41 }
 0x15f   :  { %v742_v20 = vadd.f32 %v741_v29, %v2433_v30 }
 0x161   :  { %v743_v14 = vadd.f32 %v742_v20, %v2442_v35 }
 0x163   :  { %v744_v1 = vadd.f32 %v2429_v28, %v743_v14 }
 0x165   :  { %v745_v36 = vadd.f32 %v2438_v33, %v744_v1 }
 0x167   :  { %v746_v37 = vadd.f32 %v745_v36, %v2453_v42 }
 0x169   :  { %v747_v52 = vadd.f32 %v746_v37, %v2462_v59 }
 0x16b   :  { %v748_v39 = vadd.f32 %v2449_v40, %v747_v52 }
 0x16d   :  { %v749_v55 = vadd.f32 %v2458_v53, %v748_v39 }
 0x16f   :  { %v750_v3 = vadd.f32 %v749_v55, %v2473_v15 }
 0x171   :  { %v751_v41 = vadd.f32 %v750_v3, %v2482_v31 }
 0x173   :  { %v752_v29 = vadd.f32 %v2469_v12, %v751_v41 }
 0x175   :  { %v753_v20 = vadd.f32 %v2478_v25, %v752_v29 }
 0x177   :  { %v754_v14 = vadd.f32 %v753_v20, %v2493_v7 }
 0x179   :  { %v755_v1 = vadd.f32 %v754_v14, %v2502_v19 }
 0x17b   :  { %v756_v36 = vadd.f32 %v2489_v0, %v755_v1 }
 0x17d   :  { %v757_v37 = vadd.f32 %v2498_v38, %v756_v36 }
 0x17f   :  { %v758_v52 = vadd.f32 %v757_v37, %v2513_v43  ;;  %v4037_v37 = vld [vmem:[#allocation3_spill] sm:$0xff] }
 0x181   :  { %v759_v39 = vadd.f32 %v758_v52, %v2522_v13  ;;  %v4039_v52 = vld [vmem:[#allocation5_spill] sm:$0xff] }
 0x183   :  { %v760_v55 = vadd.f32 %v2509_v27, %v759_v39  ;;  %v4041_v39 = vld [vmem:[#allocation7_spill] sm:$0xff] }
 0x185   :  { %v761_v3 = vadd.f32 %v2518_v26, %v760_v55  ;;  %v4043_v55 = vld [vmem:[#allocation4_spill] sm:$0xff] }
 0x187   :  { %v762_v31 = vrot.slane %v761_v3, 4 }
 0x189   :  { %v763_v41 = vadd.f32 %v762_v31, %v761_v3  ;;  %v4045_v3 = vld [vmem:[#allocation6_spill] sm:$0xff] }
 0x18b   :  { %v764_v12 = vrot.slane %v763_v41, 2 }
 0x18d   :  { %v765_v29 = vadd.f32 %v764_v12, %v763_v41 }
 0x18f   :  { %v766_v25 = vrot.slane %v765_v29, 1 }
 0x191   :  { %v767_v20 = vadd.f32 %v766_v25, %v765_v29  ;;  %v4035_v25 = vld [vmem:[#allocation2_spill] sm:$0xff]  ;;  %v4047_v29 = vld [vmem:[#allocation9_spill] sm:$0xff] }
 0x193   :  { %v2563_v7 = vmul.f32 0.0017361111, %v767_v20 }
 0x195   :  { %4029 = vst [vmem:[#allocation25_spill] sm:$0xff] %v2563_v7  ;;  %v2567_v14 = vsub.f32 %v2351_v46, %v2563_v7  ;;  %v2571_v1 = vsub.f32 %v2359_v50, %v2563_v7  ;;  %v2575_v36 = vsub.f32 %v2347_v44, %v2563_v7  ;;  %v2579_v31 = vsub.f32 %v2355_v48, %v2563_v7 }
 0x196   :  { %v2583_v12 = vsub.f32 %v2371_v57, %v2563_v7  ;;  %v2587_v46 = vsub.f32 %v2380_v62, %v2563_v7  ;;  %v2591_v50 = vsub.f32 %v2366_v54, %v2563_v7  ;;  %v2595_v44 = vsub.f32 %v2376_v60, %v2563_v7 }
 0x197   :  { %4030 = vst [vmem:[#allocation26_spill] sm:$0xff] %v2567_v14  ;;  %4031 = vst [vmem:[#allocation27_spill] sm:$0xff] %v2571_v1  ;;  %v2599_v48 = vsub.f32 %v2391_v5, %v2563_v7  ;;  %v2603_v57 = vsub.f32 %v2400_v10, %v2563_v7  ;;  %v2607_v62 = vsub.f32 %v2386_v2, %v2563_v7 }
 0x198   :  { %4032 = vst [vmem:[#allocation28_spill] sm:$0xff] %v2575_v36  ;;  %v2611_v54 = vsub.f32 %v2396_v8, %v2563_v7  ;;  %v2615_v60 = vsub.f32 %v2411_v17, %v2563_v7  ;;  %v2619_v5 = vsub.f32 %v2420_v22, %v2563_v7  ;;  %v2623_v10 = vsub.f32 %v4035_v25, %v2563_v7  ;;  %v4049_v25 = vld [vmem:[#allocation11_spill] sm:$0xff] }
 0x199   :  { %v2627_v2 = vsub.f32 %v4037_v37, %v2563_v7  ;;  %v2631_v8 = vsub.f32 %v4039_v52, %v2563_v7  ;;  %v2635_v17 = vsub.f32 %v4041_v39, %v2563_v7  ;;  %v2639_v22 = vsub.f32 %v4043_v55, %v2563_v7  ;;  %v4051_v52 = vld [vmem:[#allocation8_spill] sm:$0xff] }
 0x19a   :  { %4033 = vst [vmem:[#allocation29_spill] sm:$0xff] %v2615_v60  ;;  %4034 = vst [vmem:[#allocation30_spill] sm:$0xff] %v2619_v5  ;;  %v2643_v41 = vsub.f32 %v4045_v3, %v2563_v7  ;;  %v2647_v20 = vsub.f32 %v4047_v29, %v2563_v7  ;;  %v2651_v37 = vsub.f32 %v4049_v25, %v2563_v7 }
 0x19b   :  { %4036 = vst [vmem:[#allocation2_spill] sm:$0xff] %v2623_v10  ;;  %4038 = vst [vmem:[#allocation3_spill] sm:$0xff] %v2627_v2  ;;  %v2655_v39 = vsub.f32 %v4051_v52, %v2563_v7 }
 0x19c   :  { %4040 = vst [vmem:[#allocation5_spill] sm:$0xff] %v2631_v8  ;;  %4042 = vst [vmem:[#allocation7_spill] sm:$0xff] %v2635_v17  ;;  %v4053_v17 = vld [vmem:[#allocation10_spill] sm:$0xff] }
 0x19d   :  { %4044 = vst [vmem:[#allocation4_spill] sm:$0xff] %v2639_v22  ;;  %4046 = vst [vmem:[#allocation6_spill] sm:$0xff] %v2643_v41  ;;  %v2659_v55 = vsub.f32 %v4053_v17, %v2563_v7  ;;  %v4055_v22 = vld [vmem:[#allocation14_spill] sm:$0xff]  ;;  %v4057_v41 = vld [vmem:[#allocation17_spill] sm:$0xff] }
 0x19e   :  { %4048 = vst [vmem:[#allocation9_spill] sm:$0xff] %v2647_v20  ;;  %4050 = vst [vmem:[#allocation11_spill] sm:$0xff] %v2651_v37  ;;  %v2663_v3 = vsub.f32 %v4055_v22, %v2563_v7  ;;  %v2667_v29 = vsub.f32 %v4057_v41, %v2563_v7  ;;  %v4059_v20 = vld [vmem:[#allocation12_spill] sm:$0xff]  ;;  %v4061_v37 = vld [vmem:[#allocation15_spill] sm:$0xff] }
 0x19f   :  { %4052 = vst [vmem:[#allocation8_spill] sm:$0xff] %v2655_v39  ;;  %4054 = vst [vmem:[#allocation10_spill] sm:$0xff] %v2659_v55  ;;  %v2671_v25 = vsub.f32 %v4059_v20, %v2563_v7  ;;  %v2675_v52 = vsub.f32 %v4061_v37, %v2563_v7  ;;  %v4062_v39 = vld [vmem:[#allocation20_spill] sm:$0xff]  ;;  %v4063_v55 = vld [vmem:[#allocation23_spill] sm:$0xff] }
 0x1a0   :  { %4056 = vst [vmem:[#allocation14_spill] sm:$0xff] %v2663_v3  ;;  %4058 = vst [vmem:[#allocation17_spill] sm:$0xff] %v2667_v29  ;;  %v2679_v17 = vsub.f32 %v4062_v39, %v2563_v7  ;;  %v2683_v22 = vsub.f32 %v4063_v55, %v2563_v7  ;;  %v4064_v3 = vld [vmem:[#allocation19_spill] sm:$0xff]  ;;  %v4065_v29 = vld [vmem:[#allocation22_spill] sm:$0xff]  ;;  %v2699_v39 = vsub.f32 %v2520_v34, %v2563_v7 }
 0x1a1   :  { %4060 = vst [vmem:[#allocation12_spill] sm:$0xff] %v2671_v25  ;;  %v2687_v41 = vsub.f32 %v4064_v3, %v2563_v7  ;;  %v2691_v20 = vsub.f32 %v4065_v29, %v2563_v7  ;;  %v4066_v25 = vld [vmem:[#allocation24_spill] sm:$0xff]  ;;  %v2703_v55 = vsub.f32 %v2506_v24, %v2563_v7  ;;  %v2707_v3 = vsub.f32 %v2516_v32, %v2563_v7 }
 0x1a2   :  { %v2695_v37 = vsub.f32 %v4066_v25, %v2563_v7  ;;  %v2711_v29 = vsub.f32 %v2353_v47, %v2563_v7  ;;  %v2715_v25 = vsub.f32 %v2361_v51, %v2563_v7  ;;  %v2719_v34 = vsub.f32 %v2349_v45, %v2563_v7 }
 0x1a3   :  { %v2723_v24 = vsub.f32 %v2357_v49, %v2563_v7  ;;  %v2727_v32 = vsub.f32 %v2373_v58, %v2563_v7  ;;  %v2731_v47 = vsub.f32 %v2382_v63, %v2563_v7  ;;  %v2735_v51 = vsub.f32 %v2369_v56, %v2563_v7 }
 0x1a4   :  { %v2739_v45 = vsub.f32 %v2378_v61, %v2563_v7  ;;  %v2743_v49 = vsub.f32 %v2393_v6, %v2563_v7  ;;  %v2747_v58 = vsub.f32 %v2402_v11, %v2563_v7  ;;  %v2751_v63 = vsub.f32 %v2389_v4, %v2563_v7 }
 0x1a5   :  { %v2755_v56 = vsub.f32 %v2398_v9, %v2563_v7  ;;  %v2759_v61 = vsub.f32 %v2413_v18, %v2563_v7  ;;  %v2763_v6 = vsub.f32 %v2422_v23, %v2563_v7  ;;  %v2767_v11 = vsub.f32 %v2409_v16, %v2563_v7 }
 0x1a6   :  { %v2771_v4 = vsub.f32 %v2418_v21, %v2563_v7  ;;  %v2775_v9 = vsub.f32 %v2433_v30, %v2563_v7  ;;  %v2779_v18 = vsub.f32 %v2442_v35, %v2563_v7  ;;  %v2783_v23 = vsub.f32 %v2429_v28, %v2563_v7 }
 0x1a7   :  { %4067 = vst [vmem:[#allocation15_spill] sm:$0xff] %v2767_v11  ;;  %v2787_v16 = vsub.f32 %v2438_v33, %v2563_v7  ;;  %v2791_v21 = vsub.f32 %v2453_v42, %v2563_v7  ;;  %v2795_v30 = vsub.f32 %v2462_v59, %v2563_v7  ;;  %v2799_v35 = vsub.f32 %v2449_v40, %v2563_v7 }
 0x1a8   :  { %4068 = vst [vmem:[#allocation20_spill] sm:$0xff] %v2771_v4  ;;  %4069 = vst [vmem:[#allocation23_spill] sm:$0xff] %v2775_v9  ;;  %v2803_v28 = vsub.f32 %v2458_v53, %v2563_v7  ;;  %v2807_v33 = vsub.f32 %v2473_v15, %v2563_v7  ;;  %v2827_v15 = vsub.f32 %v2502_v19, %v2563_v7 }
 0x1a9   :  { %4070 = vst [vmem:[#allocation19_spill] sm:$0xff] %v2779_v18  ;;  %4071 = vst [vmem:[#allocation22_spill] sm:$0xff] %v2787_v16  ;;  %v4076_v16 = vld [vmem:[#allocation18_spill] sm:$0xff]  ;;  %v2847_v19 = vsub.f32 %v2509_v27, %v2563_v7  ;;  %v845_v27 = vmul.f32 %v2583_v12, %v2583_v12 }
 0x1aa   :  { %4072 = vst [vmem:[#allocation24_spill] sm:$0xff] %v2791_v21  ;;  %4073 = vst [vmem:[#allocation31_spill] sm:$0xff] %v2795_v30  ;;  %v2811_v42 = vsub.f32 %v4076_v16, %v2563_v7  ;;  %v4078_v21 = vld [vmem:[#allocation13_spill] sm:$0xff]  ;;  %v4080_v30 = vld [vmem:[#allocation16_spill] sm:$0xff]  ;;  %v2831_v16 = vsub.f32 %v2489_v0, %v2563_v7  ;;  %v2851_v0 = vsub.f32 %v2518_v26, %v2563_v7 }
 0x1ab   :  { %4074 = vst [vmem:[#allocation32_spill] sm:$0xff] %v2799_v35  ;;  %4075 = vst [vmem:[#allocation33_spill] sm:$0xff] %v2807_v33  ;;  %v2815_v59 = vsub.f32 %v4078_v21, %v2563_v7  ;;  %v2819_v40 = vsub.f32 %v4080_v30, %v2563_v7  ;;  %v4082_v35 = vld [vmem:[#allocation21_spill] sm:$0xff]  ;;  %v2835_v21 = vsub.f32 %v2498_v38, %v2563_v7 }
 0x1ac   :  { %4077 = vst [vmem:[#allocation18_spill] sm:$0xff] %v2811_v42  ;;  %v2823_v53 = vsub.f32 %v4082_v35, %v2563_v7  ;;  %4084 = vst [vmem:[#allocation34_spill] sm:$0xff] %v2827_v15  ;;  %v2839_v30 = vsub.f32 %v2513_v43, %v2563_v7  ;;  %v2843_v35 = vsub.f32 %v2522_v13, %v2563_v7 }
 0x1ad   :  { %4079 = vst [vmem:[#allocation13_spill] sm:$0xff] %v2815_v59  ;;  %4081 = vst [vmem:[#allocation16_spill] sm:$0xff] %v2819_v40  ;;  %v841_v38 = vmul.f32 %v2567_v14, %v2567_v14  ;;  %v843_v43 = vmul.f32 %v2575_v36, %v2575_v36  ;;  %v844_v13 = vmul.f32 %v2579_v31, %v2579_v31 }
 0x1ae   :  { %4083 = vst [vmem:[#allocation21_spill] sm:$0xff] %v2823_v53  ;;  %4085 = vst [vmem:[#allocation35_spill] sm:$0xff] %v2831_v16  ;;  %v846_v26 = vmul.f32 %v2587_v46, %v2587_v46  ;;  %v847_v14 = vmul.f32 %v2591_v50, %v2591_v50  ;;  %v848_v36 = vmul.f32 %v2595_v44, %v2595_v44 }
 0x1af   :  { %4086 = vst [vmem:[#allocation36_spill] sm:$0xff] %v2835_v21  ;;  %4087 = vst [vmem:[#allocation37_spill] sm:$0xff] %v2839_v30  ;;  %v842_v21 = vmul.f32 %v2571_v1, %v2571_v1 }
 0x1b0   :  { %4088 = vst [vmem:[#allocation38_spill] sm:$0xff] %v2843_v35  ;;  %4089 = vst [vmem:[#allocation39_spill] sm:$0xff] %v2847_v19 }
 0x1b1   :  { %v913_v30 = vadd.f32 %v842_v21, %v841_v38  ;;  %v849_v38 = vmul.f32 %v2599_v48, %v2599_v48 }
 0x1b3   :  { %v914_v35 = vadd.f32 %v913_v30, %v843_v43  ;;  %v850_v43 = vmul.f32 %v2603_v57, %v2603_v57 }
 0x1b5   :  { %v915_v19 = vadd.f32 %v914_v35, %v844_v13  ;;  %v851_v13 = vmul.f32 %v2607_v62, %v2607_v62 }
 0x1b7   :  { %v916_v7 = vadd.f32 %v915_v19, %v845_v27  ;;  %v852_v27 = vmul.f32 %v2611_v54, %v2611_v54 }
 0x1b9   :  { %v917_v1 = vadd.f32 %v916_v7, %v846_v26  ;;  %v853_v26 = vmul.f32 %v2615_v60, %v2615_v60 }
 0x1bb   :  { %v918_v21 = vadd.f32 %v917_v1, %v847_v14  ;;  %v854_v1 = vmul.f32 %v2619_v5, %v2619_v5 }
 0x1bd   :  { %v919_v30 = vadd.f32 %v918_v21, %v848_v36  ;;  %v855_v21 = vmul.f32 %v2623_v10, %v2623_v10 }
 0x1bf   :  { %v920_v35 = vadd.f32 %v919_v30, %v849_v38  ;;  %v856_v30 = vmul.f32 %v2627_v2, %v2627_v2 }
 0x1c1   :  { %v921_v19 = vadd.f32 %v920_v35, %v850_v43  ;;  %v857_v35 = vmul.f32 %v2631_v8, %v2631_v8 }
 0x1c3   :  { %v922_v7 = vadd.f32 %v921_v19, %v851_v13  ;;  %v4090_v19 = vld [vmem:[#allocation7_spill] sm:$0xff] }
 0x1c4   :  { %v858_v60 = vmul.f32 %v4090_v19, %v4090_v19 }
 0x1c5   :  { %v923_v14 = vadd.f32 %v922_v7, %v852_v27  ;;  %v4091_v7 = vld [vmem:[#allocation4_spill] sm:$0xff] }
 0x1c6   :  { %v859_v5 = vmul.f32 %v4091_v7, %v4091_v7 }
 0x1c7   :  { %v924_v36 = vadd.f32 %v923_v14, %v853_v26  ;;  %v4092_v14 = vld [vmem:[#allocation6_spill] sm:$0xff] }
 0x1c8   :  { %v860_v10 = vmul.f32 %v4092_v14, %v4092_v14 }
 0x1c9   :  { %v925_v38 = vadd.f32 %v924_v36, %v854_v1  ;;  %v4093_v36 = vld [vmem:[#allocation9_spill] sm:$0xff] }
 0x1ca   :  { %v861_v2 = vmul.f32 %v4093_v36, %v4093_v36 }
 0x1cb   :  { %v926_v43 = vadd.f32 %v925_v38, %v855_v21  ;;  %v4094_v38 = vld [vmem:[#allocation11_spill] sm:$0xff] }
 0x1cc   :  { %v862_v8 = vmul.f32 %v4094_v38, %v4094_v38 }
 0x1cd   :  { %v927_v13 = vadd.f32 %v926_v43, %v856_v30  ;;  %v4095_v43 = vld [vmem:[#allocation8_spill] sm:$0xff] }
 0x1ce   :  { %v863_v19 = vmul.f32 %v4095_v43, %v4095_v43 }
 0x1cf   :  { %v928_v27 = vadd.f32 %v927_v13, %v857_v35  ;;  %v4096_v13 = vld [vmem:[#allocation10_spill] sm:$0xff] }
 0x1d0   :  { %v864_v7 = vmul.f32 %v4096_v13, %v4096_v13 }
 0x1d1   :  { %v929_v26 = vadd.f32 %v928_v27, %v858_v60  ;;  %v4097_v27 = vld [vmem:[#allocation14_spill] sm:$0xff] }
 0x1d2   :  { %v865_v14 = vmul.f32 %v4097_v27, %v4097_v27 }
 0x1d3   :  { %v930_v1 = vadd.f32 %v929_v26, %v859_v5  ;;  %v4098_v26 = vld [vmem:[#allocation17_spill] sm:$0xff] }
 0x1d4   :  { %v866_v36 = vmul.f32 %v4098_v26, %v4098_v26 }
 0x1d5   :  { %v931_v21 = vadd.f32 %v930_v1, %v860_v10  ;;  %v4099_v1 = vld [vmem:[#allocation12_spill] sm:$0xff] }
 0x1d6   :  { %v867_v38 = vmul.f32 %v4099_v1, %v4099_v1 }
 0x1d7   :  { %v932_v30 = vadd.f32 %v931_v21, %v861_v2  ;;  %v868_v21 = vmul.f32 %v2675_v52, %v2675_v52 }
 0x1d9   :  { %v933_v35 = vadd.f32 %v932_v30, %v862_v8  ;;  %v869_v30 = vmul.f32 %v2679_v17, %v2679_v17 }
 0x1db   :  { %v934_v60 = vadd.f32 %v933_v35, %v863_v19  ;;  %v870_v35 = vmul.f32 %v2683_v22, %v2683_v22 }
 0x1dd   :  { %v935_v5 = vadd.f32 %v934_v60, %v864_v7  ;;  %v871_v60 = vmul.f32 %v2687_v41, %v2687_v41 }
 0x1df   :  { %v936_v10 = vadd.f32 %v935_v5, %v865_v14  ;;  %v872_v5 = vmul.f32 %v2691_v20, %v2691_v20 }
 0x1e1   :  { %v937_v2 = vadd.f32 %v936_v10, %v866_v36  ;;  %v873_v10 = vmul.f32 %v2695_v37, %v2695_v37 }
 0x1e3   :  { %v938_v8 = vadd.f32 %v937_v2, %v867_v38  ;;  %v874_v2 = vmul.f32 %v2699_v39, %v2699_v39 }
 0x1e5   :  { %v939_v19 = vadd.f32 %v938_v8, %v868_v21  ;;  %v875_v8 = vmul.f32 %v2703_v55, %v2703_v55 }
 0x1e7   :  { %v940_v7 = vadd.f32 %v939_v19, %v869_v30  ;;  %v876_v19 = vmul.f32 %v2707_v3, %v2707_v3 }
 0x1e9   :  { %v941_v14 = vadd.f32 %v940_v7, %v870_v35  ;;  %v877_v7 = vmul.f32 %v2711_v29, %v2711_v29 }
 0x1eb   :  { %v942_v36 = vadd.f32 %v941_v14, %v871_v60  ;;  %v878_v14 = vmul.f32 %v2715_v25, %v2715_v25 }
 0x1ed   :  { %v943_v38 = vadd.f32 %v942_v36, %v872_v5  ;;  %v879_v36 = vmul.f32 %v2719_v34, %v2719_v34 }
 0x1ef   :  { %v944_v21 = vadd.f32 %v943_v38, %v873_v10  ;;  %v880_v38 = vmul.f32 %v2723_v24, %v2723_v24 }
 0x1f1   :  { %v945_v30 = vadd.f32 %v944_v21, %v874_v2  ;;  %v881_v21 = vmul.f32 %v2727_v32, %v2727_v32 }
 0x1f3   :  { %v946_v35 = vadd.f32 %v945_v30, %v875_v8  ;;  %v882_v30 = vmul.f32 %v2731_v47, %v2731_v47 }
 0x1f5   :  { %v947_v60 = vadd.f32 %v946_v35, %v876_v19  ;;  %v883_v35 = vmul.f32 %v2735_v51, %v2735_v51 }
 0x1f7   :  { %v948_v5 = vadd.f32 %v947_v60, %v877_v7  ;;  %v884_v60 = vmul.f32 %v2739_v45, %v2739_v45 }
 0x1f9   :  { %v949_v10 = vadd.f32 %v948_v5, %v878_v14  ;;  %v885_v5 = vmul.f32 %v2743_v49, %v2743_v49 }
 0x1fb   :  { %v950_v2 = vadd.f32 %v949_v10, %v879_v36  ;;  %v886_v10 = vmul.f32 %v2747_v58, %v2747_v58 }
 0x1fd   :  { %v951_v8 = vadd.f32 %v950_v2, %v880_v38  ;;  %v887_v2 = vmul.f32 %v2751_v63, %v2751_v63 }
 0x1ff   :  { %v952_v19 = vadd.f32 %v951_v8, %v881_v21  ;;  %v888_v8 = vmul.f32 %v2755_v56, %v2755_v56 }
 0x201   :  { %v953_v7 = vadd.f32 %v952_v19, %v882_v30  ;;  %v889_v19 = vmul.f32 %v2759_v61, %v2759_v61 }
 0x203   :  { %v954_v14 = vadd.f32 %v953_v7, %v883_v35  ;;  %v890_v7 = vmul.f32 %v2763_v6, %v2763_v6 }
 0x205   :  { %v955_v36 = vadd.f32 %v954_v14, %v884_v60  ;;  %v891_v14 = vmul.f32 %v2767_v11, %v2767_v11 }
 0x207   :  { %v956_v38 = vadd.f32 %v955_v36, %v885_v5  ;;  %v892_v36 = vmul.f32 %v2771_v4, %v2771_v4 }
 0x209   :  { %v957_v21 = vadd.f32 %v956_v38, %v886_v10  ;;  %v893_v38 = vmul.f32 %v2775_v9, %v2775_v9 }
 0x20b   :  { %v958_v30 = vadd.f32 %v957_v21, %v887_v2  ;;  %v894_v21 = vmul.f32 %v2779_v18, %v2779_v18 }
 0x20d   :  { %v959_v35 = vadd.f32 %v958_v30, %v888_v8  ;;  %v895_v30 = vmul.f32 %v2783_v23, %v2783_v23 }
 0x20f   :  { %v960_v60 = vadd.f32 %v959_v35, %v889_v19  ;;  %v4100_v35 = vld [vmem:[#allocation22_spill] sm:$0xff] }
 0x210   :  { %v896_v11 = vmul.f32 %v4100_v35, %v4100_v35 }
 0x211   :  { %v961_v5 = vadd.f32 %v960_v60, %v890_v7  ;;  %v4101_v60 = vld [vmem:[#allocation24_spill] sm:$0xff] }
 0x212   :  { %v897_v4 = vmul.f32 %v4101_v60, %v4101_v60 }
 0x213   :  { %v962_v10 = vadd.f32 %v961_v5, %v891_v14  ;;  %v4102_v5 = vld [vmem:[#allocation31_spill] sm:$0xff] }
 0x214   :  { %v898_v9 = vmul.f32 %v4102_v5, %v4102_v5 }
 0x215   :  { %v963_v2 = vadd.f32 %v962_v10, %v892_v36  ;;  %v4103_v10 = vld [vmem:[#allocation32_spill] sm:$0xff] }
 0x216   :  { %v899_v18 = vmul.f32 %v4103_v10, %v4103_v10 }
 0x217   :  { %v964_v8 = vadd.f32 %v963_v2, %v893_v38  ;;  %v900_v2 = vmul.f32 %v2803_v28, %v2803_v28 }
 0x219   :  { %v965_v19 = vadd.f32 %v964_v8, %v894_v21  ;;  %v901_v8 = vmul.f32 %v2807_v33, %v2807_v33 }
 0x21b   :  { %v966_v7 = vadd.f32 %v965_v19, %v895_v30  ;;  %v902_v19 = vmul.f32 %v2811_v42, %v2811_v42  ;;  %v4108_v42 = vld [vmem:[#allocation25_spill] sm:$0xff] }
 0x21d   :  { %v967_v14 = vadd.f32 %v966_v7, %v896_v11  ;;  %v903_v7 = vmul.f32 %v2815_v59, %v2815_v59 }
 0x21f   :  { %v968_v36 = vadd.f32 %v967_v14, %v897_v4  ;;  %v904_v14 = vmul.f32 %v2819_v40, %v2819_v40 }
 0x221   :  { %v969_v38 = vadd.f32 %v968_v36, %v898_v9  ;;  %v905_v36 = vmul.f32 %v2823_v53, %v2823_v53 }
 0x223   :  { %v970_v21 = vadd.f32 %v969_v38, %v899_v18  ;;  %v906_v38 = vmul.f32 %v2827_v15, %v2827_v15 }
 0x225   :  { %v971_v30 = vadd.f32 %v970_v21, %v900_v2  ;;  %v907_v21 = vmul.f32 %v2831_v16, %v2831_v16 }
 0x227   :  { %v972_v11 = vadd.f32 %v971_v30, %v901_v8  ;;  %v4104_v30 = vld [vmem:[#allocation36_spill] sm:$0xff] }
 0x228   :  { %v908_v59 = vmul.f32 %v4104_v30, %v4104_v30 }
 0x229   :  { %v973_v4 = vadd.f32 %v972_v11, %v902_v19  ;;  %v4105_v11 = vld [vmem:[#allocation37_spill] sm:$0xff] }
 0x22a   :  { %v909_v40 = vmul.f32 %v4105_v11, %v4105_v11 }
 0x22b   :  { %v974_v9 = vadd.f32 %v973_v4, %v903_v7  ;;  %v4106_v4 = vld [vmem:[#allocation38_spill] sm:$0xff] }
 0x22c   :  { %v910_v53 = vmul.f32 %v4106_v4, %v4106_v4 }
 0x22d   :  { %v975_v18 = vadd.f32 %v974_v9, %v904_v14  ;;  %v4107_v9 = vld [vmem:[#allocation39_spill] sm:$0xff] }
 0x22e   :  { %v911_v15 = vmul.f32 %v4107_v9, %v4107_v9 }
 0x22f   :  { %v976_v2 = vadd.f32 %v975_v18, %v905_v36  ;;  %v912_v18 = vmul.f32 %v2851_v0, %v2851_v0 }
 0x231   :  { %v977_v8 = vadd.f32 %v976_v2, %v906_v38 }
 0x233   :  { %v978_v19 = vadd.f32 %v977_v8, %v907_v21 }
 0x235   :  { %v979_v7 = vadd.f32 %v978_v19, %v908_v59  ;;  %v990_v59 = vmul.f32 %v4108_v42, %v4108_v42  ;;  %v4109_v42 = vld [vmem:[#allocation26_spill] sm:$0xff] }
 0x237   :  { %v980_v14 = vadd.f32 %v979_v7, %v909_v40  ;;  %v991_v4 = vmul.f32 0.0, %v990_v59 }
 0x239   :  { %v981_v36 = vadd.f32 %v980_v14, %v910_v53  ;;  %v1000_v53 = vlaneseq }
 0x23b   :  { %v982_v38 = vadd.f32 %v981_v36, %v911_v15  ;;  %v1001_v14 = vshrl.u32 %v1000_v53, 7  ;;  %v995_v15 = vld [vmem:[%s3911_s2] sm:$0x1] }
 0x23c   :  { %v4114_v53 = vld [vmem:[#allocation2_spill] sm:$0xff] }
 0x23d   :  { %v983_v2 = vadd.f32 %v982_v38, %v912_v18 }
 0x23f   :  { %v984_v16 = vrot.slane %v983_v2, 4 }
 0x241   :  { %v985_v30 = vadd.f32 %v984_v16, %v983_v2  ;;  %v1002_v16 = vsub.s32 0, %v1001_v14  ;;  %v4115_v14 = vld [vmem:[#allocation3_spill] sm:$0xff] }
 0x243   :  { %v986_v21 = vrot.slane %v985_v30, 2 }
 0x245   :  { %v987_v8 = vadd.f32 %v986_v21, %v985_v30 }
 0x247   :  { %v988_v19 = vrot.slane %v987_v8, 1 }
 0x249   :  { %v989_v11 = vadd.f32 %v988_v19, %v987_v8 }
 0x24b   :  { %v992_v40 = vsub.f32 %v989_v11, %v991_v4  ;;  %v4110_v11 = vld [vmem:[#allocation27_spill] sm:$0xff] }
 0x24d   :  { %v993_v7 = vmul.f32 0.0017361111, %v992_v40  ;;  %v4112_v40 = vld [vmem:[#allocation29_spill] sm:$0xff] }
 0x24f   :  { %v994_v33 = vmax.f32 %v993_v7, 0.0  ;;  %v4113_v7 = vld [vmem:[#allocation30_spill] sm:$0xff] }
 0x251   :  { %v996_v9 = vadd.f32 1e-05, %v994_v33  ;;  %v4111_v33 = vld [vmem:[#allocation28_spill] sm:$0xff] }
 0x253   :  { %2188 = vrsqrt.f32 %v996_v9 }
 0x25d   :  { %v2189_v36 = vpop.eup %2188 }
 0x25e   :  { %v998_v30 = vmul.f32 %v2189_v36, %v995_v15  ;;  %v4116_v15 = vld [vmem:[#allocation5_spill] sm:$0xff] }
 0x260   :  { %v3002_v18 = vrot.slane %v998_v30, %v1002_v16  ;;  %v4117_v16 = vld [vmem:[#allocation7_spill] sm:$0xff]  ;;  %v4118_v30 = vld [vmem:[#allocation4_spill] sm:$0xff] }
 0x262   :  { %v3006_v38 = vmul.f32 %v3002_v18, %v4109_v42  ;;  %v3010_v4 = vmul.f32 %v3002_v18, %v4110_v11  ;;  %v3014_v9 = vmul.f32 %v3002_v18, %v4111_v33  ;;  %v3018_v2 = vmul.f32 %v3002_v18, %v2579_v31  ;;  %v4119_v11 = vld [vmem:[#allocation6_spill] sm:$0xff] }
 0x263   :  { %v3022_v21 = vmul.f32 %v3002_v18, %v2583_v12  ;;  %v3026_v8 = vmul.f32 %v3002_v18, %v2587_v46  ;;  %v3030_v59 = vmul.f32 %v3002_v18, %v2591_v50  ;;  %v3034_v19 = vmul.f32 %v3002_v18, %v2595_v44 }
 0x264   :  { %v3038_v31 = vmul.f32 %v3002_v18, %v2599_v48  ;;  %v3042_v12 = vmul.f32 %v3002_v18, %v2603_v57  ;;  %v3046_v46 = vmul.f32 %v3002_v18, %v2607_v62  ;;  %v3050_v50 = vmul.f32 %v3002_v18, %v2611_v54 }
 0x265   :  { %v3054_v44 = vmul.f32 %v3002_v18, %v4112_v40  ;;  %v3058_v48 = vmul.f32 %v3002_v18, %v4113_v7  ;;  %v3062_v57 = vmul.f32 %v3002_v18, %v4114_v53  ;;  %v3066_v62 = vmul.f32 %v3002_v18, %v4115_v14  ;;  %v4120_v40 = vld [vmem:[#allocation9_spill] sm:$0xff]  ;;  %v4121_v53 = vld [vmem:[#allocation11_spill] sm:$0xff] }
 0x266   :  { %v3070_v54 = vmul.f32 %v3002_v18, %v4116_v15  ;;  %v3074_v36 = vmul.f32 %v3002_v18, %v4117_v16  ;;  %v3078_v42 = vmul.f32 %v3002_v18, %v4118_v30  ;;  %v3082_v33 = vmul.f32 %v3002_v18, %v4119_v11 }
 0x267   :  { %v3086_v7 = vmul.f32 %v3002_v18, %v4120_v40  ;;  %v3090_v14 = vmul.f32 %v3002_v18, %v4121_v53  ;;  %v3094_v15 = vmul.f32 %v3002_v18, %v4095_v43  ;;  %v3098_v16 = vmul.f32 %v3002_v18, %v4096_v13  ;;  %v4125_v53 = vld [vmem:[#allocation15_spill] sm:$0xff] }
 0x268   :  { %v3102_v30 = vmul.f32 %v3002_v18, %v4097_v27  ;;  %v3106_v11 = vmul.f32 %v3002_v18, %v4098_v26  ;;  %v3110_v40 = vmul.f32 %v3002_v18, %v4099_v1  ;;  %v3114_v43 = vmul.f32 %v3002_v18, %v2675_v52 }
 0x269   :  { %v3118_v13 = vmul.f32 %v3002_v18, %v2679_v17  ;;  %v3122_v27 = vmul.f32 %v3002_v18, %v2683_v22  ;;  %v3126_v26 = vmul.f32 %v3002_v18, %v2687_v41  ;;  %v3130_v1 = vmul.f32 %v3002_v18, %v2691_v20 }
 0x26a   :  { %v3134_v52 = vmul.f32 %v3002_v18, %v2695_v37  ;;  %v3138_v17 = vmul.f32 %v3002_v18, %v2699_v39  ;;  %v3142_v22 = vmul.f32 %v3002_v18, %v2703_v55  ;;  %v3146_v41 = vmul.f32 %v3002_v18, %v2707_v3 }
 0x26b   :  { %v3150_v20 = vmul.f32 %v3002_v18, %v2711_v29  ;;  %v3154_v37 = vmul.f32 %v3002_v18, %v2715_v25  ;;  %v3158_v39 = vmul.f32 %v3002_v18, %v2719_v34  ;;  %v3162_v55 = vmul.f32 %v3002_v18, %v2723_v24 }
 0x26c   :  { %v3166_v3 = vmul.f32 %v3002_v18, %v2727_v32  ;;  %v3170_v29 = vmul.f32 %v3002_v18, %v2731_v47  ;;  %v3174_v25 = vmul.f32 %v3002_v18, %v2735_v51  ;;  %v3178_v34 = vmul.f32 %v3002_v18, %v2739_v45 }
 0x26d   :  { %v3182_v24 = vmul.f32 %v3002_v18, %v2743_v49  ;;  %v3186_v32 = vmul.f32 %v3002_v18, %v2747_v58  ;;  %v3190_v47 = vmul.f32 %v3002_v18, %v2751_v63  ;;  %v3194_v51 = vmul.f32 %v3002_v18, %v2755_v56 }
 0x26e   :  { %v3198_v45 = vmul.f32 %v3002_v18, %v2759_v61  ;;  %v3202_v49 = vmul.f32 %v3002_v18, %v2763_v6  ;;  %v3206_v58 = vmul.f32 %v3002_v18, %v4125_v53  ;;  %v3222_v6 = vmul.f32 %v3002_v18, %v2783_v23 }
 0x26f   :  { %4122 = vst [vmem:[#allocation8_spill] sm:$0xff] %v3186_v32  ;;  %4123 = vst [vmem:[#allocation10_spill] sm:$0xff] %v3190_v47  ;;  %v4126_v32 = vld [vmem:[#allocation20_spill] sm:$0xff]  ;;  %v4127_v47 = vld [vmem:[#allocation23_spill] sm:$0xff]  ;;  %v3226_v53 = vmul.f32 %v3002_v18, %v4100_v35  ;;  %v3242_v23 = vmul.f32 %v3002_v18, %v2803_v28 }
 0x270   :  { %4124 = vst [vmem:[#allocation14_spill] sm:$0xff] %v3194_v51  ;;  %v3210_v63 = vmul.f32 %v3002_v18, %v4126_v32  ;;  %v3214_v56 = vmul.f32 %v3002_v18, %v4127_v47  ;;  %v4128_v51 = vld [vmem:[#allocation19_spill] sm:$0xff]  ;;  %4130 = vst [vmem:[#allocation12_spill] sm:$0xff] %v3222_v6  ;;  %v3230_v32 = vmul.f32 %v3002_v18, %v4101_v60  ;;  %v4136_v6 = vld [vmem:[#allocation33_spill] sm:$0xff] }
 0x271   :  { %v3218_v61 = vmul.f32 %v3002_v18, %v4128_v51  ;;  %4131 = vst [vmem:[#allocation22_spill] sm:$0xff] %v3226_v53  ;;  %v3234_v47 = vmul.f32 %v3002_v18, %v4102_v5  ;;  %v3238_v51 = vmul.f32 %v3002_v18, %v4103_v10  ;;  %4135 = vst [vmem:[#allocation25_spill] sm:$0xff] %v3242_v23  ;;  %v4138_v53 = vld [vmem:[#allocation18_spill] sm:$0xff]  ;;  %v4144_v23 = vld [vmem:[#allocation21_spill] sm:$0xff] }
 0x272   :  { %4132 = vst [vmem:[#allocation24_spill] sm:$0xff] %v3230_v32  ;;  %v3246_v35 = vmul.f32 %v3002_v18, %v4136_v6  ;;  %v3250_v60 = vmul.f32 %v3002_v18, %v4138_v53  ;;  %v4140_v32 = vld [vmem:[#allocation13_spill] sm:$0xff]  ;;  %v3263_v28 = vld [vmem:[%s3912_s3] ss:$0 sm:$0xff]  ;;  %v3267_v6 = vmul.f32 %v3002_v18, %v4144_v23 }
 0x273   :  { %4129 = vst [vmem:[#allocation17_spill] sm:$0xff] %v3218_v61  ;;  %4133 = vst [vmem:[#allocation31_spill] sm:$0xff] %v3234_v47  ;;  %v3254_v5 = vmul.f32 %v3002_v18, %v4140_v32  ;;  %v4142_v47 = vld [vmem:[#allocation16_spill] sm:$0xff]  ;;  %v4150_v61 = vld [vmem:[#allocation38_spill] sm:$0xff] }
 0x274   :  { %4134 = vst [vmem:[#allocation32_spill] sm:$0xff] %v3238_v51  ;;  %4137 = vst [vmem:[#allocation26_spill] sm:$0xff] %v3246_v35  ;;  %v3258_v10 = vmul.f32 %v3002_v18, %v4142_v47  ;;  %v4146_v35 = vld [vmem:[#allocation34_spill] sm:$0xff]  ;;  %v3287_v23 = vmul.f32 %v3002_v18, %v4150_v61  ;;  %v3307_v61 = vadd.f32 %v3263_v28, %v3014_v9 }
 0x275   :  { %4139 = vst [vmem:[#allocation27_spill] sm:$0xff] %v3250_v60  ;;  %4141 = vst [vmem:[#allocation28_spill] sm:$0xff] %v3254_v5  ;;  %v3271_v53 = vmul.f32 %v3002_v18, %v4146_v35  ;;  %v4147_v60 = vld [vmem:[#allocation35_spill] sm:$0xff]  ;;  %v4148_v5 = vld [vmem:[#allocation36_spill] sm:$0xff]  ;;  %v3331_v9 = vadd.f32 %v3263_v28, %v3038_v31  ;;  %v3355_v31 = vadd.f32 %v3263_v28, %v3062_v57 }
 0x276   :  { %4143 = vst [vmem:[#allocation29_spill] sm:$0xff] %v3258_v10  ;;  %4145 = vst [vmem:[#allocation30_spill] sm:$0xff] %v3267_v6  ;;  %v3275_v32 = vmul.f32 %v3002_v18, %v4147_v60  ;;  %v3279_v47 = vmul.f32 %v3002_v18, %v4148_v5  ;;  %v4149_v10 = vld [vmem:[#allocation37_spill] sm:$0xff]  ;;  %v4151_v6 = vld [vmem:[#allocation39_spill] sm:$0xff]  ;;  %v3295_v60 = vmul.f32 %v3002_v18, %v2851_v0 }
 0x277   :  { %v3283_v51 = vmul.f32 %v3002_v18, %v4149_v10  ;;  %v3291_v35 = vmul.f32 %v3002_v18, %v4151_v6  ;;  %v3299_v5 = vadd.f32 %v3263_v28, %v3006_v38  ;;  %v3303_v10 = vadd.f32 %v3263_v28, %v3010_v4 }
 0x278   :  { %v3311_v6 = vadd.f32 %v3263_v28, %v3018_v2  ;;  %v3315_v0 = vadd.f32 %v3263_v28, %v3022_v21  ;;  %v3319_v18 = vadd.f32 %v3263_v28, %v3026_v8  ;;  %v3323_v38 = vadd.f32 %v3263_v28, %v3030_v59 }
 0x279   :  { %v3327_v4 = vadd.f32 %v3263_v28, %v3034_v19  ;;  %v3335_v2 = vadd.f32 %v3263_v28, %v3042_v12  ;;  %v3339_v21 = vadd.f32 %v3263_v28, %v3046_v46  ;;  %v3343_v8 = vadd.f32 %v3263_v28, %v3050_v50 }
 0x27a   :  { %v3347_v59 = vadd.f32 %v3263_v28, %v3054_v44  ;;  %v3351_v19 = vadd.f32 %v3263_v28, %v3058_v48  ;;  %v3359_v12 = vadd.f32 %v3263_v28, %v3066_v62  ;;  %v3363_v46 = vadd.f32 %v3263_v28, %v3070_v54 }
 0x27b   :  { %v3367_v50 = vadd.f32 %v3263_v28, %v3074_v36  ;;  %v3371_v44 = vadd.f32 %v3263_v28, %v3078_v42  ;;  %v3375_v48 = vadd.f32 %v3263_v28, %v3082_v33  ;;  %v3379_v57 = vadd.f32 %v3263_v28, %v3086_v7 }
 0x27c   :  { %v3383_v62 = vadd.f32 %v3263_v28, %v3090_v14  ;;  %v3387_v54 = vadd.f32 %v3263_v28, %v3094_v15  ;;  %v3391_v36 = vadd.f32 %v3263_v28, %v3098_v16  ;;  %v3395_v42 = vadd.f32 %v3263_v28, %v3102_v30 }
 0x27d   :  { %v3399_v33 = vadd.f32 %v3263_v28, %v3106_v11  ;;  %v3403_v7 = vadd.f32 %v3263_v28, %v3110_v40  ;;  %v3407_v14 = vadd.f32 %v3263_v28, %v3114_v43  ;;  %v3411_v15 = vadd.f32 %v3263_v28, %v3118_v13 }
 0x27e   :  { %v3415_v16 = vadd.f32 %v3263_v28, %v3122_v27  ;;  %v3419_v30 = vadd.f32 %v3263_v28, %v3126_v26  ;;  %v3423_v11 = vadd.f32 %v3263_v28, %v3130_v1  ;;  %v3427_v40 = vadd.f32 %v3263_v28, %v3134_v52 }
 0x27f   :  { %v3431_v43 = vadd.f32 %v3263_v28, %v3138_v17  ;;  %v3435_v13 = vadd.f32 %v3263_v28, %v3142_v22  ;;  %v3439_v27 = vadd.f32 %v3263_v28, %v3146_v41  ;;  %v3443_v26 = vadd.f32 %v3263_v28, %v3150_v20 }
 0x280   :  { %4152 = vst [vmem:[#allocation2_spill] sm:$0xff] %v3419_v30  ;;  %v3447_v1 = vadd.f32 %v3263_v28, %v3154_v37  ;;  %v3451_v52 = vadd.f32 %v3263_v28, %v3158_v39  ;;  %v3455_v17 = vadd.f32 %v3263_v28, %v3162_v55  ;;  %v3459_v22 = vadd.f32 %v3263_v28, %v3166_v3  ;;  %v4162_v55 = vld [vmem:[#allocation8_spill] sm:$0xff] }
 0x281   :  { %4153 = vst [vmem:[#allocation3_spill] sm:$0xff] %v3443_v26  ;;  %v3463_v41 = vadd.f32 %v3263_v28, %v3170_v29  ;;  %v3467_v20 = vadd.f32 %v3263_v28, %v3174_v25  ;;  %v3471_v37 = vadd.f32 %v3263_v28, %v3178_v34  ;;  %v3475_v39 = vadd.f32 %v3263_v28, %v3182_v24 }
 0x282   :  { %4154 = vst [vmem:[#allocation5_spill] sm:$0xff] %v3447_v1  ;;  %4155 = vst [vmem:[#allocation7_spill] sm:$0xff] %v3451_v52  ;;  %v3479_v3 = vadd.f32 %v3263_v28, %v4162_v55  ;;  %v3491_v34 = vadd.f32 %v3263_v28, %v3198_v45  ;;  %v3495_v24 = vadd.f32 %v3263_v28, %v3202_v49 }
 0x283   :  { %4156 = vst [vmem:[#allocation4_spill] sm:$0xff] %v3455_v17  ;;  %4157 = vst [vmem:[#allocation6_spill] sm:$0xff] %v3459_v22  ;;  %v4164_v22 = vld [vmem:[#allocation10_spill] sm:$0xff]  ;;  %v3499_v55 = vadd.f32 %v3263_v28, %v3206_v58 }
 0x284   :  { %4158 = vst [vmem:[#allocation9_spill] sm:$0xff] %v3463_v41  ;;  %4159 = vst [vmem:[#allocation11_spill] sm:$0xff] %v3467_v20  ;;  %v3483_v29 = vadd.f32 %v3263_v28, %v4164_v22  ;;  %v4166_v41 = vld [vmem:[#allocation14_spill] sm:$0xff]  ;;  %v3503_v22 = vadd.f32 %v3263_v28, %v3210_v63 }
 0x285   :  { %4160 = vst [vmem:[#allocation15_spill] sm:$0xff] %v3471_v37  ;;  %4161 = vst [vmem:[#allocation20_spill] sm:$0xff] %v3475_v39  ;;  %v3487_v25 = vadd.f32 %v3263_v28, %v4166_v41  ;;  %v3507_v41 = vadd.f32 %v3263_v28, %v3214_v56 }
 0x286   :  { %4163 = vst [vmem:[#allocation23_spill] sm:$0xff] %v3479_v3  ;;  %4165 = vst [vmem:[#allocation19_spill] sm:$0xff] %v3483_v29 }
 0x287   :  { %4167 = vst [vmem:[#allocation33_spill] sm:$0xff] %v3487_v25  ;;  %4168 = vst [vmem:[#allocation18_spill] sm:$0xff] %v3491_v34  ;;  %v4173_v25 = vld [vmem:[#allocation17_spill] sm:$0xff]  ;;  %v4175_v34 = vld [vmem:[#allocation12_spill] sm:$0xff] }
 0x288   :  { %4169 = vst [vmem:[#allocation13_spill] sm:$0xff] %v3495_v24  ;;  %4170 = vst [vmem:[#allocation16_spill] sm:$0xff] %v3499_v55  ;;  %v3511_v45 = vadd.f32 %v3263_v28, %v4173_v25  ;;  %v3515_v49 = vadd.f32 %v3263_v28, %v4175_v34  ;;  %v4177_v24 = vld [vmem:[#allocation22_spill] sm:$0xff]  ;;  %v4179_v55 = vld [vmem:[#allocation24_spill] sm:$0xff] }
 0x289   :  { %4171 = vst [vmem:[#allocation21_spill] sm:$0xff] %v3503_v22  ;;  %4172 = vst [vmem:[#allocation34_spill] sm:$0xff] %v3507_v41  ;;  %v3519_v58 = vadd.f32 %v3263_v28, %v4177_v24  ;;  %v3523_v63 = vadd.f32 %v3263_v28, %v4179_v55  ;;  %v4181_v22 = vld [vmem:[#allocation31_spill] sm:$0xff]  ;;  %v4183_v41 = vld [vmem:[#allocation32_spill] sm:$0xff] }
 0x28a   :  { %4174 = vst [vmem:[#allocation35_spill] sm:$0xff] %v3511_v45  ;;  %4176 = vst [vmem:[#allocation36_spill] sm:$0xff] %v3515_v49  ;;  %v3527_v56 = vadd.f32 %v3263_v28, %v4181_v22  ;;  %v3531_v25 = vadd.f32 %v3263_v28, %v4183_v41  ;;  %v4185_v45 = vld [vmem:[#allocation25_spill] sm:$0xff]  ;;  %v4187_v49 = vld [vmem:[#allocation26_spill] sm:$0xff] }
 0x28b   :  { %4178 = vst [vmem:[#allocation37_spill] sm:$0xff] %v3519_v58  ;;  %4180 = vst [vmem:[#allocation38_spill] sm:$0xff] %v3523_v63  ;;  %v3535_v34 = vadd.f32 %v3263_v28, %v4185_v45  ;;  %v3539_v24 = vadd.f32 %v3263_v28, %v4187_v49  ;;  %v4188_v58 = vld [vmem:[#allocation27_spill] sm:$0xff]  ;;  %v4189_v63 = vld [vmem:[#allocation28_spill] sm:$0xff]  ;;  %v3559_v49 = vadd.f32 %v3263_v28, %v3271_v53 }
 0x28c   :  { %4182 = vst [vmem:[#allocation39_spill] sm:$0xff] %v3527_v56  ;;  %4184 = vst [vmem:[#allocation8_spill] sm:$0xff] %v3531_v25  ;;  %v3543_v55 = vadd.f32 %v3263_v28, %v4188_v58  ;;  %v3547_v22 = vadd.f32 %v3263_v28, %v4189_v63  ;;  %v4190_v56 = vld [vmem:[#allocation29_spill] sm:$0xff]  ;;  %v4192_v25 = vld [vmem:[#allocation30_spill] sm:$0xff]  ;;  %v3563_v58 = vadd.f32 %v3263_v28, %v3275_v32 }
 0x28d   :  { %4186 = vst [vmem:[#allocation10_spill] sm:$0xff] %v3535_v34  ;;  %v3551_v41 = vadd.f32 %v3263_v28, %v4190_v56  ;;  %v3555_v45 = vadd.f32 %v3263_v28, %v4192_v25  ;;  %v3567_v63 = vadd.f32 %v3263_v28, %v3279_v47  ;;  %v3571_v56 = vadd.f32 %v3263_v28, %v3283_v51 }
 0x28e   :  { %4193 = vst [vmem:[#allocation17_spill] sm:$0xff] %v3563_v58  ;;  %v3575_v25 = vadd.f32 %v3263_v28, %v3287_v23  ;;  %v3579_v53 = vadd.f32 %v3263_v28, %v3291_v35  ;;  %v3583_v32 = vadd.f32 %v3263_v28, %v3295_v60  ;;  %v4201_v1 = vld [vmem:[#allocation18_spill] sm:$0xff]  ;;  %v4218_v51 = vmax.f32 %v3303_v10, 0.0 }
 0x28f   :  { %4191 = vst [vmem:[#allocation14_spill] sm:$0xff] %v3551_v41  ;;  %4194 = vst [vmem:[#allocation12_spill] sm:$0xff] %v3567_v63  ;;  %v4202_v52 = vld [vmem:[#allocation13_spill] sm:$0xff]  ;;  %v4203_v17 = vld [vmem:[#allocation16_spill] sm:$0xff]  ;;  %v4213_v3 = vmov %v3567_v63  ;;  %v4217_v63 = vmax.f32 %v3299_v5, 0.0  ;;  %v4220_v23 = vmax.f32 %v3311_v6, 0.0 }
 0x290   :  { %4195 = vst [vmem:[#allocation22_spill] sm:$0xff] %v3571_v56  ;;  %4196 = vst [vmem:[#allocation24_spill] sm:$0xff] %v3575_v25  ;;  %v4204_v58 = vld [vmem:[#allocation21_spill] sm:$0xff]  ;;  %v4205_v30 = vld [vmem:[#allocation34_spill] sm:$0xff]  ;;  %v4215_v26 = vmov %v3575_v25  ;;  %v4216_v34 = vmov %v3579_v53  ;;  %v4219_v56 = vmax.f32 %v3307_v61, 0.0  ;;  %v4221_v35 = vmax.f32 %v3315_v0, 0.0 }
 0x291   :  { %4197 = vst [vmem:[#allocation31_spill] sm:$0xff] %v3579_v53  ;;  %v4206_v20 = vld [vmem:[#allocation35_spill] sm:$0xff]  ;;  %v4207_v37 = vld [vmem:[#allocation36_spill] sm:$0xff]  ;;  %v1784_v41 = vpack.c.bf16 %v4218_v51, %v4217_v63  ;;  %v4222_v53 = vmax.f32 %v3319_v18, 0.0  ;;  %v4223_v28 = vmax.f32 %v3323_v38, 0.0  ;;  %v4224_v60 = vmax.f32 %v3327_v4, 0.0 }
 0x292   :  { %v1789_v25 = vpack.c.bf16 %v4220_v23, %v4219_v56  ;;  %v4225_v5 = vmax.f32 %v3331_v9, 0.0  ;;  %v4226_v10 = vmax.f32 %v3335_v2, 0.0  ;;  %v4227_v61 = vmax.f32 %v3339_v21, 0.0 }
 0x293   :  { %v1794_v29 = vpack.c.bf16 %v4222_v53, %v4221_v35  ;;  %v1799_v47 = vpack.c.bf16 %v4224_v60, %v4223_v28  ;;  %v4228_v6 = vmax.f32 %v3343_v8, 0.0  ;;  %v4229_v0 = vmax.f32 %v3347_v59, 0.0  ;;  %1785 = vst [vmem:[%s3913_s4] sm:$0xff] %v1784_v41   ;;  %v4247_v35 = vld [vmem:[#allocation2_spill] sm:$0xff] }
 0x294   :  { %v1804_v63 = vpack.c.bf16 %v4226_v10, %v4225_v5  ;;  %v4230_v18 = vmax.f32 %v3351_v19, 0.0  ;;  %v4231_v38 = vmax.f32 %v3355_v31, 0.0  ;;  %v4232_v4 = vmax.f32 %v3359_v12, 0.0  ;;  %1961 = vst [vmem:[%s3913_s4 + $0x8] sm:$0xff] %v1789_v25  }
 0x295   :  { %v4212_v39 = vld [vmem:[#allocation17_spill] sm:$0xff]  ;;  %v1809_v56 = vpack.c.bf16 %v4228_v6, %v4227_v61  ;;  %1962 = vst [vmem:[%s3913_s4 + $0x10] sm:$0xff] %v1794_v29   ;;  %1963 = vst [vmem:[%s3913_s4 + $0x18] sm:$0xff] %v1799_v47   ;;  %v4233_v9 = vmax.f32 %v3363_v46, 0.0  ;;  %v4234_v2 = vmax.f32 %v3367_v50, 0.0  ;;  %v4235_v8 = vmax.f32 %v3371_v44, 0.0 }
 0x296   :  { %v1814_v53 = vpack.c.bf16 %v4230_v18, %v4229_v0  ;;  %v1819_v51 = vpack.c.bf16 %v4232_v4, %v4231_v38  ;;  %v4236_v59 = vmax.f32 %v3375_v48, 0.0  ;;  %v4237_v31 = vmax.f32 %v3379_v57, 0.0  ;;  %1964 = vst [vmem:[%s3913_s4 + $0x20] sm:$0xff] %v1804_v63   ;;  %v4256_v63 = vld [vmem:[#allocation5_spill] sm:$0xff]  ;;  %v4260_v18 = vld [vmem:[#allocation4_spill] sm:$0xff] }
 0x297   :  { %v1824_v21 = vpack.c.bf16 %v4234_v2, %v4233_v9  ;;  %v4238_v12 = vmax.f32 %v3383_v62, 0.0  ;;  %v4239_v29 = vmax.f32 %v3387_v54, 0.0  ;;  %v4240_v25 = vmax.f32 %v3391_v36, 0.0  ;;  %1965 = vst [vmem:[%s3913_s4 + $0x28] sm:$0xff] %v1809_v56   ;;  %v4258_v56 = vld [vmem:[#allocation7_spill] sm:$0xff] }
 0x298   :  { %v1829_v19 = vpack.c.bf16 %v4236_v59, %v4235_v8  ;;  %1966 = vst [vmem:[%s3913_s4 + $0x30] sm:$0xff] %v1814_v53   ;;  %1967 = vst [vmem:[%s3913_s4 + $0x38] sm:$0xff] %v1819_v51   ;;  %v4241_v46 = vmax.f32 %v3395_v42, 0.0  ;;  %v4242_v50 = vmax.f32 %v3399_v33, 0.0  ;;  %v4243_v48 = vmax.f32 %v3403_v7, 0.0  ;;  %v4266_v51 = vld [vmem:[#allocation11_spill] sm:$0xff] }
 0x299   :  { %v1834_v41 = vpack.c.bf16 %v4238_v12, %v4237_v31  ;;  %v1839_v47 = vpack.c.bf16 %v4240_v25, %v4239_v29  ;;  %v4244_v57 = vmax.f32 %v3407_v14, 0.0  ;;  %v4245_v54 = vmax.f32 %v3411_v15, 0.0  ;;  %1968 = vst [vmem:[%s3913_s4 + $0x40] sm:$0xff] %v1824_v21   ;;  %v4268_v2 = vld [vmem:[#allocation15_spill] sm:$0xff]  ;;  %v4270_v59 = vld [vmem:[#allocation20_spill] sm:$0xff] }
 0x29a   :  { %v1844_v44 = vpack.c.bf16 %v4242_v50, %v4241_v46  ;;  %v4246_v36 = vmax.f32 %v3415_v16, 0.0  ;;  %v4248_v28 = vmax.f32 %v4247_v35, 0.0  ;;  %v4249_v60 = vmax.f32 %v3423_v11, 0.0  ;;  %1969 = vst [vmem:[%s3913_s4 + $0x48] sm:$0xff] %v1829_v19   ;;  %v4254_v11 = vld [vmem:[#allocation3_spill] sm:$0xff] }
 0x29b   :  { %v1849_v62 = vpack.c.bf16 %v4244_v57, %v4243_v48  ;;  %1970 = vst [vmem:[%s3913_s4 + $0x50] sm:$0xff] %v1834_v41   ;;  %1971 = vst [vmem:[%s3913_s4 + $0x58] sm:$0xff] %v1839_v47   ;;  %v4250_v42 = vmax.f32 %v3427_v40, 0.0  ;;  %v4251_v33 = vmax.f32 %v3431_v43, 0.0  ;;  %v4252_v14 = vmax.f32 %v3435_v13, 0.0  ;;  %v4262_v40 = vld [vmem:[#allocation6_spill] sm:$0xff] }
 0x29c   :  { %v1854_v23 = vpack.c.bf16 %v4246_v36, %v4245_v54  ;;  %v1859_v5 = vpack.c.bf16 %v4249_v60, %v4248_v28  ;;  %v4253_v15 = vmax.f32 %v3439_v27, 0.0  ;;  %v4255_v10 = vmax.f32 %v4254_v11, 0.0  ;;  %1972 = vst [vmem:[%s3913_s4 + $0x60] sm:$0xff] %v1844_v44   ;;  %v4264_v13 = vld [vmem:[#allocation9_spill] sm:$0xff]  ;;  %v4272_v31 = vld [vmem:[#allocation23_spill] sm:$0xff] }
 0x29d   :  { %v1864_v7 = vpack.c.bf16 %v4251_v33, %v4250_v42  ;;  %v4257_v61 = vmax.f32 %v4256_v63, 0.0  ;;  %v4259_v0 = vmax.f32 %v4258_v56, 0.0  ;;  %v4261_v53 = vmax.f32 %v4260_v18, 0.0  ;;  %1973 = vst [vmem:[%s3913_s4 + $0x68] sm:$0xff] %v1849_v62   ;;  %v4274_v29 = vld [vmem:[#allocation19_spill] sm:$0xff]  ;;  %v4276_v47 = vld [vmem:[#allocation33_spill] sm:$0xff] }
 0x29e   :  { %v1869_v16 = vpack.c.bf16 %v4253_v15, %v4252_v14  ;;  %1974 = vst [vmem:[%s3913_s4 + $0x70] sm:$0xff] %v1854_v23   ;;  %1975 = vst [vmem:[%s3913_s4 + $0x78] sm:$0xff] %v1859_v5   ;;  %v4263_v43 = vmax.f32 %v4262_v40, 0.0  ;;  %v4265_v27 = vmax.f32 %v4264_v13, 0.0  ;;  %v4267_v9 = vmax.f32 %v4266_v51, 0.0  ;;  %v4285_v5 = vld [vmem:[#allocation37_spill] sm:$0xff] }
 0x29f   :  { %v1874_v6 = vpack.c.bf16 %v4257_v61, %v4255_v10  ;;  %v1879_v38 = vpack.c.bf16 %v4261_v53, %v4259_v0  ;;  %v4269_v21 = vmax.f32 %v4268_v2, 0.0  ;;  %v4271_v19 = vmax.f32 %v4270_v59, 0.0  ;;  %1976 = vst [vmem:[%s3913_s4 + $0x80] sm:$0xff] %v1864_v7   ;;  %v4293_v7 = vld [vmem:[#allocation10_spill] sm:$0xff] }
 0x2a0   :  { %v1884_v4 = vpack.c.bf16 %v4265_v27, %v4263_v43  ;;  %v4273_v12 = vmax.f32 %v4272_v31, 0.0  ;;  %v4275_v25 = vmax.f32 %v4274_v29, 0.0  ;;  %v4277_v46 = vmax.f32 %v4276_v47, 0.0  ;;  %1977 = vst [vmem:[%s3913_s4 + $0x88] sm:$0xff] %v1869_v16   ;;  %v4298_v61 = vld [vmem:[#allocation14_spill] sm:$0xff] }
 0x2a1   :  { %v1889_v8 = vpack.c.bf16 %v4269_v21, %v4267_v9  ;;  %1978 = vst [vmem:[%s3913_s4 + $0x90] sm:$0xff] %v1874_v6   ;;  %1979 = vst [vmem:[%s3913_s4 + $0x98] sm:$0xff] %v1879_v38   ;;  %v4278_v44 = vmax.f32 %v4201_v1, 0.0  ;;  %v4279_v48 = vmax.f32 %v4202_v52, 0.0  ;;  %v4280_v62 = vmax.f32 %v4203_v17, 0.0  ;;  %v4289_v52 = vld [vmem:[#allocation39_spill] sm:$0xff] }
 0x2a2   :  { %v1894_v41 = vpack.c.bf16 %v4273_v12, %v4271_v19  ;;  %v1899_v50 = vpack.c.bf16 %v4277_v46, %v4275_v25  ;;  %v4281_v54 = vmax.f32 %v4204_v58, 0.0  ;;  %v4282_v23 = vmax.f32 %v4205_v30, 0.0  ;;  %1980 = vst [vmem:[%s3913_s4 + $0xa0] sm:$0xff] %v1884_v4   ;;  %v4287_v30 = vld [vmem:[#allocation38_spill] sm:$0xff] }
 0x2a3   :  { %v1904_v57 = vpack.c.bf16 %v4279_v48, %v4278_v44  ;;  %v4283_v35 = vmax.f32 %v4206_v20, 0.0  ;;  %v4284_v60 = vmax.f32 %v4207_v37, 0.0  ;;  %v4286_v42 = vmax.f32 %v4285_v5, 0.0  ;;  %1981 = vst [vmem:[%s3913_s4 + $0xa8] sm:$0xff] %v1889_v8   ;;  %v4291_v37 = vld [vmem:[#allocation8_spill] sm:$0xff]  ;;  %v4304_v38 = vld [vmem:[#allocation22_spill] sm:$0xff] }
 0x2a4   :  { %v1909_v36 = vpack.c.bf16 %v4281_v54, %v4280_v62  ;;  %1982 = vst [vmem:[%s3913_s4 + $0xb0] sm:$0xff] %v1894_v41   ;;  %1983 = vst [vmem:[%s3913_s4 + $0xb8] sm:$0xff] %v1899_v50   ;;  %v4288_v1 = vmax.f32 %v4287_v30, 0.0  ;;  %v4290_v17 = vmax.f32 %v4289_v52, 0.0  ;;  %v4292_v58 = vmax.f32 %v4291_v37, 0.0 }
 0x2a5   :  { %v1914_v28 = vpack.c.bf16 %v4283_v35, %v4282_v23  ;;  %v1919_v33 = vpack.c.bf16 %v4286_v42, %v4284_v60  ;;  %v4294_v14 = vmax.f32 %v4293_v7, 0.0  ;;  %v4295_v16 = vmax.f32 %v3539_v24, 0.0  ;;  %1984 = vst [vmem:[%s3913_s4 + $0xc0] sm:$0xff] %v1904_v57  }
 0x2a6   :  { %v1924_v20 = vpack.c.bf16 %v4290_v17, %v4288_v1  ;;  %v4296_v11 = vmax.f32 %v3543_v55, 0.0  ;;  %v4297_v63 = vmax.f32 %v3547_v22, 0.0  ;;  %v4299_v6 = vmax.f32 %v4298_v61, 0.0  ;;  %1985 = vst [vmem:[%s3913_s4 + $0xc8] sm:$0xff] %v1909_v36  }
 0x2a7   :  { %v1929_v15 = vpack.c.bf16 %v4294_v14, %v4292_v58  ;;  %1986 = vst [vmem:[%s3913_s4 + $0xd0] sm:$0xff] %v1914_v28   ;;  %1987 = vst [vmem:[%s3913_s4 + $0xd8] sm:$0xff] %v1919_v33   ;;  %v4300_v24 = vmax.f32 %v3555_v45, 0.0  ;;  %v4301_v55 = vmax.f32 %v3559_v49, 0.0  ;;  %v4302_v0 = vmax.f32 %v4212_v39, 0.0 }
 0x2a8   :  { %v1934_v10 = vpack.c.bf16 %v4296_v11, %v4295_v16  ;;  %v1939_v56 = vpack.c.bf16 %v4299_v6, %v4297_v63  ;;  %v4303_v18 = vmax.f32 %v4213_v3, 0.0  ;;  %v4305_v40 = vmax.f32 %v4304_v38, 0.0  ;;  %1988 = vst [vmem:[%s3913_s4 + $0xe0] sm:$0xff] %v1924_v20  }
 0x2a9   :  { %v1944_v22 = vpack.c.bf16 %v4301_v55, %v4300_v24  ;;  %v4306_v43 = vmax.f32 %v4215_v26, 0.0  ;;  %v4307_v27 = vmax.f32 %v4216_v34, 0.0  ;;  %v4308_v4 = vmax.f32 %v3583_v32, 0.0  ;;  %1989 = vst [vmem:[%s3913_s4 + $0xe8] sm:$0xff] %v1929_v15  }
 0x2aa   :  { %v1949_v53 = vpack.c.bf16 %v4303_v18, %v4302_v0  ;;  %1990 = vst [vmem:[%s3913_s4 + $0xf0] sm:$0xff] %v1934_v10   ;;  %1991 = vst [vmem:[%s3913_s4 + $0xf8] sm:$0xff] %v1939_v56  }
 0x2ab   :  { %v1954_v13 = vpack.c.bf16 %v4306_v43, %v4305_v40  ;;  %v1959_v51 = vpack.c.bf16 %v4308_v4, %v4307_v27  ;;  %1992 = vst [vmem:[%s3913_s4 + $0x100] sm:$0xff] %v1944_v22  }
 0x2ac   :  { %1993 = vst [vmem:[%s3913_s4 + $0x108] sm:$0xff] %v1949_v53  }
 0x2ad   :  { %1994 = vst [vmem:[%s3913_s4 + $0x110] sm:$0xff] %v1954_v13   ;;  %1995 = vst [vmem:[%s3913_s4 + $0x118] sm:$0xff] %v1959_v51  }

</bundles_post_ra>
